<compile_context>
chip_gen: v5e
topology: v5e:2x2
jax: 0.10.0
libtpu: 0.0.40
codegen_flags: <defaults>
</compile_context>

<pallas_src>
import functools

import jax
import jax.numpy as jnp
from jax.experimental import pallas as pl
from jax.experimental.pallas import tpu as pltpu

D_FFN = 2048          # nn.Transformer default dim_feedforward
LN_EPS = 1e-5         # nn.LayerNorm default eps
VMEM_LIMIT = 32 * 1024 * 1024   # safe scoped-VMEM cap on v5e/v6e/v7x


def _pick_tile(dim, target, base):
    """Largest tile <= target that is a multiple of `base` and divides `dim`,
    or the full dim (always legal) when dim is small / has no such divisor."""
    if dim <= target:
        return dim
    t = (target // base) * base
    while t >= base:
        if dim % t == 0:
            return t
        t -= base
    return dim


# ----------------------------------------------------------------------------
# Pallas kernels
# ----------------------------------------------------------------------------
def _linear_kernel(x_ref, w_ref, b_ref, o_ref, acc_ref, *, activation):
    # Tiled y = x @ w + b with K-accumulation in a VMEM f32 scratch.
    @pl.when(pl.program_id(2) == 0)
    def _init():
        acc_ref[...] = jnp.zeros_like(acc_ref)

    acc_ref[...] += jnp.dot(
        x_ref[...].astype(jnp.bfloat16),
        w_ref[...].astype(jnp.bfloat16),
        preferred_element_type=jnp.float32)

    @pl.when(pl.program_id(2) == pl.num_programs(2) - 1)
    def _flush():
        y = acc_ref[...] + b_ref[...]
        if activation == "relu":
            y = jnp.maximum(y, 0.0)
        o_ref[...] = y.astype(o_ref.dtype)


def linear(x, w, b, activation=None, *, tm=256, tn=256, tk=512):
    """x: (M, K) f32, w: (K, N) bf16/f32, b: (N,) f32 -> (M, N) f32."""
    M, K = x.shape
    N = w.shape[1]
    tm = _pick_tile(M, tm, 8)
    tn = _pick_tile(N, tn, 128)
    tk = _pick_tile(K, tk, 128)
    return pl.pallas_call(
        functools.partial(_linear_kernel, activation=activation),
        out_shape=jax.ShapeDtypeStruct((M, N), jnp.float32),
        grid=(M // tm, N // tn, K // tk),
        in_specs=[
            pl.BlockSpec((tm, tk), lambda i, j, k: (i, k)),
            pl.BlockSpec((tk, tn), lambda i, j, k: (k, j)),
            pl.BlockSpec((1, tn), lambda i, j, k: (0, j)),
        ],
        out_specs=pl.BlockSpec((tm, tn), lambda i, j, k: (i, j)),
        scratch_shapes=[pltpu.VMEM((tm, tn), jnp.float32)],
        compiler_params=pltpu.CompilerParams(
            dimension_semantics=("parallel", "parallel", "arbitrary"),
            vmem_limit_bytes=VMEM_LIMIT),
    )(x, w, b.reshape(1, N))


def _ffn_kernel(x_ref, w1_ref, b1_ref, w2_ref, b2_ref, o_ref):
    # Fused FFN: relu(x @ w1 + b1) @ w2 + b2; intermediate stays in VMEM.
    x = x_ref[...].astype(jnp.bfloat16)
    h = jnp.dot(x, w1_ref[...], preferred_element_type=jnp.float32)
    h = jnp.maximum(h + b1_ref[...], 0.0)
    y = jnp.dot(h.astype(jnp.bfloat16), w2_ref[...],
                preferred_element_type=jnp.float32)
    o_ref[...] = (y + b2_ref[...]).astype(o_ref.dtype)


def ffn(x, w1, b1, w2, b2, *, tm=256):
    """x: (M, E) f32, w1: (E, F) bf16, w2: (F, E) bf16 -> (M, E) f32."""
    M, E = x.shape
    F = w1.shape[1]
    tm = _pick_tile(M, tm, 8)
    return pl.pallas_call(
        _ffn_kernel,
        out_shape=jax.ShapeDtypeStruct((M, E), jnp.float32),
        grid=(M // tm,),
        in_specs=[
            pl.BlockSpec((tm, E), lambda i: (i, 0)),
            pl.BlockSpec((E, F), lambda i: (0, 0)),
            pl.BlockSpec((1, F), lambda i: (0, 0)),
            pl.BlockSpec((F, E), lambda i: (0, 0)),
            pl.BlockSpec((1, E), lambda i: (0, 0)),
        ],
        out_specs=pl.BlockSpec((tm, E), lambda i: (i, 0)),
        compiler_params=pltpu.CompilerParams(
            dimension_semantics=("parallel",),
            vmem_limit_bytes=VMEM_LIMIT),
    )(x, w1, b1.reshape(1, F), w2, b2.reshape(1, E))


def _attn_kernel(q_ref, k_ref, v_ref, o_ref, *, scale):
    # One group of (batch*head) slices per grid step; block layout is
    # (seq, heads_in_block, head_dim) so no HBM transposes are needed.
    # TODO(synk): for long sequences, tile over Sk with flash-style online
    # softmax (m/l/acc scratch) to cap VMEM on v7x.
    G = q_ref.shape[1]
    for h in range(G):                                   # static unroll
        q = q_ref[:, h, :].astype(jnp.bfloat16)          # (Sq, Dh)
        k = k_ref[:, h, :].astype(jnp.bfloat16)          # (Sk, Dh)
        v = v_ref[:, h, :].astype(jnp.bfloat16)          # (Sk, Dh)
        # q @ k^T via contracting dims (no explicit transpose relayout).
        s = jax.lax.dot_general(
            q, k, (((1,), (1,)), ((), ())),
            preferred_element_type=jnp.float32) * scale  # (Sq, Sk)
        m = jnp.max(s, axis=-1, keepdims=True)
        p = jnp.exp(s - m)
        denom = jnp.sum(p, axis=-1, keepdims=True)
        p = p * pl.reciprocal(denom, approx=True)        # divide on the EUP
        o = jnp.dot(p.astype(jnp.bfloat16), v,
                    preferred_element_type=jnp.float32)  # (Sq, Dh)
        o_ref[:, h, :] = o.astype(o_ref.dtype)


def attention(q, k, v, *, g_target=8):
    """q: (Sq, NH, Dh), k/v: (Sk, NH, Dh) -> (Sq, NH, Dh). Unmasked SDPA.

    NH = batch * num_heads; layout matches a free reshape of the QKV
    projection output, so no transposes are materialized in HBM.
    """
    Sq, NH, Dh = q.shape
    Sk = k.shape[1 - 1] if False else k.shape[0]
    scale = 1.0 / float(Dh) ** 0.5
    G = _pick_tile(NH, g_target, 8)
    return pl.pallas_call(
        functools.partial(_attn_kernel, scale=scale),
        out_shape=jax.ShapeDtypeStruct((Sq, NH, Dh), jnp.float32),
        grid=(NH // G,),
        in_specs=[
            pl.BlockSpec((Sq, G, Dh), lambda i: (0, i, 0)),
            pl.BlockSpec((Sk, G, Dh), lambda i: (0, i, 0)),
            pl.BlockSpec((Sk, G, Dh), lambda i: (0, i, 0)),
        ],
        out_specs=pl.BlockSpec((Sq, G, Dh), lambda i: (0, i, 0)),
        compiler_params=pltpu.CompilerParams(
            dimension_semantics=("parallel",),
            vmem_limit_bytes=VMEM_LIMIT),
    )(q, k, v)


def _add_ln_kernel(x_ref, y_ref, g_ref, b_ref, o_ref, *, eps):
    # post-norm residual: LayerNorm(x + y) over last dim (biased variance)
    z = x_ref[...] + y_ref[...]
    mean = jnp.mean(z, axis=-1, keepdims=True)
    var = jnp.mean((z - mean) ** 2, axis=-1, keepdims=True)
    zn = (z - mean) * jax.lax.rsqrt(var + eps)
    o_ref[...] = (zn * g_ref[...] + b_ref[...]).astype(o_ref.dtype)


def _ln_kernel(x_ref, g_ref, b_ref, o_ref, *, eps):
    z = x_ref[...]
    mean = jnp.mean(z, axis=-1, keepdims=True)
    var = jnp.mean((z - mean) ** 2, axis=-1, keepdims=True)
    zn = (z - mean) * jax.lax.rsqrt(var + eps)
    o_ref[...] = (zn * g_ref[...] + b_ref[...]).astype(o_ref.dtype)


def add_layernorm(x, y, gamma, beta, eps=LN_EPS, *, tm=1024):
    """x, y: (M, E); gamma, beta: (E,) -> LayerNorm(x + y)."""
    M, E = x.shape
    tm = _pick_tile(M, tm, 8)
    return pl.pallas_call(
        functools.partial(_add_ln_kernel, eps=eps),
        out_shape=jax.ShapeDtypeStruct((M, E), jnp.float32),
        grid=(M // tm,),
        in_specs=[
            pl.BlockSpec((tm, E), lambda i: (i, 0)),
            pl.BlockSpec((tm, E), lambda i: (i, 0)),
            pl.BlockSpec((1, E), lambda i: (0, 0)),
            pl.BlockSpec((1, E), lambda i: (0, 0)),
        ],
        out_specs=pl.BlockSpec((tm, E), lambda i: (i, 0)),
        compiler_params=pltpu.CompilerParams(
            dimension_semantics=("parallel",),
            vmem_limit_bytes=VMEM_LIMIT),
    )(x, y, gamma.reshape(1, E), beta.reshape(1, E))


def layernorm(x, gamma, beta, eps=LN_EPS, *, tm=1024):
    """Plain LayerNorm(x) — no zero array / third input stream."""
    M, E = x.shape
    tm = _pick_tile(M, tm, 8)
    return pl.pallas_call(
        functools.partial(_ln_kernel, eps=eps),
        out_shape=jax.ShapeDtypeStruct((M, E), jnp.float32),
        grid=(M // tm,),
        in_specs=[
            pl.BlockSpec((tm, E), lambda i: (i, 0)),
            pl.BlockSpec((1, E), lambda i: (0, 0)),
            pl.BlockSpec((1, E), lambda i: (0, 0)),
        ],
        out_specs=pl.BlockSpec((tm, E), lambda i: (i, 0)),
        compiler_params=pltpu.CompilerParams(
            dimension_semantics=("parallel",),
            vmem_limit_bytes=VMEM_LIMIT),
    )(x, gamma.reshape(1, E), beta.reshape(1, E))


# ----------------------------------------------------------------------------
# Transformer building blocks (thin JAX glue around the kernels)
# ----------------------------------------------------------------------------
def mha_self(x, p, num_heads):
    """Self-attention, fused QKV projection. x: (S, N, E) -> (S, N, E)."""
    S, N, E = x.shape
    Dh = E // num_heads
    x2 = x.reshape(S * N, E)
    qkv = linear(x2, p["w_qkv"], p["b_qkv"])             # (S*N, 3E), one matmul
    q = qkv[:, :E].reshape(S, N * num_heads, Dh)         # free reshapes
    k = qkv[:, E:2 * E].reshape(S, N * num_heads, Dh)
    v = qkv[:, 2 * E:].reshape(S, N * num_heads, Dh)
    o = attention(q, k, v).reshape(S * N, E)
    o = linear(o, p["wo"], p["bo"])
    return o.reshape(S, N, E)


def mha_cross(x, mem, p, num_heads):
    """Cross-attention: q from x (T,N,E), fused k/v from mem (S,N,E)."""
    T, N, E = x.shape
    S = mem.shape[0]
    Dh = E // num_heads
    q = linear(x.reshape(T * N, E), p["w_qkv"][:, :E], p["b_qkv"][:E])
    kv = linear(mem.reshape(S * N, E), p["w_qkv"][:, E:], p["b_qkv"][E:])
    q = q.reshape(T, N * num_heads, Dh)
    k = kv[:, :E].reshape(S, N * num_heads, Dh)
    v = kv[:, E:].reshape(S, N * num_heads, Dh)
    o = attention(q, k, v).reshape(T * N, E)
    o = linear(o, p["wo"], p["bo"])
    return o.reshape(T, N, E)


def encoder_layer(x, p, num_heads):
    S, N, E = x.shape
    M = S * N
    sa = mha_self(x, p["self_attn"], num_heads)
    x1 = add_layernorm(x.reshape(M, E), sa.reshape(M, E),
                       p["ln1_g"], p["ln1_b"])
    h = ffn(x1, p["w1"], p["b1"], p["w2"], p["b2"])
    x2 = add_layernorm(x1, h, p["ln2_g"], p["ln2_b"])
    return x2.reshape(S, N, E)


def decoder_layer(x, mem, p, num_heads):
    T, N, E = x.shape
    M = T * N
    # TODO(synk): no causal tgt mask, matching the reference module's
    # nn.Transformer call with no masks passed.
    sa = mha_self(x, p["self_attn"], num_heads)
    x1 = add_layernorm(x.reshape(M, E), sa.reshape(M, E),
                       p["ln1_g"], p["ln1_b"])
    ca = mha_cross(x1.reshape(T, N, E), mem, p["cross_attn"], num_heads)
    x2 = add_layernorm(x1, ca.reshape(M, E), p["ln2_g"], p["ln2_b"])
    h = ffn(x2, p["w1"], p["b1"], p["w2"], p["b2"])
    x3 = add_layernorm(x2, h, p["ln3_g"], p["ln3_b"])
    return x3.reshape(T, N, E)


def qa_transformer_forward(src, tgt, params, num_heads):
    """src: (S, N) int32, tgt: (T, N) int32 -> logits (T, N, vocab)."""
    emb = params["embedding"]                      # (vocab, hidden) f32
    src_e = jnp.take(emb, src, axis=0)             # (S, N, E) -- gather glue
    tgt_e = jnp.take(emb, tgt, axis=0)             # (T, N, E)
    # TODO(synk): dropout is a no-op here (inference/eval semantics).

    # encoder
    x = src_e
    for lp in params["encoder_layers"]:
        x = encoder_layer(x, lp, num_heads)
    S, N, E = x.shape
    mem = layernorm(x.reshape(S * N, E),
                    params["enc_norm_g"], params["enc_norm_b"]).reshape(S, N, E)

    # decoder
    y = tgt_e
    for lp in params["decoder_layers"]:
        y = decoder_layer(y, mem, lp, num_heads)
    T = y.shape[0]
    y2 = layernorm(y.reshape(T * N, E),
                   params["dec_norm_g"], params["dec_norm_b"])

    # final vocab projection (tiled over vocab if it is large)
    logits = linear(y2, params["fc_w"], params["fc_b"])
    vocab = params["fc_w"].shape[1]
    return logits.reshape(T, N, vocab)


# ----------------------------------------------------------------------------
# Deterministic parameter initialization (synthetic weights, not a checkpoint)
# Weights stored in bf16 (MXU-native, halved weight DMA); biases/LN/emb in f32.
# ----------------------------------------------------------------------------
def init_params(key, vocab_size, hidden_size, num_layers, num_heads):
    keys = iter(jax.random.split(key, 4096))
    E = hidden_size

    def nrm(shape, scale=0.02, dtype=jnp.bfloat16):
        w = scale * jax.random.normal(next(keys), shape, dtype=jnp.float32)
        return w.astype(dtype)

    def zeros(n):
        return jnp.zeros((n,), jnp.float32)

    def ones(n):
        return jnp.ones((n,), jnp.float32)

    def attn_params():
        # fused in-projection (q|k|v), matching torch MHA's in_proj layout
        return {
            "w_qkv": nrm((E, 3 * E)), "b_qkv": zeros(3 * E),
            "wo": nrm((E, E)), "bo": zeros(E),
        }

    def ffn_ln(extra_ln):
        d = {
            "w1": nrm((E, D_FFN)), "b1": zeros(D_FFN),
            "w2": nrm((D_FFN, E)), "b2": zeros(E),
        }
        for name in extra_ln:
            d[name + "_g"] = ones(E)
            d[name + "_b"] = zeros(E)
        return d

    enc_layers = []
    for _ in range(num_layers):
        lp = {"self_attn": attn_params()}
        lp.update(ffn_ln(["ln1", "ln2"]))
        enc_layers.append(lp)

    dec_layers = []
    for _ in range(num_layers):
        lp = {"self_attn": attn_params(), "cross_attn": attn_params()}
        lp.update(ffn_ln(["ln1", "ln2", "ln3"]))
        dec_layers.append(lp)

    return {
        "embedding": nrm((vocab_size, E), scale=1.0, dtype=jnp.float32),
        "encoder_layers": enc_layers,
        "decoder_layers": dec_layers,
        "enc_norm_g": ones(E), "enc_norm_b": zeros(E),
        "dec_norm_g": ones(E), "dec_norm_b": zeros(E),
        "fc_w": nrm((E, vocab_size)),
        "fc_b": zeros(vocab_size),
    }


# ----------------------------------------------------------------------------
if __name__ == "__main__":
    vocab_size, hidden_size, num_layers, num_heads = 64, 32, 2, 4
    S, T, N = 8, 8, 2   # src seq len, tgt seq len, batch

    key = jax.random.PRNGKey(0)
    kp, ks, kt = jax.random.split(key, 3)
    params = init_params(kp, vocab_size, hidden_size, num_layers, num_heads)
    src = jax.random.randint(ks, (S, N), 0, vocab_size, dtype=jnp.int32)
    tgt = jax.random.randint(kt, (T, N), 0, vocab_size, dtype=jnp.int32)

    fwd = jax.jit(qa_transformer_forward, static_argnums=(3,))
    out = fwd(src, tgt, params, num_heads)
    out = jax.block_until_ready(out)
    assert out.shape == (T, N, vocab_size), out.shape
    assert out.dtype == jnp.float32
    assert bool(jnp.all(jnp.isfinite(out)))
    print("KERNEL_OK")
</pallas_src>

<mosaic_0001>
module attributes {stable_mosaic.version = 11 : i64} {
  func.func @_linear_kernel(%arg0: i32, %arg1: i32, %arg2: i32, %arg3: memref<16x32xf32, #tpu.memory_space<vmem>>, %arg4: memref<32x96xbf16, #tpu.memory_space<vmem>>, %arg5: memref<1x96xf32, #tpu.memory_space<vmem>>, %arg6: memref<16x96xf32, #tpu.memory_space<vmem>>, %arg7: memref<16x96xf32, #tpu.memory_space<vmem>>) attributes {dimension_semantics = [#tpu.dimension_semantics<parallel>, #tpu.dimension_semantics<parallel>, #tpu.dimension_semantics<arbitrary>], iteration_bounds = array<i64: 1, 1, 1>, scalar_prefetch = 0 : i64, scratch_operands = 1 : i64, tpu.core_type = #tpu.core_type<tc>, window_params = [{transform_indices = @transform_0, window_bounds = array<i64: 16, 32>}, {transform_indices = @transform_1, window_bounds = array<i64: 32, 96>}, {transform_indices = @transform_2, window_bounds = array<i64: 1, 96>}, {transform_indices = @transform_3, window_bounds = array<i64: 16, 96>}]} {
    %c0_i32 = arith.constant 0 : i32
    %0 = arith.cmpi eq, %arg2, %c0_i32 : i32
    %1 = arith.extui %0 : i1 to i32
    %c0_i32_0 = arith.constant 0 : i32
    %2 = arith.cmpi ne, %1, %c0_i32_0 : i32
    scf.if %2 {
      %cst_10 = arith.constant 0.000000e+00 : f32
      %13 = vector.broadcast %cst_10 : f32 to vector<16x96xf32>
      %c0_11 = arith.constant 0 : index
      %c0_12 = arith.constant 0 : index
      %14 = vector.load %arg7[%c0_11, %c0_12] : memref<16x96xf32, #tpu.memory_space<vmem>>, vector<16x96xf32>
      tpu.vector_store %arg7[%c0_11, %c0_12], %13 {strides = array<i32>} : memref<16x96xf32, #tpu.memory_space<vmem>>, vector<16x96xf32>,
    } else {
    }
    %c0 = arith.constant 0 : index
    %c0_1 = arith.constant 0 : index
    %3 = vector.load %arg7[%c0, %c0_1] : memref<16x96xf32, #tpu.memory_space<vmem>>, vector<16x96xf32>
    %c0_2 = arith.constant 0 : index
    %c0_3 = arith.constant 0 : index
    %4 = vector.load %arg3[%c0_2, %c0_3] : memref<16x32xf32, #tpu.memory_space<vmem>>, vector<16x32xf32>
    %5 = arith.truncf %4 : vector<16x32xf32> to vector<16x32xbf16>
    %c0_4 = arith.constant 0 : index
    %c0_5 = arith.constant 0 : index
    %6 = vector.load %arg4[%c0_4, %c0_5] : memref<32x96xbf16, #tpu.memory_space<vmem>>, vector<32x96xbf16>
    %cst = arith.constant dense<0.000000e+00> : vector<16x96xf32>
    %7 = tpu.matmul %5, %6, %cst {dimension_numbers = #tpu.dot_dimension_numbers<[1], [0], [0], [1], [0, 0, 1, 1], [], []>} : vector<16x32xbf16>, vector<32x96xbf16>, vector<16x96xf32> -> vector<16x96xf32>
    %8 = arith.addf %3, %7 : vector<16x96xf32>
    %c0_6 = arith.constant 0 : index
    %c0_7 = arith.constant 0 : index
    %9 = vector.load %arg7[%c0_6, %c0_7] : memref<16x96xf32, #tpu.memory_space<vmem>>, vector<16x96xf32>
    tpu.vector_store %arg7[%c0_6, %c0_7], %8 {strides = array<i32>} : memref<16x96xf32, #tpu.memory_space<vmem>>, vector<16x96xf32>,
    %c0_i32_8 = arith.constant 0 : i32
    %10 = arith.cmpi eq, %arg2, %c0_i32_8 : i32
    %11 = arith.extui %10 : i1 to i32
    %c0_i32_9 = arith.constant 0 : i32
    %12 = arith.cmpi ne, %11, %c0_i32_9 : i32
    scf.if %12 {
      %c0_10 = arith.constant 0 : index
      %c0_11 = arith.constant 0 : index
      %13 = vector.load %arg7[%c0_10, %c0_11] : memref<16x96xf32, #tpu.memory_space<vmem>>, vector<16x96xf32>
      %c0_12 = arith.constant 0 : index
      %c0_13 = arith.constant 0 : index
      %14 = vector.load %arg5[%c0_12, %c0_13] : memref<1x96xf32, #tpu.memory_space<vmem>>, vector<1x96xf32>
      %15 = vector.broadcast %14 : vector<1x96xf32> to vector<16x96xf32>
      %16 = arith.addf %13, %15 : vector<16x96xf32>
      %c0_14 = arith.constant 0 : index
      %c0_15 = arith.constant 0 : index
      %17 = vector.load %arg6[%c0_14, %c0_15] : memref<16x96xf32, #tpu.memory_space<vmem>>, vector<16x96xf32>
      tpu.vector_store %arg6[%c0_14, %c0_15], %16 {strides = array<i32>} : memref<16x96xf32, #tpu.memory_space<vmem>>, vector<16x96xf32>,
    } else {
    }
    return
  }
  func.func @transform_0(%arg0: i32, %arg1: i32, %arg2: i32) -> (i32, i32) {
    %c0_i32 = arith.constant 0 : i32
    return %arg0, %arg2 : i32, i32
  }
  func.func @transform_1(%arg0: i32, %arg1: i32, %arg2: i32) -> (i32, i32) {
    %c0_i32 = arith.constant 0 : i32
    return %arg2, %arg1 : i32, i32
  }
  func.func @transform_2(%arg0: i32, %arg1: i32, %arg2: i32) -> (i32, i32) {
    %c0_i32 = arith.constant 0 : i32
    %c0_i32_0 = arith.constant 0 : i32
    return %c0_i32, %arg1 : i32, i32
  }
  func.func @transform_3(%arg0: i32, %arg1: i32, %arg2: i32) -> (i32, i32) {
    %c0_i32 = arith.constant 0 : i32
    return %arg0, %arg1 : i32, i32
  }
}

module attributes {stable_mosaic.version = 11 : i64} {
  func.func @_add_ln_kernel(%arg0: i32, %arg1: memref<16x32xf32, #tpu.memory_space<vmem>>, %arg2: memref<16x32xf32, #tpu.memory_space<vmem>>, %arg3: memref<1x32xf32, #tpu.memory_space<vmem>>, %arg4: memref<1x32xf32, #tpu.memory_space<vmem>>, %arg5: memref<16x32xf32, #tpu.memory_space<vmem>>) attributes {dimension_semantics = [#tpu.dimension_semantics<parallel>], iteration_bounds = array<i64: 1>, scalar_prefetch = 0 : i64, scratch_operands = 0 : i64, tpu.core_type = #tpu.core_type<tc>, window_params = [{transform_indices = @transform_0, window_bounds = array<i64: 16, 32>}, {transform_indices = @transform_1, window_bounds = array<i64: 16, 32>}, {pipeline_mode = #tpu.pipeline_mode<synchronous>, transform_indices = @transform_2, window_bounds = array<i64: 1, 32>}, {pipeline_mode = #tpu.pipeline_mode<synchronous>, transform_indices = @transform_3, window_bounds = array<i64: 1, 32>}, {transform_indices = @transform_4, window_bounds = array<i64: 16, 32>}]} {
    %c0 = arith.constant 0 : index
    %c0_0 = arith.constant 0 : index
    %0 = vector.load %arg1[%c0, %c0_0] : memref<16x32xf32, #tpu.memory_space<vmem>>, vector<16x32xf32>
    %c0_1 = arith.constant 0 : index
    %c0_2 = arith.constant 0 : index
    %1 = vector.load %arg2[%c0_1, %c0_2] : memref<16x32xf32, #tpu.memory_space<vmem>>, vector<16x32xf32>
    %2 = arith.addf %0, %1 : vector<16x32xf32>
    %cst = arith.constant dense<0.000000e+00> : vector<16xf32>
    %3 = vector.multi_reduction <add>, %2, %cst [1] : vector<16x32xf32> to vector<16xf32>
    %4 = vector.shape_cast %3 : vector<16xf32> to vector<16x1xf32>
    %cst_3 = arith.constant 3.200000e+01 : f32
    %5 = vector.broadcast %cst_3 : f32 to vector<16x1xf32>
    %6 = arith.divf %4, %5 : vector<16x1xf32>
    %7 = vector.broadcast %6 : vector<16x1xf32> to vector<16x32xf32>
    %8 = arith.subf %2, %7 : vector<16x32xf32>
    %9 = arith.mulf %8, %8 : vector<16x32xf32>
    %cst_4 = arith.constant dense<0.000000e+00> : vector<16xf32>
    %10 = vector.multi_reduction <add>, %9, %cst_4 [1] : vector<16x32xf32> to vector<16xf32>
    %11 = vector.shape_cast %10 : vector<16xf32> to vector<16x1xf32>
    %cst_5 = arith.constant 3.200000e+01 : f32
    %12 = vector.broadcast %cst_5 : f32 to vector<16x1xf32>
    %13 = arith.divf %11, %12 : vector<16x1xf32>
    %14 = vector.broadcast %6 : vector<16x1xf32> to vector<16x32xf32>
    %15 = arith.subf %2, %14 : vector<16x32xf32>
    %cst_6 = arith.constant 9.99999974E-6 : f32
    %16 = vector.broadcast %cst_6 : f32 to vector<16x1xf32>
    %17 = arith.addf %13, %16 : vector<16x1xf32>
    %18 = math.rsqrt %17 : vector<16x1xf32>
    %19 = vector.broadcast %18 : vector<16x1xf32> to vector<16x32xf32>
    %20 = arith.mulf %15, %19 : vector<16x32xf32>
    %c0_7 = arith.constant 0 : index
    %c0_8 = arith.constant 0 : index
    %21 = vector.load %arg3[%c0_7, %c0_8] : memref<1x32xf32, #tpu.memory_space<vmem>>, vector<1x32xf32>
    %22 = vector.broadcast %21 : vector<1x32xf32> to vector<16x32xf32>
    %23 = arith.mulf %20, %22 : vector<16x32xf32>
    %c0_9 = arith.constant 0 : index
    %c0_10 = arith.constant 0 : index
    %24 = vector.load %arg4[%c0_9, %c0_10] : memref<1x32xf32, #tpu.memory_space<vmem>>, vector<1x32xf32>
    %25 = vector.broadcast %24 : vector<1x32xf32> to vector<16x32xf32>
    %26 = arith.addf %23, %25 : vector<16x32xf32>
    %c0_11 = arith.constant 0 : index
    %c0_12 = arith.constant 0 : index
    %27 = vector.load %arg5[%c0_11, %c0_12] : memref<16x32xf32, #tpu.memory_space<vmem>>, vector<16x32xf32>
    tpu.vector_store %arg5[%c0_11, %c0_12], %26 {strides = array<i32>} : memref<16x32xf32, #tpu.memory_space<vmem>>, vector<16x32xf32>,
    return
  }
  func.func @transform_0(%arg0: i32) -> (i32, i32) {
    %c0_i32 = arith.constant 0 : i32
    %c0_i32_0 = arith.constant 0 : i32
    return %arg0, %c0_i32 : i32, i32
  }
  func.func @transform_1(%arg0: i32) -> (i32, i32) {
    %c0_i32 = arith.constant 0 : i32
    %c0_i32_0 = arith.constant 0 : i32
    return %arg0, %c0_i32 : i32, i32
  }
  func.func @transform_2(%arg0: i32) -> (i32, i32) {
    %c0_i32 = arith.constant 0 : i32
    %c0_i32_0 = arith.constant 0 : i32
    %c0_i32_1 = arith.constant 0 : i32
    return %c0_i32, %c0_i32_0 : i32, i32
  }
  func.func @transform_3(%arg0: i32) -> (i32, i32) {
    %c0_i32 = arith.constant 0 : i32
    %c0_i32_0 = arith.constant 0 : i32
    %c0_i32_1 = arith.constant 0 : i32
    return %c0_i32, %c0_i32_0 : i32, i32
  }
  func.func @transform_4(%arg0: i32) -> (i32, i32) {
    %c0_i32 = arith.constant 0 : i32
    %c0_i32_0 = arith.constant 0 : i32
    return %arg0, %c0_i32 : i32, i32
  }
}

module attributes {stable_mosaic.version = 11 : i64} {
  func.func @_linear_kernel(%arg0: i32, %arg1: i32, %arg2: i32, %arg3: memref<16x32xf32, #tpu.memory_space<vmem>>, %arg4: memref<32x32xbf16, #tpu.memory_space<vmem>>, %arg5: memref<1x32xf32, #tpu.memory_space<vmem>>, %arg6: memref<16x32xf32, #tpu.memory_space<vmem>>, %arg7: memref<16x32xf32, #tpu.memory_space<vmem>>) attributes {dimension_semantics = [#tpu.dimension_semantics<parallel>, #tpu.dimension_semantics<parallel>, #tpu.dimension_semantics<arbitrary>], iteration_bounds = array<i64: 1, 1, 1>, scalar_prefetch = 0 : i64, scratch_operands = 1 : i64, tpu.core_type = #tpu.core_type<tc>, window_params = [{transform_indices = @transform_0, window_bounds = array<i64: 16, 32>}, {transform_indices = @transform_1, window_bounds = array<i64: 32, 32>}, {transform_indices = @transform_2, window_bounds = array<i64: 1, 32>}, {transform_indices = @transform_3, window_bounds = array<i64: 16, 32>}]} {
    %c0_i32 = arith.constant 0 : i32
    %0 = arith.cmpi eq, %arg2, %c0_i32 : i32
    %1 = arith.extui %0 : i1 to i32
    %c0_i32_0 = arith.constant 0 : i32
    %2 = arith.cmpi ne, %1, %c0_i32_0 : i32
    scf.if %2 {
      %cst_10 = arith.constant 0.000000e+00 : f32
      %13 = vector.broadcast %cst_10 : f32 to vector<16x32xf32>
      %c0_11 = arith.constant 0 : index
      %c0_12 = arith.constant 0 : index
      %14 = vector.load %arg7[%c0_11, %c0_12] : memref<16x32xf32, #tpu.memory_space<vmem>>, vector<16x32xf32>
      tpu.vector_store %arg7[%c0_11, %c0_12], %13 {strides = array<i32>} : memref<16x32xf32, #tpu.memory_space<vmem>>, vector<16x32xf32>,
    } else {
    }
    %c0 = arith.constant 0 : index
    %c0_1 = arith.constant 0 : index
    %3 = vector.load %arg7[%c0, %c0_1] : memref<16x32xf32, #tpu.memory_space<vmem>>, vector<16x32xf32>
    %c0_2 = arith.constant 0 : index
    %c0_3 = arith.constant 0 : index
    %4 = vector.load %arg3[%c0_2, %c0_3] : memref<16x32xf32, #tpu.memory_space<vmem>>, vector<16x32xf32>
    %5 = arith.truncf %4 : vector<16x32xf32> to vector<16x32xbf16>
    %c0_4 = arith.constant 0 : index
    %c0_5 = arith.constant 0 : index
    %6 = vector.load %arg4[%c0_4, %c0_5] : memref<32x32xbf16, #tpu.memory_space<vmem>>, vector<32x32xbf16>
    %cst = arith.constant dense<0.000000e+00> : vector<16x32xf32>
    %7 = tpu.matmul %5, %6, %cst {dimension_numbers = #tpu.dot_dimension_numbers<[1], [0], [0], [1], [0, 0, 1, 1], [], []>} : vector<16x32xbf16>, vector<32x32xbf16>, vector<16x32xf32> -> vector<16x32xf32>
    %8 = arith.addf %3, %7 : vector<16x32xf32>
    %c0_6 = arith.constant 0 : index
    %c0_7 = arith.constant 0 : index
    %9 = vector.load %arg7[%c0_6, %c0_7] : memref<16x32xf32, #tpu.memory_space<vmem>>, vector<16x32xf32>
    tpu.vector_store %arg7[%c0_6, %c0_7], %8 {strides = array<i32>} : memref<16x32xf32, #tpu.memory_space<vmem>>, vector<16x32xf32>,
    %c0_i32_8 = arith.constant 0 : i32
    %10 = arith.cmpi eq, %arg2, %c0_i32_8 : i32
    %11 = arith.extui %10 : i1 to i32
    %c0_i32_9 = arith.constant 0 : i32
    %12 = arith.cmpi ne, %11, %c0_i32_9 : i32
    scf.if %12 {
      %c0_10 = arith.constant 0 : index
      %c0_11 = arith.constant 0 : index
      %13 = vector.load %arg7[%c0_10, %c0_11] : memref<16x32xf32, #tpu.memory_space<vmem>>, vector<16x32xf32>
      %c0_12 = arith.constant 0 : index
      %c0_13 = arith.constant 0 : index
      %14 = vector.load %arg5[%c0_12, %c0_13] : memref<1x32xf32, #tpu.memory_space<vmem>>, vector<1x32xf32>
      %15 = vector.broadcast %14 : vector<1x32xf32> to vector<16x32xf32>
      %16 = arith.addf %13, %15 : vector<16x32xf32>
      %c0_14 = arith.constant 0 : index
      %c0_15 = arith.constant 0 : index
      %17 = vector.load %arg6[%c0_14, %c0_15] : memref<16x32xf32, #tpu.memory_space<vmem>>, vector<16x32xf32>
      tpu.vector_store %arg6[%c0_14, %c0_15], %16 {strides = array<i32>} : memref<16x32xf32, #tpu.memory_space<vmem>>, vector<16x32xf32>,
    } else {
    }
    return
  }
  func.func @transform_0(%arg0: i32, %arg1: i32, %arg2: i32) -> (i32, i32) {
    %c0_i32 = arith.constant 0 : i32
    return %arg0, %arg2 : i32, i32
  }
  func.func @transform_1(%arg0: i32, %arg1: i32, %arg2: i32) -> (i32, i32) {
    %c0_i32 = arith.constant 0 : i32
    return %arg2, %arg1 : i32, i32
  }
  func.func @transform_2(%arg0: i32, %arg1: i32, %arg2: i32) -> (i32, i32) {
    %c0_i32 = arith.constant 0 : i32
    %c0_i32_0 = arith.constant 0 : i32
    return %c0_i32, %arg1 : i32, i32
  }
  func.func @transform_3(%arg0: i32, %arg1: i32, %arg2: i32) -> (i32, i32) {
    %c0_i32 = arith.constant 0 : i32
    return %arg0, %arg1 : i32, i32
  }
}

module attributes {stable_mosaic.version = 11 : i64} {
  func.func @_attn_kernel(%arg0: i32, %arg1: memref<8x8x8xf32, #tpu.memory_space<vmem>>, %arg2: memref<8x8x8xf32, #tpu.memory_space<vmem>>, %arg3: memref<8x8x8xf32, #tpu.memory_space<vmem>>, %arg4: memref<8x8x8xf32, #tpu.memory_space<vmem>>) attributes {dimension_semantics = [#tpu.dimension_semantics<parallel>], iteration_bounds = array<i64: 1>, scalar_prefetch = 0 : i64, scratch_operands = 0 : i64, tpu.core_type = #tpu.core_type<tc>, window_params = [{transform_indices = @transform_0, window_bounds = array<i64: 8, 8, 8>}, {transform_indices = @transform_1, window_bounds = array<i64: 8, 8, 8>}, {transform_indices = @transform_2, window_bounds = array<i64: 8, 8, 8>}, {transform_indices = @transform_3, window_bounds = array<i64: 8, 8, 8>}]} {
    %c0 = arith.constant 0 : index
    %c0_0 = arith.constant 0 : index
    %c0_1 = arith.constant 0 : index
    %0 = vector.load %arg1[%c0, %c0_0, %c0_1] : memref<8x8x8xf32, #tpu.memory_space<vmem>>, vector<8x1x8xf32>
    %1 = vector.shape_cast %0 : vector<8x1x8xf32> to vector<8x8xf32>
    %2 = arith.truncf %1 : vector<8x8xf32> to vector<8x8xbf16>
    %c0_2 = arith.constant 0 : index
    %c0_3 = arith.constant 0 : index
    %c0_4 = arith.constant 0 : index
    %3 = vector.load %arg2[%c0_2, %c0_3, %c0_4] : memref<8x8x8xf32, #tpu.memory_space<vmem>>, vector<8x1x8xf32>
    %4 = vector.shape_cast %3 : vector<8x1x8xf32> to vector<8x8xf32>
    %5 = arith.truncf %4 : vector<8x8xf32> to vector<8x8xbf16>
    %c0_5 = arith.constant 0 : index
    %c0_6 = arith.constant 0 : index
    %c0_7 = arith.constant 0 : index
    %6 = vector.load %arg3[%c0_5, %c0_6, %c0_7] : memref<8x8x8xf32, #tpu.memory_space<vmem>>, vector<8x1x8xf32>
    %7 = vector.shape_cast %6 : vector<8x1x8xf32> to vector<8x8xf32>
    %8 = arith.truncf %7 : vector<8x8xf32> to vector<8x8xbf16>
    %cst = arith.constant dense<0.000000e+00> : vector<8x8xf32>
    %9 = tpu.matmul %2, %5, %cst {dimension_numbers = #tpu.dot_dimension_numbers<[1], [1], [0], [0], [0, 0, 1, 0], [], []>} : vector<8x8xbf16>, vector<8x8xbf16>, vector<8x8xf32> -> vector<8x8xf32>
    %cst_8 = arith.constant 0.353553385 : f32
    %10 = vector.broadcast %cst_8 : f32 to vector<8x8xf32>
    %11 = arith.mulf %9, %10 : vector<8x8xf32>
    %cst_9 = arith.constant dense<0xFF800000> : vector<8xf32>
    %12 = vector.multi_reduction <maximumf>, %11, %cst_9 [1] : vector<8x8xf32> to vector<8xf32>
    %13 = vector.shape_cast %12 : vector<8xf32> to vector<8x1xf32>
    %14 = vector.broadcast %13 : vector<8x1xf32> to vector<8x8xf32>
    %15 = arith.subf %11, %14 : vector<8x8xf32>
    %16 = math.exp %15 : vector<8x8xf32>
    %cst_10 = arith.constant dense<0.000000e+00> : vector<8xf32>
    %17 = vector.multi_reduction <add>, %16, %cst_10 [1] : vector<8x8xf32> to vector<8xf32>
    %18 = vector.shape_cast %17 : vector<8xf32> to vector<8x1xf32>
    %19 = tpu.reciprocal %18 {approx = true} : vector<8x1xf32> -> vector<8x1xf32>
    %20 = vector.broadcast %19 : vector<8x1xf32> to vector<8x8xf32>
    %21 = arith.mulf %16, %20 : vector<8x8xf32>
    %22 = arith.truncf %21 : vector<8x8xf32> to vector<8x8xbf16>
    %cst_11 = arith.constant dense<0.000000e+00> : vector<8x8xf32>
    %23 = tpu.matmul %22, %8, %cst_11 {dimension_numbers = #tpu.dot_dimension_numbers<[1], [0], [0], [1], [0, 0, 1, 1], [], []>} : vector<8x8xbf16>, vector<8x8xbf16>, vector<8x8xf32> -> vector<8x8xf32>
    %c0_12 = arith.constant 0 : index
    %c0_13 = arith.constant 0 : index
    %c0_14 = arith.constant 0 : index
    %24 = vector.load %arg4[%c0_12, %c0_13, %c0_14] : memref<8x8x8xf32, #tpu.memory_space<vmem>>, vector<8x1x8xf32>
    %25 = vector.shape_cast %24 : vector<8x1x8xf32> to vector<8x8xf32>
    %26 = vector.shape_cast %23 : vector<8x8xf32> to vector<8x1x8xf32>
    tpu.vector_store %arg4[%c0_12, %c0_13, %c0_14], %26 {strides = array<i32>} : memref<8x8x8xf32, #tpu.memory_space<vmem>>, vector<8x1x8xf32>,
    %c0_15 = arith.constant 0 : index
    %c1 = arith.constant 1 : index
    %c0_16 = arith.constant 0 : index
    %27 = vector.load %arg1[%c0_15, %c1, %c0_16] : memref<8x8x8xf32, #tpu.memory_space<vmem>>, vector<8x1x8xf32>
    %28 = vector.shape_cast %27 : vector<8x1x8xf32> to vector<8x8xf32>
    %29 = arith.truncf %28 : vector<8x8xf32> to vector<8x8xbf16>
    %c0_17 = arith.constant 0 : index
    %c1_18 = arith.constant 1 : index
    %c0_19 = arith.constant 0 : index
    %30 = vector.load %arg2[%c0_17, %c1_18, %c0_19] : memref<8x8x8xf32, #tpu.memory_space<vmem>>, vector<8x1x8xf32>
    %31 = vector.shape_cast %30 : vector<8x1x8xf32> to vector<8x8xf32>
    %32 = arith.truncf %31 : vector<8x8xf32> to vector<8x8xbf16>
    %c0_20 = arith.constant 0 : index
    %c1_21 = arith.constant 1 : index
    %c0_22 = arith.constant 0 : index
    %33 = vector.load %arg3[%c0_20, %c1_21, %c0_22] : memref<8x8x8xf32, #tpu.memory_space<vmem>>, vector<8x1x8xf32>
    %34 = vector.shape_cast %33 : vector<8x1x8xf32> to vector<8x8xf32>
    %35 = arith.truncf %34 : vector<8x8xf32> to vector<8x8xbf16>
    %cst_23 = arith.constant dense<0.000000e+00> : vector<8x8xf32>
    %36 = tpu.matmul %29, %32, %cst_23 {dimension_numbers = #tpu.dot_dimension_numbers<[1], [1], [0], [0], [0, 0, 1, 0], [], []>} : vector<8x8xbf16>, vector<8x8xbf16>, vector<8x8xf32> -> vector<8x8xf32>
    %cst_24 = arith.constant 0.353553385 : f32
    %37 = vector.broadcast %cst_24 : f32 to vector<8x8xf32>
    %38 = arith.mulf %36, %37 : vector<8x8xf32>
    %cst_25 = arith.constant dense<0xFF800000> : vector<8xf32>
    %39 = vector.multi_reduction <maximumf>, %38, %cst_25 [1] : vector<8x8xf32> to vector<8xf32>
    %40 = vector.shape_cast %39 : vector<8xf32> to vector<8x1xf32>
    %41 = vector.broadcast %40 : vector<8x1xf32> to vector<8x8xf32>
    %42 = arith.subf %38, %41 : vector<8x8xf32>
    %43 = math.exp %42 : vector<8x8xf32>
    %cst_26 = arith.constant dense<0.000000e+00> : vector<8xf32>
    %44 = vector.multi_reduction <add>, %43, %cst_26 [1] : vector<8x8xf32> to vector<8xf32>
    %45 = vector.shape_cast %44 : vector<8xf32> to vector<8x1xf32>
    %46 = tpu.reciprocal %45 {approx = true} : vector<8x1xf32> -> vector<8x1xf32>
    %47 = vector.broadcast %46 : vector<8x1xf32> to vector<8x8xf32>
    %48 = arith.mulf %43, %47 : vector<8x8xf32>
    %49 = arith.truncf %48 : vector<8x8xf32> to vector<8x8xbf16>
    %cst_27 = arith.constant dense<0.000000e+00> : vector<8x8xf32>
    %50 = tpu.matmul %49, %35, %cst_27 {dimension_numbers = #tpu.dot_dimension_numbers<[1], [0], [0], [1], [0, 0, 1, 1], [], []>} : vector<8x8xbf16>, vector<8x8xbf16>, vector<8x8xf32> -> vector<8x8xf32>
    %c0_28 = arith.constant 0 : index
    %c1_29 = arith.constant 1 : index
    %c0_30 = arith.constant 0 : index
    %51 = vector.load %arg4[%c0_28, %c1_29, %c0_30] : memref<8x8x8xf32, #tpu.memory_space<vmem>>, vector<8x1x8xf32>
    %52 = vector.shape_cast %51 : vector<8x1x8xf32> to vector<8x8xf32>
    %53 = vector.shape_cast %50 : vector<8x8xf32> to vector<8x1x8xf32>
    tpu.vector_store %arg4[%c0_28, %c1_29, %c0_30], %53 {strides = array<i32>} : memref<8x8x8xf32, #tpu.memory_space<vmem>>, vector<8x1x8xf32>,
    %c0_31 = arith.constant 0 : index
    %c2 = arith.constant 2 : index
    %c0_32 = arith.constant 0 : index
    %54 = vector.load %arg1[%c0_31, %c2, %c0_32] : memref<8x8x8xf32, #tpu.memory_space<vmem>>, vector<8x1x8xf32>
    %55 = vector.shape_cast %54 : vector<8x1x8xf32> to vector<8x8xf32>
    %56 = arith.truncf %55 : vector<8x8xf32> to vector<8x8xbf16>
    %c0_33 = arith.constant 0 : index
    %c2_34 = arith.constant 2 : index
    %c0_35 = arith.constant 0 : index
    %57 = vector.load %arg2[%c0_33, %c2_34, %c0_35] : memref<8x8x8xf32, #tpu.memory_space<vmem>>, vector<8x1x8xf32>
    %58 = vector.shape_cast %57 : vector<8x1x8xf32> to vector<8x8xf32>
    %59 = arith.truncf %58 : vector<8x8xf32> to vector<8x8xbf16>
    %c0_36 = arith.constant 0 : index
    %c2_37 = arith.constant 2 : index
    %c0_38 = arith.constant 0 : index
    %60 = vector.load %arg3[%c0_36, %c2_37, %c0_38] : memref<8x8x8xf32, #tpu.memory_space<vmem>>, vector<8x1x8xf32>
    %61 = vector.shape_cast %60 : vector<8x1x8xf32> to vector<8x8xf32>
    %62 = arith.truncf %61 : vector<8x8xf32> to vector<8x8xbf16>
    %cst_39 = arith.constant dense<0.000000e+00> : vector<8x8xf32>
    %63 = tpu.matmul %56, %59, %cst_39 {dimension_numbers = #tpu.dot_dimension_numbers<[1], [1], [0], [0], [0, 0, 1, 0], [], []>} : vector<8x8xbf16>, vector<8x8xbf16>, vector<8x8xf32> -> vector<8x8xf32>
    %cst_40 = arith.constant 0.353553385 : f32
    %64 = vector.broadcast %cst_40 : f32 to vector<8x8xf32>
    %65 = arith.mulf %63, %64 : vector<8x8xf32>
    %cst_41 = arith.constant dense<0xFF800000> : vector<8xf32>
    %66 = vector.multi_reduction <maximumf>, %65, %cst_41 [1] : vector<8x8xf32> to vector<8xf32>
    %67 = vector.shape_cast %66 : vector<8xf32> to vector<8x1xf32>
    %68 = vector.broadcast %67 : vector<8x1xf32> to vector<8x8xf32>
    %69 = arith.subf %65, %68 : vector<8x8xf32>
    %70 = math.exp %69 : vector<8x8xf32>
    %cst_42 = arith.constant dense<0.000000e+00> : vector<8xf32>
    %71 = vector.multi_reduction <add>, %70, %cst_42 [1] : vector<8x8xf32> to vector<8xf32>
    %72 = vector.shape_cast %71 : vector<8xf32> to vector<8x1xf32>
    %73 = tpu.reciprocal %72 {approx = true} : vector<8x1xf32> -> vector<8x1xf32>
    %74 = vector.broadcast %73 : vector<8x1xf32> to vector<8x8xf32>
    %75 = arith.mulf %70, %74 : vector<8x8xf32>
    %76 = arith.truncf %75 : vector<8x8xf32> to vector<8x8xbf16>
    %cst_43 = arith.constant dense<0.000000e+00> : vector<8x8xf32>
    %77 = tpu.matmul %76, %62, %cst_43 {dimension_numbers = #tpu.dot_dimension_numbers<[1], [0], [0], [1], [0, 0, 1, 1], [], []>} : vector<8x8xbf16>, vector<8x8xbf16>, vector<8x8xf32> -> vector<8x8xf32>
    %c0_44 = arith.constant 0 : index
    %c2_45 = arith.constant 2 : index
    %c0_46 = arith.constant 0 : index
    %78 = vector.load %arg4[%c0_44, %c2_45, %c0_46] : memref<8x8x8xf32, #tpu.memory_space<vmem>>, vector<8x1x8xf32>
    %79 = vector.shape_cast %78 : vector<8x1x8xf32> to vector<8x8xf32>
    %80 = vector.shape_cast %77 : vector<8x8xf32> to vector<8x1x8xf32>
    tpu.vector_store %arg4[%c0_44, %c2_45, %c0_46], %80 {strides = array<i32>} : memref<8x8x8xf32, #tpu.memory_space<vmem>>, vector<8x1x8xf32>,
    %c0_47 = arith.constant 0 : index
    %c3 = arith.constant 3 : index
    %c0_48 = arith.constant 0 : index
    %81 = vector.load %arg1[%c0_47, %c3, %c0_48] : memref<8x8x8xf32, #tpu.memory_space<vmem>>, vector<8x1x8xf32>
    %82 = vector.shape_cast %81 : vector<8x1x8xf32> to vector<8x8xf32>
    %83 = arith.truncf %82 : vector<8x8xf32> to vector<8x8xbf16>
    %c0_49 = arith.constant 0 : index
    %c3_50 = arith.constant 3 : index
    %c0_51 = arith.constant 0 : index
    %84 = vector.load %arg2[%c0_49, %c3_50, %c0_51] : memref<8x8x8xf32, #tpu.memory_space<vmem>>, vector<8x1x8xf32>
    %85 = vector.shape_cast %84 : vector<8x1x8xf32> to vector<8x8xf32>
    %86 = arith.truncf %85 : vector<8x8xf32> to vector<8x8xbf16>
    %c0_52 = arith.constant 0 : index
    %c3_53 = arith.constant 3 : index
    %c0_54 = arith.constant 0 : index
    %87 = vector.load %arg3[%c0_52, %c3_53, %c0_54] : memref<8x8x8xf32, #tpu.memory_space<vmem>>, vector<8x1x8xf32>
    %88 = vector.shape_cast %87 : vector<8x1x8xf32> to vector<8x8xf32>
    %89 = arith.truncf %88 : vector<8x8xf32> to vector<8x8xbf16>
    %cst_55 = arith.constant dense<0.000000e+00> : vector<8x8xf32>
    %90 = tpu.matmul %83, %86, %cst_55 {dimension_numbers = #tpu.dot_dimension_numbers<[1], [1], [0], [0], [0, 0, 1, 0], [], []>} : vector<8x8xbf16>, vector<8x8xbf16>, vector<8x8xf32> -> vector<8x8xf32>
    %cst_56 = arith.constant 0.353553385 : f32
    %91 = vector.broadcast %cst_56 : f32 to vector<8x8xf32>
    %92 = arith.mulf %90, %91 : vector<8x8xf32>
    %cst_57 = arith.constant dense<0xFF800000> : vector<8xf32>
    %93 = vector.multi_reduction <maximumf>, %92, %cst_57 [1] : vector<8x8xf32> to vector<8xf32>
    %94 = vector.shape_cast %93 : vector<8xf32> to vector<8x1xf32>
    %95 = vector.broadcast %94 : vector<8x1xf32> to vector<8x8xf32>
    %96 = arith.subf %92, %95 : vector<8x8xf32>
    %97 = math.exp %96 : vector<8x8xf32>
    %cst_58 = arith.constant dense<0.000000e+00> : vector<8xf32>
    %98 = vector.multi_reduction <add>, %97, %cst_58 [1] : vector<8x8xf32> to vector<8xf32>
    %99 = vector.shape_cast %98 : vector<8xf32> to vector<8x1xf32>
    %100 = tpu.reciprocal %99 {approx = true} : vector<8x1xf32> -> vector<8x1xf32>
    %101 = vector.broadcast %100 : vector<8x1xf32> to vector<8x8xf32>
    %102 = arith.mulf %97, %101 : vector<8x8xf32>
    %103 = arith.truncf %102 : vector<8x8xf32> to vector<8x8xbf16>
    %cst_59 = arith.constant dense<0.000000e+00> : vector<8x8xf32>
    %104 = tpu.matmul %103, %89, %cst_59 {dimension_numbers = #tpu.dot_dimension_numbers<[1], [0], [0], [1], [0, 0, 1, 1], [], []>} : vector<8x8xbf16>, vector<8x8xbf16>, vector<8x8xf32> -> vector<8x8xf32>
    %c0_60 = arith.constant 0 : index
    %c3_61 = arith.constant 3 : index
    %c0_62 = arith.constant 0 : index
    %105 = vector.load %arg4[%c0_60, %c3_61, %c0_62] : memref<8x8x8xf32, #tpu.memory_space<vmem>>, vector<8x1x8xf32>
    %106 = vector.shape_cast %105 : vector<8x1x8xf32> to vector<8x8xf32>
    %107 = vector.shape_cast %104 : vector<8x8xf32> to vector<8x1x8xf32>
    tpu.vector_store %arg4[%c0_60, %c3_61, %c0_62], %107 {strides = array<i32>} : memref<8x8x8xf32, #tpu.memory_space<vmem>>, vector<8x1x8xf32>,
    %c0_63 = arith.constant 0 : index
    %c4 = arith.constant 4 : index
    %c0_64 = arith.constant 0 : index
    %108 = vector.load %arg1[%c0_63, %c4, %c0_64] : memref<8x8x8xf32, #tpu.memory_space<vmem>>, vector<8x1x8xf32>
    %109 = vector.shape_cast %108 : vector<8x1x8xf32> to vector<8x8xf32>
    %110 = arith.truncf %109 : vector<8x8xf32> to vector<8x8xbf16>
    %c0_65 = arith.constant 0 : index
    %c4_66 = arith.constant 4 : index
    %c0_67 = arith.constant 0 : index
    %111 = vector.load %arg2[%c0_65, %c4_66, %c0_67] : memref<8x8x8xf32, #tpu.memory_space<vmem>>, vector<8x1x8xf32>
    %112 = vector.shape_cast %111 : vector<8x1x8xf32> to vector<8x8xf32>
    %113 = arith.truncf %112 : vector<8x8xf32> to vector<8x8xbf16>
    %c0_68 = arith.constant 0 : index
    %c4_69 = arith.constant 4 : index
    %c0_70 = arith.constant 0 : index
    %114 = vector.load %arg3[%c0_68, %c4_69, %c0_70] : memref<8x8x8xf32, #tpu.memory_space<vmem>>, vector<8x1x8xf32>
    %115 = vector.shape_cast %114 : vector<8x1x8xf32> to vector<8x8xf32>
    %116 = arith.truncf %115 : vector<8x8xf32> to vector<8x8xbf16>
    %cst_71 = arith.constant dense<0.000000e+00> : vector<8x8xf32>
    %117 = tpu.matmul %110, %113, %cst_71 {dimension_numbers = #tpu.dot_dimension_numbers<[1], [1], [0], [0], [0, 0, 1, 0], [], []>} : vector<8x8xbf16>, vector<8x8xbf16>, vector<8x8xf32> -> vector<8x8xf32>
    %cst_72 = arith.constant 0.353553385 : f32
    %118 = vector.broadcast %cst_72 : f32 to vector<8x8xf32>
    %119 = arith.mulf %117, %118 : vector<8x8xf32>
    %cst_73 = arith.constant dense<0xFF800000> : vector<8xf32>
    %120 = vector.multi_reduction <maximumf>, %119, %cst_73 [1] : vector<8x8xf32> to vector<8xf32>
    %121 = vector.shape_cast %120 : vector<8xf32> to vector<8x1xf32>
    %122 = vector.broadcast %121 : vector<8x1xf32> to vector<8x8xf32>
    %123 = arith.subf %119, %122 : vector<8x8xf32>
    %124 = math.exp %123 : vector<8x8xf32>
    %cst_74 = arith.constant dense<0.000000e+00> : vector<8xf32>
    %125 = vector.multi_reduction <add>, %124, %cst_74 [1] : vector<8x8xf32> to vector<8xf32>
    %126 = vector.shape_cast %125 : vector<8xf32> to vector<8x1xf32>
    %127 = tpu.reciprocal %126 {approx = true} : vector<8x1xf32> -> vector<8x1xf32>
    %128 = vector.broadcast %127 : vector<8x1xf32> to vector<8x8xf32>
    %129 = arith.mulf %124, %128 : vector<8x8xf32>
    %130 = arith.truncf %129 : vector<8x8xf32> to vector<8x8xbf16>
    %cst_75 = arith.constant dense<0.000000e+00> : vector<8x8xf32>
    %131 = tpu.matmul %130, %116, %cst_75 {dimension_numbers = #tpu.dot_dimension_numbers<[1], [0], [0], [1], [0, 0, 1, 1], [], []>} : vector<8x8xbf16>, vector<8x8xbf16>, vector<8x8xf32> -> vector<8x8xf32>
    %c0_76 = arith.constant 0 : index
    %c4_77 = arith.constant 4 : index
    %c0_78 = arith.constant 0 : index
    %132 = vector.load %arg4[%c0_76, %c4_77, %c0_78] : memref<8x8x8xf32, #tpu.memory_space<vmem>>, vector<8x1x8xf32>
    %133 = vector.shape_cast %132 : vector<8x1x8xf32> to vector<8x8xf32>
    %134 = vector.shape_cast %131 : vector<8x8xf32> to vector<8x1x8xf32>
    tpu.vector_store %arg4[%c0_76, %c4_77, %c0_78], %134 {strides = array<i32>} : memref<8x8x8xf32, #tpu.memory_space<vmem>>, vector<8x1x8xf32>,
    %c0_79 = arith.constant 0 : index
    %c5 = arith.constant 5 : index
    %c0_80 = arith.constant 0 : index
    %135 = vector.load %arg1[%c0_79, %c5, %c0_80] : memref<8x8x8xf32, #tpu.memory_space<vmem>>, vector<8x1x8xf32>
    %136 = vector.shape_cast %135 : vector<8x1x8xf32> to vector<8x8xf32>
    %137 = arith.truncf %136 : vector<8x8xf32> to vector<8x8xbf16>
    %c0_81 = arith.constant 0 : index
    %c5_82 = arith.constant 5 : index
    %c0_83 = arith.constant 0 : index
    %138 = vector.load %arg2[%c0_81, %c5_82, %c0_83] : memref<8x8x8xf32, #tpu.memory_space<vmem>>, vector<8x1x8xf32>
    %139 = vector.shape_cast %138 : vector<8x1x8xf32> to vector<8x8xf32>
    %140 = arith.truncf %139 : vector<8x8xf32> to vector<8x8xbf16>
    %c0_84 = arith.constant 0 : index
    %c5_85 = arith.constant 5 : index
    %c0_86 = arith.constant 0 : index
    %141 = vector.load %arg3[%c0_84, %c5_85, %c0_86] : memref<8x8x8xf32, #tpu.memory_space<vmem>>, vector<8x1x8xf32>
    %142 = vector.shape_cast %141 : vector<8x1x8xf32> to vector<8x8xf32>
    %143 = arith.truncf %142 : vector<8x8xf32> to vector<8x8xbf16>
    %cst_87 = arith.constant dense<0.000000e+00> : vector<8x8xf32>
    %144 = tpu.matmul %137, %140, %cst_87 {dimension_numbers = #tpu.dot_dimension_numbers<[1], [1], [0], [0], [0, 0, 1, 0], [], []>} : vector<8x8xbf16>, vector<8x8xbf16>, vector<8x8xf32> -> vector<8x8xf32>
    %cst_88 = arith.constant 0.353553385 : f32
    %145 = vector.broadcast %cst_88 : f32 to vector<8x8xf32>
    %146 = arith.mulf %144, %145 : vector<8x8xf32>
    %cst_89 = arith.constant dense<0xFF800000> : vector<8xf32>
    %147 = vector.multi_reduction <maximumf>, %146, %cst_89 [1] : vector<8x8xf32> to vector<8xf32>
    %148 = vector.shape_cast %147 : vector<8xf32> to vector<8x1xf32>
    %149 = vector.broadcast %148 : vector<8x1xf32> to vector<8x8xf32>
    %150 = arith.subf %146, %149 : vector<8x8xf32>
    %151 = math.exp %150 : vector<8x8xf32>
    %cst_90 = arith.constant dense<0.000000e+00> : vector<8xf32>
    %152 = vector.multi_reduction <add>, %151, %cst_90 [1] : vector<8x8xf32> to vector<8xf32>
    %153 = vector.shape_cast %152 : vector<8xf32> to vector<8x1xf32>
    %154 = tpu.reciprocal %153 {approx = true} : vector<8x1xf32> -> vector<8x1xf32>
    %155 = vector.broadcast %154 : vector<8x1xf32> to vector<8x8xf32>
    %156 = arith.mulf %151, %155 : vector<8x8xf32>
    %157 = arith.truncf %156 : vector<8x8xf32> to vector<8x8xbf16>
    %cst_91 = arith.constant dense<0.000000e+00> : vector<8x8xf32>
    %158 = tpu.matmul %157, %143, %cst_91 {dimension_numbers = #tpu.dot_dimension_numbers<[1], [0], [0], [1], [0, 0, 1, 1], [], []>} : vector<8x8xbf16>, vector<8x8xbf16>, vector<8x8xf32> -> vector<8x8xf32>
    %c0_92 = arith.constant 0 : index
    %c5_93 = arith.constant 5 : index
    %c0_94 = arith.constant 0 : index
    %159 = vector.load %arg4[%c0_92, %c5_93, %c0_94] : memref<8x8x8xf32, #tpu.memory_space<vmem>>, vector<8x1x8xf32>
    %160 = vector.shape_cast %159 : vector<8x1x8xf32> to vector<8x8xf32>
    %161 = vector.shape_cast %158 : vector<8x8xf32> to vector<8x1x8xf32>
    tpu.vector_store %arg4[%c0_92, %c5_93, %c0_94], %161 {strides = array<i32>} : memref<8x8x8xf32, #tpu.memory_space<vmem>>, vector<8x1x8xf32>,
    %c0_95 = arith.constant 0 : index
    %c6 = arith.constant 6 : index
    %c0_96 = arith.constant 0 : index
    %162 = vector.load %arg1[%c0_95, %c6, %c0_96] : memref<8x8x8xf32, #tpu.memory_space<vmem>>, vector<8x1x8xf32>
    %163 = vector.shape_cast %162 : vector<8x1x8xf32> to vector<8x8xf32>
    %164 = arith.truncf %163 : vector<8x8xf32> to vector<8x8xbf16>
    %c0_97 = arith.constant 0 : index
    %c6_98 = arith.constant 6 : index
    %c0_99 = arith.constant 0 : index
    %165 = vector.load %arg2[%c0_97, %c6_98, %c0_99] : memref<8x8x8xf32, #tpu.memory_space<vmem>>, vector<8x1x8xf32>
    %166 = vector.shape_cast %165 : vector<8x1x8xf32> to vector<8x8xf32>
    %167 = arith.truncf %166 : vector<8x8xf32> to vector<8x8xbf16>
    %c0_100 = arith.constant 0 : index
    %c6_101 = arith.constant 6 : index
    %c0_102 = arith.constant 0 : index
    %168 = vector.load %arg3[%c0_100, %c6_101, %c0_102] : memref<8x8x8xf32, #tpu.memory_space<vmem>>, vector<8x1x8xf32>
    %169 = vector.shape_cast %168 : vector<8x1x8xf32> to vector<8x8xf32>
    %170 = arith.truncf %169 : vector<8x8xf32> to vector<8x8xbf16>
    %cst_103 = arith.constant dense<0.000000e+00> : vector<8x8xf32>
    %171 = tpu.matmul %164, %167, %cst_103 {dimension_numbers = #tpu.dot_dimension_numbers<[1], [1], [0], [0], [0, 0, 1, 0], [], []>} : vector<8x8xbf16>, vector<8x8xbf16>, vector<8x8xf32> -> vector<8x8xf32>
    %cst_104 = arith.constant 0.353553385 : f32
    %172 = vector.broadcast %cst_104 : f32 to vector<8x8xf32>
    %173 = arith.mulf %171, %172 : vector<8x8xf32>
    %cst_105 = arith.constant dense<0xFF800000> : vector<8xf32>
    %174 = vector.multi_reduction <maximumf>, %173, %cst_105 [1] : vector<8x8xf32> to vector<8xf32>
    %175 = vector.shape_cast %174 : vector<8xf32> to vector<8x1xf32>
    %176 = vector.broadcast %175 : vector<8x1xf32> to vector<8x8xf32>
    %177 = arith.subf %173, %176 : vector<8x8xf32>
    %178 = math.exp %177 : vector<8x8xf32>
    %cst_106 = arith.constant dense<0.000000e+00> : vector<8xf32>
    %179 = vector.multi_reduction <add>, %178, %cst_106 [1] : vector<8x8xf32> to vector<8xf32>
    %180 = vector.shape_cast %179 : vector<8xf32> to vector<8x1xf32>
    %181 = tpu.reciprocal %180 {approx = true} : vector<8x1xf32> -> vector<8x1xf32>
    %182 = vector.broadcast %181 : vector<8x1xf32> to vector<8x8xf32>
    %183 = arith.mulf %178, %182 : vector<8x8xf32>
    %184 = arith.truncf %183 : vector<8x8xf32> to vector<8x8xbf16>
    %cst_107 = arith.constant dense<0.000000e+00> : vector<8x8xf32>
    %185 = tpu.matmul %184, %170, %cst_107 {dimension_numbers = #tpu.dot_dimension_numbers<[1], [0], [0], [1], [0, 0, 1, 1], [], []>} : vector<8x8xbf16>, vector<8x8xbf16>, vector<8x8xf32> -> vector<8x8xf32>
    %c0_108 = arith.constant 0 : index
    %c6_109 = arith.constant 6 : index
    %c0_110 = arith.constant 0 : index
    %186 = vector.load %arg4[%c0_108, %c6_109, %c0_110] : memref<8x8x8xf32, #tpu.memory_space<vmem>>, vector<8x1x8xf32>
    %187 = vector.shape_cast %186 : vector<8x1x8xf32> to vector<8x8xf32>
    %188 = vector.shape_cast %185 : vector<8x8xf32> to vector<8x1x8xf32>
    tpu.vector_store %arg4[%c0_108, %c6_109, %c0_110], %188 {strides = array<i32>} : memref<8x8x8xf32, #tpu.memory_space<vmem>>, vector<8x1x8xf32>,
    %c0_111 = arith.constant 0 : index
    %c7 = arith.constant 7 : index
    %c0_112 = arith.constant 0 : index
    %189 = vector.load %arg1[%c0_111, %c7, %c0_112] : memref<8x8x8xf32, #tpu.memory_space<vmem>>, vector<8x1x8xf32>
    %190 = vector.shape_cast %189 : vector<8x1x8xf32> to vector<8x8xf32>
    %191 = arith.truncf %190 : vector<8x8xf32> to vector<8x8xbf16>
    %c0_113 = arith.constant 0 : index
    %c7_114 = arith.constant 7 : index
    %c0_115 = arith.constant 0 : index
    %192 = vector.load %arg2[%c0_113, %c7_114, %c0_115] : memref<8x8x8xf32, #tpu.memory_space<vmem>>, vector<8x1x8xf32>
    %193 = vector.shape_cast %192 : vector<8x1x8xf32> to vector<8x8xf32>
    %194 = arith.truncf %193 : vector<8x8xf32> to vector<8x8xbf16>
    %c0_116 = arith.constant 0 : index
    %c7_117 = arith.constant 7 : index
    %c0_118 = arith.constant 0 : index
    %195 = vector.load %arg3[%c0_116, %c7_117, %c0_118] : memref<8x8x8xf32, #tpu.memory_space<vmem>>, vector<8x1x8xf32>
    %196 = vector.shape_cast %195 : vector<8x1x8xf32> to vector<8x8xf32>
    %197 = arith.truncf %196 : vector<8x8xf32> to vector<8x8xbf16>
    %cst_119 = arith.constant dense<0.000000e+00> : vector<8x8xf32>
    %198 = tpu.matmul %191, %194, %cst_119 {dimension_numbers = #tpu.dot_dimension_numbers<[1], [1], [0], [0], [0, 0, 1, 0], [], []>} : vector<8x8xbf16>, vector<8x8xbf16>, vector<8x8xf32> -> vector<8x8xf32>
    %cst_120 = arith.constant 0.353553385 : f32
    %199 = vector.broadcast %cst_120 : f32 to vector<8x8xf32>
    %200 = arith.mulf %198, %199 : vector<8x8xf32>
    %cst_121 = arith.constant dense<0xFF800000> : vector<8xf32>
    %201 = vector.multi_reduction <maximumf>, %200, %cst_121 [1] : vector<8x8xf32> to vector<8xf32>
    %202 = vector.shape_cast %201 : vector<8xf32> to vector<8x1xf32>
    %203 = vector.broadcast %202 : vector<8x1xf32> to vector<8x8xf32>
    %204 = arith.subf %200, %203 : vector<8x8xf32>
    %205 = math.exp %204 : vector<8x8xf32>
    %cst_122 = arith.constant dense<0.000000e+00> : vector<8xf32>
    %206 = vector.multi_reduction <add>, %205, %cst_122 [1] : vector<8x8xf32> to vector<8xf32>
    %207 = vector.shape_cast %206 : vector<8xf32> to vector<8x1xf32>
    %208 = tpu.reciprocal %207 {approx = true} : vector<8x1xf32> -> vector<8x1xf32>
    %209 = vector.broadcast %208 : vector<8x1xf32> to vector<8x8xf32>
    %210 = arith.mulf %205, %209 : vector<8x8xf32>
    %211 = arith.truncf %210 : vector<8x8xf32> to vector<8x8xbf16>
    %cst_123 = arith.constant dense<0.000000e+00> : vector<8x8xf32>
    %212 = tpu.matmul %211, %197, %cst_123 {dimension_numbers = #tpu.dot_dimension_numbers<[1], [0], [0], [1], [0, 0, 1, 1], [], []>} : vector<8x8xbf16>, vector<8x8xbf16>, vector<8x8xf32> -> vector<8x8xf32>
    %c0_124 = arith.constant 0 : index
    %c7_125 = arith.constant 7 : index
    %c0_126 = arith.constant 0 : index
    %213 = vector.load %arg4[%c0_124, %c7_125, %c0_126] : memref<8x8x8xf32, #tpu.memory_space<vmem>>, vector<8x1x8xf32>
    %214 = vector.shape_cast %213 : vector<8x1x8xf32> to vector<8x8xf32>
    %215 = vector.shape_cast %212 : vector<8x8xf32> to vector<8x1x8xf32>
    tpu.vector_store %arg4[%c0_124, %c7_125, %c0_126], %215 {strides = array<i32>} : memref<8x8x8xf32, #tpu.memory_space<vmem>>, vector<8x1x8xf32>,
    return
  }
  func.func @transform_0(%arg0: i32) -> (i32, i32, i32) {
    %c0_i32 = arith.constant 0 : i32
    %c0_i32_0 = arith.constant 0 : i32
    %c0_i32_1 = arith.constant 0 : i32
    return %c0_i32, %arg0, %c0_i32_0 : i32, i32, i32
  }
  func.func @transform_1(%arg0: i32) -> (i32, i32, i32) {
    %c0_i32 = arith.constant 0 : i32
    %c0_i32_0 = arith.constant 0 : i32
    %c0_i32_1 = arith.constant 0 : i32
    return %c0_i32, %arg0, %c0_i32_0 : i32, i32, i32
  }
  func.func @transform_2(%arg0: i32) -> (i32, i32, i32) {
    %c0_i32 = arith.constant 0 : i32
    %c0_i32_0 = arith.constant 0 : i32
    %c0_i32_1 = arith.constant 0 : i32
    return %c0_i32, %arg0, %c0_i32_0 : i32, i32, i32
  }
  func.func @transform_3(%arg0: i32) -> (i32, i32, i32) {
    %c0_i32 = arith.constant 0 : i32
    %c0_i32_0 = arith.constant 0 : i32
    %c0_i32_1 = arith.constant 0 : i32
    return %c0_i32, %arg0, %c0_i32_0 : i32, i32, i32
  }
}

module attributes {stable_mosaic.version = 11 : i64} {
  func.func @_ln_kernel(%arg0: i32, %arg1: memref<16x32xf32, #tpu.memory_space<vmem>>, %arg2: memref<1x32xf32, #tpu.memory_space<vmem>>, %arg3: memref<1x32xf32, #tpu.memory_space<vmem>>, %arg4: memref<16x32xf32, #tpu.memory_space<vmem>>) attributes {dimension_semantics = [#tpu.dimension_semantics<parallel>], iteration_bounds = array<i64: 1>, scalar_prefetch = 0 : i64, scratch_operands = 0 : i64, tpu.core_type = #tpu.core_type<tc>, window_params = [{transform_indices = @transform_0, window_bounds = array<i64: 16, 32>}, {pipeline_mode = #tpu.pipeline_mode<synchronous>, transform_indices = @transform_1, window_bounds = array<i64: 1, 32>}, {pipeline_mode = #tpu.pipeline_mode<synchronous>, transform_indices = @transform_2, window_bounds = array<i64: 1, 32>}, {transform_indices = @transform_3, window_bounds = array<i64: 16, 32>}]} {
    %c0 = arith.constant 0 : index
    %c0_0 = arith.constant 0 : index
    %0 = vector.load %arg1[%c0, %c0_0] : memref<16x32xf32, #tpu.memory_space<vmem>>, vector<16x32xf32>
    %cst = arith.constant dense<0.000000e+00> : vector<16xf32>
    %1 = vector.multi_reduction <add>, %0, %cst [1] : vector<16x32xf32> to vector<16xf32>
    %2 = vector.shape_cast %1 : vector<16xf32> to vector<16x1xf32>
    %cst_1 = arith.constant 3.200000e+01 : f32
    %3 = vector.broadcast %cst_1 : f32 to vector<16x1xf32>
    %4 = arith.divf %2, %3 : vector<16x1xf32>
    %5 = vector.broadcast %4 : vector<16x1xf32> to vector<16x32xf32>
    %6 = arith.subf %0, %5 : vector<16x32xf32>
    %7 = arith.mulf %6, %6 : vector<16x32xf32>
    %cst_2 = arith.constant dense<0.000000e+00> : vector<16xf32>
    %8 = vector.multi_reduction <add>, %7, %cst_2 [1] : vector<16x32xf32> to vector<16xf32>
    %9 = vector.shape_cast %8 : vector<16xf32> to vector<16x1xf32>
    %cst_3 = arith.constant 3.200000e+01 : f32
    %10 = vector.broadcast %cst_3 : f32 to vector<16x1xf32>
    %11 = arith.divf %9, %10 : vector<16x1xf32>
    %12 = vector.broadcast %4 : vector<16x1xf32> to vector<16x32xf32>
    %13 = arith.subf %0, %12 : vector<16x32xf32>
    %cst_4 = arith.constant 9.99999974E-6 : f32
    %14 = vector.broadcast %cst_4 : f32 to vector<16x1xf32>
    %15 = arith.addf %11, %14 : vector<16x1xf32>
    %16 = math.rsqrt %15 : vector<16x1xf32>
    %17 = vector.broadcast %16 : vector<16x1xf32> to vector<16x32xf32>
    %18 = arith.mulf %13, %17 : vector<16x32xf32>
    %c0_5 = arith.constant 0 : index
    %c0_6 = arith.constant 0 : index
    %19 = vector.load %arg2[%c0_5, %c0_6] : memref<1x32xf32, #tpu.memory_space<vmem>>, vector<1x32xf32>
    %20 = vector.broadcast %19 : vector<1x32xf32> to vector<16x32xf32>
    %21 = arith.mulf %18, %20 : vector<16x32xf32>
    %c0_7 = arith.constant 0 : index
    %c0_8 = arith.constant 0 : index
    %22 = vector.load %arg3[%c0_7, %c0_8] : memref<1x32xf32, #tpu.memory_space<vmem>>, vector<1x32xf32>
    %23 = vector.broadcast %22 : vector<1x32xf32> to vector<16x32xf32>
    %24 = arith.addf %21, %23 : vector<16x32xf32>
    %c0_9 = arith.constant 0 : index
    %c0_10 = arith.constant 0 : index
    %25 = vector.load %arg4[%c0_9, %c0_10] : memref<16x32xf32, #tpu.memory_space<vmem>>, vector<16x32xf32>
    tpu.vector_store %arg4[%c0_9, %c0_10], %24 {strides = array<i32>} : memref<16x32xf32, #tpu.memory_space<vmem>>, vector<16x32xf32>,
    return
  }
  func.func @transform_0(%arg0: i32) -> (i32, i32) {
    %c0_i32 = arith.constant 0 : i32
    %c0_i32_0 = arith.constant 0 : i32
    return %arg0, %c0_i32 : i32, i32
  }
  func.func @transform_1(%arg0: i32) -> (i32, i32) {
    %c0_i32 = arith.constant 0 : i32
    %c0_i32_0 = arith.constant 0 : i32
    %c0_i32_1 = arith.constant 0 : i32
    return %c0_i32, %c0_i32_0 : i32, i32
  }
  func.func @transform_2(%arg0: i32) -> (i32, i32) {
    %c0_i32 = arith.constant 0 : i32
    %c0_i32_0 = arith.constant 0 : i32
    %c0_i32_1 = arith.constant 0 : i32
    return %c0_i32, %c0_i32_0 : i32, i32
  }
  func.func @transform_3(%arg0: i32) -> (i32, i32) {
    %c0_i32 = arith.constant 0 : i32
    %c0_i32_0 = arith.constant 0 : i32
    return %arg0, %c0_i32 : i32, i32
  }
}

module attributes {stable_mosaic.version = 11 : i64} {
  func.func @_ffn_kernel(%arg0: i32, %arg1: memref<16x32xf32, #tpu.memory_space<vmem>>, %arg2: memref<32x2048xbf16, #tpu.memory_space<vmem>>, %arg3: memref<1x2048xf32, #tpu.memory_space<vmem>>, %arg4: memref<2048x32xbf16, #tpu.memory_space<vmem>>, %arg5: memref<1x32xf32, #tpu.memory_space<vmem>>, %arg6: memref<16x32xf32, #tpu.memory_space<vmem>>) attributes {dimension_semantics = [#tpu.dimension_semantics<parallel>], iteration_bounds = array<i64: 1>, scalar_prefetch = 0 : i64, scratch_operands = 0 : i64, tpu.core_type = #tpu.core_type<tc>, window_params = [{transform_indices = @transform_0, window_bounds = array<i64: 16, 32>}, {pipeline_mode = #tpu.pipeline_mode<synchronous>, transform_indices = @transform_1, window_bounds = array<i64: 32, 2048>}, {pipeline_mode = #tpu.pipeline_mode<synchronous>, transform_indices = @transform_2, window_bounds = array<i64: 1, 2048>}, {pipeline_mode = #tpu.pipeline_mode<synchronous>, transform_indices = @transform_3, window_bounds = array<i64: 2048, 32>}, {pipeline_mode = #tpu.pipeline_mode<synchronous>, transform_indices = @transform_4, window_bounds = array<i64: 1, 32>}, {transform_indices = @transform_5, window_bounds = array<i64: 16, 32>}]} {
    %c0 = arith.constant 0 : index
    %c0_0 = arith.constant 0 : index
    %0 = vector.load %arg1[%c0, %c0_0] : memref<16x32xf32, #tpu.memory_space<vmem>>, vector<16x32xf32>
    %1 = arith.truncf %0 : vector<16x32xf32> to vector<16x32xbf16>
    %c0_1 = arith.constant 0 : index
    %c0_2 = arith.constant 0 : index
    %2 = vector.load %arg2[%c0_1, %c0_2] : memref<32x2048xbf16, #tpu.memory_space<vmem>>, vector<32x2048xbf16>
    %cst = arith.constant dense<0.000000e+00> : vector<16x2048xf32>
    %3 = tpu.matmul %1, %2, %cst {dimension_numbers = #tpu.dot_dimension_numbers<[1], [0], [0], [1], [0, 0, 1, 1], [], []>} : vector<16x32xbf16>, vector<32x2048xbf16>, vector<16x2048xf32> -> vector<16x2048xf32>
    %c0_3 = arith.constant 0 : index
    %c0_4 = arith.constant 0 : index
    %4 = vector.load %arg3[%c0_3, %c0_4] : memref<1x2048xf32, #tpu.memory_space<vmem>>, vector<1x2048xf32>
    %5 = vector.broadcast %4 : vector<1x2048xf32> to vector<16x2048xf32>
    %6 = arith.addf %3, %5 : vector<16x2048xf32>
    %cst_5 = arith.constant 0.000000e+00 : f32
    %7 = vector.broadcast %cst_5 : f32 to vector<16x2048xf32>
    %8 = arith.maximumf %6, %7 : vector<16x2048xf32>
    %9 = arith.truncf %8 : vector<16x2048xf32> to vector<16x2048xbf16>
    %c0_6 = arith.constant 0 : index
    %c0_7 = arith.constant 0 : index
    %10 = vector.load %arg4[%c0_6, %c0_7] : memref<2048x32xbf16, #tpu.memory_space<vmem>>, vector<2048x32xbf16>
    %cst_8 = arith.constant dense<0.000000e+00> : vector<16x32xf32>
    %11 = tpu.matmul %9, %10, %cst_8 {dimension_numbers = #tpu.dot_dimension_numbers<[1], [0], [0], [1], [0, 0, 1, 1], [], []>} : vector<16x2048xbf16>, vector<2048x32xbf16>, vector<16x32xf32> -> vector<16x32xf32>
    %c0_9 = arith.constant 0 : index
    %c0_10 = arith.constant 0 : index
    %12 = vector.load %arg5[%c0_9, %c0_10] : memref<1x32xf32, #tpu.memory_space<vmem>>, vector<1x32xf32>
    %13 = vector.broadcast %12 : vector<1x32xf32> to vector<16x32xf32>
    %14 = arith.addf %11, %13 : vector<16x32xf32>
    %c0_11 = arith.constant 0 : index
    %c0_12 = arith.constant 0 : index
    %15 = vector.load %arg6[%c0_11, %c0_12] : memref<16x32xf32, #tpu.memory_space<vmem>>, vector<16x32xf32>
    tpu.vector_store %arg6[%c0_11, %c0_12], %14 {strides = array<i32>} : memref<16x32xf32, #tpu.memory_space<vmem>>, vector<16x32xf32>,
    return
  }
  func.func @transform_0(%arg0: i32) -> (i32, i32) {
    %c0_i32 = arith.constant 0 : i32
    %c0_i32_0 = arith.constant 0 : i32
    return %arg0, %c0_i32 : i32, i32
  }
  func.func @transform_1(%arg0: i32) -> (i32, i32) {
    %c0_i32 = arith.constant 0 : i32
    %c0_i32_0 = arith.constant 0 : i32
    %c0_i32_1 = arith.constant 0 : i32
    return %c0_i32, %c0_i32_0 : i32, i32
  }
  func.func @transform_2(%arg0: i32) -> (i32, i32) {
    %c0_i32 = arith.constant 0 : i32
    %c0_i32_0 = arith.constant 0 : i32
    %c0_i32_1 = arith.constant 0 : i32
    return %c0_i32, %c0_i32_0 : i32, i32
  }
  func.func @transform_3(%arg0: i32) -> (i32, i32) {
    %c0_i32 = arith.constant 0 : i32
    %c0_i32_0 = arith.constant 0 : i32
    %c0_i32_1 = arith.constant 0 : i32
    return %c0_i32, %c0_i32_0 : i32, i32
  }
  func.func @transform_4(%arg0: i32) -> (i32, i32) {
    %c0_i32 = arith.constant 0 : i32
    %c0_i32_0 = arith.constant 0 : i32
    %c0_i32_1 = arith.constant 0 : i32
    return %c0_i32, %c0_i32_0 : i32, i32
  }
  func.func @transform_5(%arg0: i32) -> (i32, i32) {
    %c0_i32 = arith.constant 0 : i32
    %c0_i32_0 = arith.constant 0 : i32
    return %arg0, %c0_i32 : i32, i32
  }
}

module attributes {stable_mosaic.version = 11 : i64} {
  func.func @_linear_kernel(%arg0: i32, %arg1: i32, %arg2: i32, %arg3: memref<16x32xf32, #tpu.memory_space<vmem>>, %arg4: memref<32x64xbf16, #tpu.memory_space<vmem>>, %arg5: memref<1x64xf32, #tpu.memory_space<vmem>>, %arg6: memref<16x64xf32, #tpu.memory_space<vmem>>, %arg7: memref<16x64xf32, #tpu.memory_space<vmem>>) attributes {dimension_semantics = [#tpu.dimension_semantics<parallel>, #tpu.dimension_semantics<parallel>, #tpu.dimension_semantics<arbitrary>], iteration_bounds = array<i64: 1, 1, 1>, scalar_prefetch = 0 : i64, scratch_operands = 1 : i64, tpu.core_type = #tpu.core_type<tc>, window_params = [{transform_indices = @transform_0, window_bounds = array<i64: 16, 32>}, {transform_indices = @transform_1, window_bounds = array<i64: 32, 64>}, {transform_indices = @transform_2, window_bounds = array<i64: 1, 64>}, {transform_indices = @transform_3, window_bounds = array<i64: 16, 64>}]} {
    %c0_i32 = arith.constant 0 : i32
    %0 = arith.cmpi eq, %arg2, %c0_i32 : i32
    %1 = arith.extui %0 : i1 to i32
    %c0_i32_0 = arith.constant 0 : i32
    %2 = arith.cmpi ne, %1, %c0_i32_0 : i32
    scf.if %2 {
      %cst_10 = arith.constant 0.000000e+00 : f32
      %13 = vector.broadcast %cst_10 : f32 to vector<16x64xf32>
      %c0_11 = arith.constant 0 : index
      %c0_12 = arith.constant 0 : index
      %14 = vector.load %arg7[%c0_11, %c0_12] : memref<16x64xf32, #tpu.memory_space<vmem>>, vector<16x64xf32>
      tpu.vector_store %arg7[%c0_11, %c0_12], %13 {strides = array<i32>} : memref<16x64xf32, #tpu.memory_space<vmem>>, vector<16x64xf32>,
    } else {
    }
    %c0 = arith.constant 0 : index
    %c0_1 = arith.constant 0 : index
    %3 = vector.load %arg7[%c0, %c0_1] : memref<16x64xf32, #tpu.memory_space<vmem>>, vector<16x64xf32>
    %c0_2 = arith.constant 0 : index
    %c0_3 = arith.constant 0 : index
    %4 = vector.load %arg3[%c0_2, %c0_3] : memref<16x32xf32, #tpu.memory_space<vmem>>, vector<16x32xf32>
    %5 = arith.truncf %4 : vector<16x32xf32> to vector<16x32xbf16>
    %c0_4 = arith.constant 0 : index
    %c0_5 = arith.constant 0 : index
    %6 = vector.load %arg4[%c0_4, %c0_5] : memref<32x64xbf16, #tpu.memory_space<vmem>>, vector<32x64xbf16>
    %cst = arith.constant dense<0.000000e+00> : vector<16x64xf32>
    %7 = tpu.matmul %5, %6, %cst {dimension_numbers = #tpu.dot_dimension_numbers<[1], [0], [0], [1], [0, 0, 1, 1], [], []>} : vector<16x32xbf16>, vector<32x64xbf16>, vector<16x64xf32> -> vector<16x64xf32>
    %8 = arith.addf %3, %7 : vector<16x64xf32>
    %c0_6 = arith.constant 0 : index
    %c0_7 = arith.constant 0 : index
    %9 = vector.load %arg7[%c0_6, %c0_7] : memref<16x64xf32, #tpu.memory_space<vmem>>, vector<16x64xf32>
    tpu.vector_store %arg7[%c0_6, %c0_7], %8 {strides = array<i32>} : memref<16x64xf32, #tpu.memory_space<vmem>>, vector<16x64xf32>,
    %c0_i32_8 = arith.constant 0 : i32
    %10 = arith.cmpi eq, %arg2, %c0_i32_8 : i32
    %11 = arith.extui %10 : i1 to i32
    %c0_i32_9 = arith.constant 0 : i32
    %12 = arith.cmpi ne, %11, %c0_i32_9 : i32
    scf.if %12 {
      %c0_10 = arith.constant 0 : index
      %c0_11 = arith.constant 0 : index
      %13 = vector.load %arg7[%c0_10, %c0_11] : memref<16x64xf32, #tpu.memory_space<vmem>>, vector<16x64xf32>
      %c0_12 = arith.constant 0 : index
      %c0_13 = arith.constant 0 : index
      %14 = vector.load %arg5[%c0_12, %c0_13] : memref<1x64xf32, #tpu.memory_space<vmem>>, vector<1x64xf32>
      %15 = vector.broadcast %14 : vector<1x64xf32> to vector<16x64xf32>
      %16 = arith.addf %13, %15 : vector<16x64xf32>
      %c0_14 = arith.constant 0 : index
      %c0_15 = arith.constant 0 : index
      %17 = vector.load %arg6[%c0_14, %c0_15] : memref<16x64xf32, #tpu.memory_space<vmem>>, vector<16x64xf32>
      tpu.vector_store %arg6[%c0_14, %c0_15], %16 {strides = array<i32>} : memref<16x64xf32, #tpu.memory_space<vmem>>, vector<16x64xf32>,
    } else {
    }
    return
  }
  func.func @transform_0(%arg0: i32, %arg1: i32, %arg2: i32) -> (i32, i32) {
    %c0_i32 = arith.constant 0 : i32
    return %arg0, %arg2 : i32, i32
  }
  func.func @transform_1(%arg0: i32, %arg1: i32, %arg2: i32) -> (i32, i32) {
    %c0_i32 = arith.constant 0 : i32
    return %arg2, %arg1 : i32, i32
  }
  func.func @transform_2(%arg0: i32, %arg1: i32, %arg2: i32) -> (i32, i32) {
    %c0_i32 = arith.constant 0 : i32
    %c0_i32_0 = arith.constant 0 : i32
    return %c0_i32, %arg1 : i32, i32
  }
  func.func @transform_3(%arg0: i32, %arg1: i32, %arg2: i32) -> (i32, i32) {
    %c0_i32 = arith.constant 0 : i32
    return %arg0, %arg1 : i32, i32
  }
}

module attributes {stable_mosaic.version = 11 : i64} {
  func.func @_linear_kernel(%arg0: i32, %arg1: i32, %arg2: i32, %arg3: memref<16x32xf32, #tpu.memory_space<vmem>>, %arg4: memref<32x64xbf16, #tpu.memory_space<vmem>>, %arg5: memref<1x64xf32, #tpu.memory_space<vmem>>, %arg6: memref<16x64xf32, #tpu.memory_space<vmem>>, %arg7: memref<16x64xf32, #tpu.memory_space<vmem>>) attributes {dimension_semantics = [#tpu.dimension_semantics<parallel>, #tpu.dimension_semantics<parallel>, #tpu.dimension_semantics<arbitrary>], iteration_bounds = array<i64: 1, 1, 1>, scalar_prefetch = 0 : i64, scratch_operands = 1 : i64, tpu.core_type = #tpu.core_type<tc>, window_params = [{transform_indices = @transform_0, window_bounds = array<i64: 16, 32>}, {transform_indices = @transform_1, window_bounds = array<i64: 32, 64>}, {transform_indices = @transform_2, window_bounds = array<i64: 1, 64>}, {transform_indices = @transform_3, window_bounds = array<i64: 16, 64>}]} {
    %c0_i32 = arith.constant 0 : i32
    %0 = arith.cmpi eq, %arg2, %c0_i32 : i32
    %1 = arith.extui %0 : i1 to i32
    %c0_i32_0 = arith.constant 0 : i32
    %2 = arith.cmpi ne, %1, %c0_i32_0 : i32
    scf.if %2 {
      %cst_10 = arith.constant 0.000000e+00 : f32
      %13 = vector.broadcast %cst_10 : f32 to vector<16x64xf32>
      %c0_11 = arith.constant 0 : index
      %c0_12 = arith.constant 0 : index
      %14 = vector.load %arg7[%c0_11, %c0_12] : memref<16x64xf32, #tpu.memory_space<vmem>>, vector<16x64xf32>
      tpu.vector_store %arg7[%c0_11, %c0_12], %13 {strides = array<i32>} : memref<16x64xf32, #tpu.memory_space<vmem>>, vector<16x64xf32>,
    } else {
    }
    %c0 = arith.constant 0 : index
    %c0_1 = arith.constant 0 : index
    %3 = vector.load %arg7[%c0, %c0_1] : memref<16x64xf32, #tpu.memory_space<vmem>>, vector<16x64xf32>
    %c0_2 = arith.constant 0 : index
    %c0_3 = arith.constant 0 : index
    %4 = vector.load %arg3[%c0_2, %c0_3] : memref<16x32xf32, #tpu.memory_space<vmem>>, vector<16x32xf32>
    %5 = arith.truncf %4 : vector<16x32xf32> to vector<16x32xbf16>
    %c0_4 = arith.constant 0 : index
    %c0_5 = arith.constant 0 : index
    %6 = vector.load %arg4[%c0_4, %c0_5] : memref<32x64xbf16, #tpu.memory_space<vmem>>, vector<32x64xbf16>
    %cst = arith.constant dense<0.000000e+00> : vector<16x64xf32>
    %7 = tpu.matmul %5, %6, %cst {dimension_numbers = #tpu.dot_dimension_numbers<[1], [0], [0], [1], [0, 0, 1, 1], [], []>} : vector<16x32xbf16>, vector<32x64xbf16>, vector<16x64xf32> -> vector<16x64xf32>
    %8 = arith.addf %3, %7 : vector<16x64xf32>
    %c0_6 = arith.constant 0 : index
    %c0_7 = arith.constant 0 : index
    %9 = vector.load %arg7[%c0_6, %c0_7] : memref<16x64xf32, #tpu.memory_space<vmem>>, vector<16x64xf32>
    tpu.vector_store %arg7[%c0_6, %c0_7], %8 {strides = array<i32>} : memref<16x64xf32, #tpu.memory_space<vmem>>, vector<16x64xf32>,
    %c0_i32_8 = arith.constant 0 : i32
    %10 = arith.cmpi eq, %arg2, %c0_i32_8 : i32
    %11 = arith.extui %10 : i1 to i32
    %c0_i32_9 = arith.constant 0 : i32
    %12 = arith.cmpi ne, %11, %c0_i32_9 : i32
    scf.if %12 {
      %c0_10 = arith.constant 0 : index
      %c0_11 = arith.constant 0 : index
      %13 = vector.load %arg7[%c0_10, %c0_11] : memref<16x64xf32, #tpu.memory_space<vmem>>, vector<16x64xf32>
      %c0_12 = arith.constant 0 : index
      %c0_13 = arith.constant 0 : index
      %14 = vector.load %arg5[%c0_12, %c0_13] : memref<1x64xf32, #tpu.memory_space<vmem>>, vector<1x64xf32>
      %15 = vector.broadcast %14 : vector<1x64xf32> to vector<16x64xf32>
      %16 = arith.addf %13, %15 : vector<16x64xf32>
      %c0_14 = arith.constant 0 : index
      %c0_15 = arith.constant 0 : index
      %17 = vector.load %arg6[%c0_14, %c0_15] : memref<16x64xf32, #tpu.memory_space<vmem>>, vector<16x64xf32>
      tpu.vector_store %arg6[%c0_14, %c0_15], %16 {strides = array<i32>} : memref<16x64xf32, #tpu.memory_space<vmem>>, vector<16x64xf32>,
    } else {
    }
    return
  }
  func.func @transform_0(%arg0: i32, %arg1: i32, %arg2: i32) -> (i32, i32) {
    %c0_i32 = arith.constant 0 : i32
    return %arg0, %arg2 : i32, i32
  }
  func.func @transform_1(%arg0: i32, %arg1: i32, %arg2: i32) -> (i32, i32) {
    %c0_i32 = arith.constant 0 : i32
    return %arg2, %arg1 : i32, i32
  }
  func.func @transform_2(%arg0: i32, %arg1: i32, %arg2: i32) -> (i32, i32) {
    %c0_i32 = arith.constant 0 : i32
    %c0_i32_0 = arith.constant 0 : i32
    return %c0_i32, %arg1 : i32, i32
  }
  func.func @transform_3(%arg0: i32, %arg1: i32, %arg2: i32) -> (i32, i32) {
    %c0_i32 = arith.constant 0 : i32
    return %arg0, %arg1 : i32, i32
  }
}

</mosaic_0001>

<bundles_post_ra>
// kernel: qa_transformer_forward.37
= control target key start
LH: loop header
LB: loop body
LE: loop exit
PB: predicated region body
PF: predicated region fallthrough
CT: control target
= control target key end

     0   :  { %vm19_vm0 = vcmask 785408   ;;  %v96_v1 = vmov 0.0   ;;  %vm43_vm1 = vcmask 261120   ;;  %s144_s1 = inlined_call_operand.vmem [shape: bf16[32,96], index: 1, kind: input, shape index: {}]   ;;  %s145_s0 = inlined_call_operand.vmem [shape: f32[16,32], index: 0, kind: input, shape index: {}]   ;;  %s146_s2 = inlined_call_operand.vmem [shape: f32[1,96], index: 2, kind: input, shape index: {}]   ;;  %s147_s3 = inlined_call_operand.vmem [shape: f32[16,96], index: 3, kind: output, shape index: {}]  }
   0x1   :  { %v93_v0 = vld [vmem:[%s144_s1 + $0x8] sm:$0xff]  ;;  %20 = vst.msk [vmem:[#allocation2] sm:$0xff] %vm19_vm0, %v96_v1  ;;  %v92_v2 = vld [vmem:[%s144_s1] sm:$0xff] }
   0x2   :  { %21 = vst.msk [vmem:[#allocation2 + $0x8] sm:$0xff] %vm19_vm0, %v96_v1  ;;  %53 = vmatpush.bf16.msra.mxu0 %v93_v0  ;;  %v24_v3 = vld [vmem:[%s145_s0] sm:$0xff]  ;;  %v25_v4 = vld [vmem:[%s145_s0 + $0x8] sm:$0xff] }
   0x3   :  { %v26_v5 = vpack.c.bf16 %v25_v4, %v24_v3  ;;  %v95_v10 = vld [vmem:[%s146_s2] ss:$0 sm:$0xff] }
   0x6   :  { %54 = vmatpush.bf16.msra.mxu0 %v92_v2 }
   0x8   :  { %v22_v6 = vld [vmem:[#allocation2] sm:$0xff] }
   0x9   :  { %91 = vmatmul.msk.bf16.vlgmr.msra.gmra.mxu0 %vm43_vm1, %v26_v5  ;;  %v23_v9 = vld [vmem:[#allocation2 + $0x8] sm:$0xff] }
  0x86   :  { %v56_v7 = vpop.f32.mrf.mxu0 }
  0x87   :  { %v61_v8 = vadd.f32 %v56_v7, %v22_v6 }
  0x89   :  { %64 = vst.msk [vmem:[#allocation2] sm:$0xff] %vm19_vm0, %v61_v8 }
  0x8e   :  { %v58_v11 = vpop.f32.mrf.mxu0 }
  0x8f   :  { %v62_v12 = vadd.f32 %v58_v11, %v23_v9 }
  0x90   :  { %v69_v13 = vld [vmem:[#allocation2] sm:$0xff] }
  0x91   :  { %v75_v14 = vadd.f32 %v95_v10, %v69_v13  ;;  %65 = vst.msk [vmem:[#allocation2 + $0x8] sm:$0xff] %vm19_vm0, %v62_v12 }
  0x93   :  { %77 = vst.msk [vmem:[%s147_s3] sm:$0xff] %vm19_vm0, %v75_v14 }
  0x98   :  { %v70_v15 = vld [vmem:[#allocation2 + $0x8] sm:$0xff] }
  0x99   :  { %v76_v16 = vadd.f32 %v95_v10, %v70_v15 }
  0x9b   :  { %78 = vst.msk [vmem:[%s147_s3 + $0x8] sm:$0xff] %vm19_vm0, %v76_v16 }

// kernel: qa_transformer_forward.40
= control target key start
LH: loop header
LB: loop body
LE: loop exit
PB: predicated region body
PF: predicated region fallthrough
CT: control target
= control target key end

     0   :  { %vm23_vm0 = vcmask 261120   ;;  %v102_v8 = vmov 32.0   ;;  %s158_s0 = inlined_call_operand.vmem [shape: f32[16,32], index: 0, kind: input, shape index: {}]   ;;  %s159_s1 = inlined_call_operand.vmem [shape: f32[16,32], index: 1, kind: input, shape index: {}]   ;;  %s160_s2 = inlined_call_operand.vmem [shape: f32[1,32], index: 2, kind: input, shape index: {}]   ;;  %s161_s3 = inlined_call_operand.vmem [shape: f32[1,32], index: 3, kind: input, shape index: {}]   ;;  %s162_s4 = inlined_call_operand.vmem [shape: f32[16,32], index: 4, kind: output, shape index: {}]  }
   0x1   :  { %v17_v0 = vld [vmem:[%s158_s0] sm:$0xff]  ;;  %v18_v3 = vld [vmem:[%s158_s0 + $0x8] sm:$0xff]  ;;  %96 = vrcp.f32 %v102_v8 }
   0x2   :  { %v19_v1 = vld [vmem:[%s159_s1] sm:$0xff]  ;;  %v20_v4 = vld [vmem:[%s159_s1 + $0x8] sm:$0xff] }
   0x3   :  { %v21_v2 = vadd.f32 %v19_v1, %v17_v0  ;;  %v22_v6 = vadd.f32 %v20_v4, %v18_v3  ;;  %v94_v39 = vld [vmem:[%s160_s2] ss:$0 sm:$0xff] }
   0x4   :  { %v95_v42 = vld [vmem:[%s161_s3] ss:$0 sm:$0xff] }
   0x5   :  { %v24_v5 = vsel %vm23_vm0, %v21_v2, 0.0  ;;  %v27_v7 = vsel %vm23_vm0, %v22_v6, 0.0 }
   0x6   :  { %25 = vadd.xlane.f32.xlu0 %v24_v5 }
   0x7   :  { %v97_v9 = vpop.eup %96 }
   0x8   :  { %v31_v10 = vmul.f32 32.0, %v97_v9  ;;  %vm35_vm1 = vweird.f32 %v97_v9 }
   0xa   :  { %v32_v11 = vsub.f32 1.0, %v31_v10 }
   0xc   :  { %v33_v12 = vmul.f32 %v97_v9, %v32_v11 }
   0xe   :  { %28 = vadd.xlane.f32.xlu0 %v27_v7  ;;  %v34_v13 = vadd.f32 %v97_v9, %v33_v12 }
  0x10   :  { %v36_v14 = vsel %vm35_vm1, %v97_v9, %v34_v13 }
  0x79   :  { %v26_v15 = vpop.xlane.xlu0 %25 }
  0x7a   :  { %v37_v16 = vmul.f32 %v36_v14, %v26_v15 }
  0x7c   :  { %v39_v17 = vsub.f32 %v21_v2, %v37_v16 }
  0x7e   :  { %v41_v18 = vmul.f32 %v39_v17, %v39_v17 }
  0x80   :  { %v43_v19 = vsel %vm23_vm0, %v41_v18, 0.0 }
  0x81   :  { %44 = vadd.xlane.f32.xlu1 %v43_v19  ;;  %v29_v20 = vpop.xlane.xlu0 %28 }
  0x82   :  { %v38_v21 = vmul.f32 %v36_v14, %v29_v20 }
  0x84   :  { %v40_v22 = vsub.f32 %v22_v6, %v38_v21 }
  0x86   :  { %v42_v23 = vmul.f32 %v40_v22, %v40_v22 }
  0x88   :  { %v46_v24 = vsel %vm23_vm0, %v42_v23, 0.0 }
  0x89   :  { %47 = vadd.xlane.f32.xlu1 %v46_v24 }
  0xf4   :  { %v45_v25 = vpop.xlane.xlu1 %44 }
  0xf5   :  { %v49_v26 = vmul.f32 %v45_v25, %v36_v14 }
  0xf7   :  { %v51_v27 = vadd.f32 1e-05, %v49_v26 }
  0xf9   :  { %98 = vrsqrt.f32 %v51_v27  ;;  %vm59_vm3 = vweird.f32 %v51_v27 }
  0xfc   :  { %v48_v28 = vpop.xlane.xlu1 %47 }
  0xfd   :  { %v50_v29 = vmul.f32 %v48_v28, %v36_v14 }
  0xff   :  { %v99_v30 = vpop.eup %98  ;;  %v52_v31 = vadd.f32 1e-05, %v50_v29 }
 0x100   :  { %v54_v32 = vmul.f32 %v99_v30, %v51_v27  ;;  %vm60_vm2 = vweird.f32 %v99_v30 }
 0x101   :  { %100 = vrsqrt.f32 %v52_v31  ;;  %vm61_vm4 = vmor %vm59_vm3, %vm60_vm2  ;;  %vm69_vm6 = vweird.f32 %v52_v31 }
 0x102   :  { %v55_v33 = vmul.f32 %v99_v30, %v54_v32 }
 0x104   :  { %v56_v34 = vmul.f32 0.5, %v55_v33 }
 0x106   :  { %v57_v35 = vsub.f32 1.5, %v56_v34 }
 0x107   :  { %v101_v36 = vpop.eup %100 }
 0x108   :  { %v58_v37 = vmul.f32 %v99_v30, %v57_v35  ;;  %v64_v38 = vmul.f32 %v101_v36, %v52_v31  ;;  %vm70_vm5 = vweird.f32 %v101_v36 }
 0x109   :  { %vm71_vm7 = vmor %vm69_vm6, %vm70_vm5 }
 0x10a   :  { %v62_v40 = vsel %vm61_vm4, %v99_v30, %v58_v37  ;;  %v65_v41 = vmul.f32 %v101_v36, %v64_v38 }
 0x10b   :  { %v73_v43 = vmul.f32 %v62_v40, %v39_v17 }
 0x10c   :  { %v66_v44 = vmul.f32 0.5, %v65_v41 }
 0x10d   :  { %v79_v45 = vmul.f32 %v94_v39, %v73_v43 }
 0x10e   :  { %v67_v46 = vsub.f32 1.5, %v66_v44 }
 0x10f   :  { %v85_v47 = vadd.f32 %v95_v42, %v79_v45 }
 0x110   :  { %v68_v48 = vmul.f32 %v101_v36, %v67_v46 }
 0x111   :  { %87 = vst.msk [vmem:[%s162_s4] sm:$0xff] %vm23_vm0, %v85_v47 }
 0x112   :  { %v72_v49 = vsel %vm71_vm7, %v101_v36, %v68_v48 }
 0x113   :  { %v74_v50 = vmul.f32 %v72_v49, %v40_v22 }
 0x115   :  { %v80_v51 = vmul.f32 %v94_v39, %v74_v50 }
 0x117   :  { %v86_v52 = vadd.f32 %v95_v42, %v80_v51 }
 0x119   :  { %88 = vst.msk [vmem:[%s162_s4 + $0x8] sm:$0xff] %vm23_vm0, %v86_v52 }

// kernel: qa_transformer_forward.39
= control target key start
LH: loop header
LB: loop body
LE: loop exit
PB: predicated region body
PF: predicated region fallthrough
CT: control target
= control target key end

     0   :  { %vm19_vm0 = vcmask 261120   ;;  %v95_v1 = vmov 0.0   ;;  %s144_s1 = inlined_call_operand.vmem [shape: bf16[32,32], index: 1, kind: input, shape index: {}]   ;;  %s145_s0 = inlined_call_operand.vmem [shape: f32[16,32], index: 0, kind: input, shape index: {}]   ;;  %s146_s2 = inlined_call_operand.vmem [shape: f32[1,32], index: 2, kind: input, shape index: {}]   ;;  %s147_s3 = inlined_call_operand.vmem [shape: f32[16,32], index: 3, kind: output, shape index: {}]  }
   0x1   :  { %v92_v0 = vld [vmem:[%s144_s1 + $0x8] sm:$0xff]  ;;  %20 = vst.msk [vmem:[#allocation2] sm:$0xff] %vm19_vm0, %v95_v1  ;;  %v91_v2 = vld [vmem:[%s144_s1] sm:$0xff] }
   0x2   :  { %21 = vst.msk [vmem:[#allocation2 + $0x8] sm:$0xff] %vm19_vm0, %v95_v1  ;;  %53 = vmatpush.bf16.msra.mxu0 %v92_v0  ;;  %v24_v3 = vld [vmem:[%s145_s0] sm:$0xff]  ;;  %v25_v4 = vld [vmem:[%s145_s0 + $0x8] sm:$0xff] }
   0x3   :  { %v26_v5 = vpack.c.bf16 %v25_v4, %v24_v3  ;;  %v94_v10 = vld [vmem:[%s146_s2] ss:$0 sm:$0xff] }
   0x6   :  { %54 = vmatpush.bf16.msra.mxu0 %v91_v2 }
   0x8   :  { %v22_v6 = vld [vmem:[#allocation2] sm:$0xff] }
   0x9   :  { %90 = vmatmul.msk.bf16.vlgmr.msra.gmra.mxu0 %vm19_vm0, %v26_v5  ;;  %v23_v9 = vld [vmem:[#allocation2 + $0x8] sm:$0xff] }
  0x86   :  { %v56_v7 = vpop.f32.mrf.mxu0 }
  0x87   :  { %v61_v8 = vadd.f32 %v56_v7, %v22_v6 }
  0x89   :  { %63 = vst.msk [vmem:[#allocation2] sm:$0xff] %vm19_vm0, %v61_v8 }
  0x8e   :  { %v58_v11 = vpop.f32.mrf.mxu0 }
  0x8f   :  { %v62_v12 = vadd.f32 %v58_v11, %v23_v9 }
  0x90   :  { %v68_v13 = vld [vmem:[#allocation2] sm:$0xff] }
  0x91   :  { %v74_v14 = vadd.f32 %v94_v10, %v68_v13  ;;  %64 = vst.msk [vmem:[#allocation2 + $0x8] sm:$0xff] %vm19_vm0, %v62_v12 }
  0x93   :  { %76 = vst.msk [vmem:[%s147_s3] sm:$0xff] %vm19_vm0, %v74_v14 }
  0x98   :  { %v69_v15 = vld [vmem:[#allocation2 + $0x8] sm:$0xff] }
  0x99   :  { %v75_v16 = vadd.f32 %v94_v10, %v69_v15 }
  0x9b   :  { %77 = vst.msk [vmem:[%s147_s3 + $0x8] sm:$0xff] %vm19_vm0, %v75_v16 }

// kernel: qa_transformer_forward.49
= control target key start
LH: loop header
LB: loop body
LE: loop exit
PB: predicated region body
PF: predicated region fallthrough
CT: control target
= control target key end

     0   :  { %vm16_vm0 = vcmask 261120   ;;  %v95_v4 = vmov 32.0   ;;  %s140_s0 = inlined_call_operand.vmem [shape: f32[16,32], index: 0, kind: input, shape index: {}]   ;;  %s141_s1 = inlined_call_operand.vmem [shape: f32[1,32], index: 1, kind: input, shape index: {}]   ;;  %s142_s2 = inlined_call_operand.vmem [shape: f32[1,32], index: 2, kind: input, shape index: {}]   ;;  %s143_s3 = inlined_call_operand.vmem [shape: f32[16,32], index: 3, kind: output, shape index: {}]  }
   0x1   :  { %v14_v0 = vld [vmem:[%s140_s0] sm:$0xff]  ;;  %v15_v2 = vld [vmem:[%s140_s0 + $0x8] sm:$0xff]  ;;  %89 = vrcp.f32 %v95_v4 }
   0x2   :  { %v17_v1 = vsel %vm16_vm0, %v14_v0, 0.0  ;;  %v20_v3 = vsel %vm16_vm0, %v15_v2, 0.0  ;;  %v87_v35 = vld [vmem:[%s141_s1] ss:$0 sm:$0xff] }
   0x3   :  { %18 = vadd.xlane.f32.xlu0 %v17_v1  ;;  %v88_v38 = vld [vmem:[%s142_s2] ss:$0 sm:$0xff] }
   0x7   :  { %v90_v5 = vpop.eup %89 }
   0x8   :  { %v24_v6 = vmul.f32 32.0, %v90_v5  ;;  %vm28_vm1 = vweird.f32 %v90_v5 }
   0xa   :  { %v25_v7 = vsub.f32 1.0, %v24_v6 }
   0xb   :  { %21 = vadd.xlane.f32.xlu0 %v20_v3 }
   0xc   :  { %v26_v8 = vmul.f32 %v90_v5, %v25_v7 }
   0xe   :  { %v27_v9 = vadd.f32 %v90_v5, %v26_v8 }
  0x10   :  { %v29_v10 = vsel %vm28_vm1, %v90_v5, %v27_v9 }
  0x76   :  { %v19_v11 = vpop.xlane.xlu0 %18 }
  0x77   :  { %v30_v12 = vmul.f32 %v29_v10, %v19_v11 }
  0x79   :  { %v32_v13 = vsub.f32 %v14_v0, %v30_v12 }
  0x7b   :  { %v34_v14 = vmul.f32 %v32_v13, %v32_v13 }
  0x7d   :  { %v36_v15 = vsel %vm16_vm0, %v34_v14, 0.0 }
  0x7e   :  { %37 = vadd.xlane.f32.xlu1 %v36_v15  ;;  %v22_v16 = vpop.xlane.xlu0 %21 }
  0x7f   :  { %v31_v17 = vmul.f32 %v29_v10, %v22_v16 }
  0x81   :  { %v33_v18 = vsub.f32 %v15_v2, %v31_v17 }
  0x83   :  { %v35_v19 = vmul.f32 %v33_v18, %v33_v18 }
  0x85   :  { %v39_v20 = vsel %vm16_vm0, %v35_v19, 0.0 }
  0x86   :  { %40 = vadd.xlane.f32.xlu1 %v39_v20 }
  0xf1   :  { %v38_v21 = vpop.xlane.xlu1 %37 }
  0xf2   :  { %v42_v22 = vmul.f32 %v38_v21, %v29_v10 }
  0xf4   :  { %v44_v23 = vadd.f32 1e-05, %v42_v22 }
  0xf6   :  { %91 = vrsqrt.f32 %v44_v23  ;;  %vm52_vm3 = vweird.f32 %v44_v23 }
  0xf9   :  { %v41_v24 = vpop.xlane.xlu1 %40 }
  0xfa   :  { %v43_v25 = vmul.f32 %v41_v24, %v29_v10 }
  0xfc   :  { %v92_v26 = vpop.eup %91  ;;  %v45_v27 = vadd.f32 1e-05, %v43_v25 }
  0xfd   :  { %v47_v28 = vmul.f32 %v92_v26, %v44_v23  ;;  %vm53_vm2 = vweird.f32 %v92_v26 }
  0xfe   :  { %93 = vrsqrt.f32 %v45_v27  ;;  %vm54_vm4 = vmor %vm52_vm3, %vm53_vm2  ;;  %vm62_vm6 = vweird.f32 %v45_v27 }
  0xff   :  { %v48_v29 = vmul.f32 %v92_v26, %v47_v28 }
 0x101   :  { %v49_v30 = vmul.f32 0.5, %v48_v29 }
 0x103   :  { %v50_v31 = vsub.f32 1.5, %v49_v30 }
 0x104   :  { %v94_v32 = vpop.eup %93 }
 0x105   :  { %v51_v33 = vmul.f32 %v92_v26, %v50_v31  ;;  %v57_v34 = vmul.f32 %v94_v32, %v45_v27  ;;  %vm63_vm5 = vweird.f32 %v94_v32 }
 0x106   :  { %vm64_vm7 = vmor %vm62_vm6, %vm63_vm5 }
 0x107   :  { %v55_v36 = vsel %vm54_vm4, %v92_v26, %v51_v33  ;;  %v58_v37 = vmul.f32 %v94_v32, %v57_v34 }
 0x108   :  { %v66_v39 = vmul.f32 %v55_v36, %v32_v13 }
 0x109   :  { %v59_v40 = vmul.f32 0.5, %v58_v37 }
 0x10a   :  { %v72_v41 = vmul.f32 %v87_v35, %v66_v39 }
 0x10b   :  { %v60_v42 = vsub.f32 1.5, %v59_v40 }
 0x10c   :  { %v78_v43 = vadd.f32 %v88_v38, %v72_v41 }
 0x10d   :  { %v61_v44 = vmul.f32 %v94_v32, %v60_v42 }
 0x10e   :  { %80 = vst.msk [vmem:[%s143_s3] sm:$0xff] %vm16_vm0, %v78_v43 }
 0x10f   :  { %v65_v45 = vsel %vm64_vm7, %v94_v32, %v61_v44 }
 0x110   :  { %v67_v46 = vmul.f32 %v65_v45, %v33_v18 }
 0x112   :  { %v73_v47 = vmul.f32 %v87_v35, %v67_v46 }
 0x114   :  { %v79_v48 = vadd.f32 %v88_v38, %v73_v47 }
 0x116   :  { %81 = vst.msk [vmem:[%s143_s3 + $0x8] sm:$0xff] %vm16_vm0, %v79_v48 }

// kernel: qa_transformer_forward.38
= control target key start
LH: loop header
LB: loop body
LE: loop exit
PB: predicated region body
PF: predicated region fallthrough
CT: control target
= control target key end

     0   :  { %vm80_vm0 = vcmask 1041409   ;;  %vm83_vm1 = vcmask 1042434   ;;  %vm86_vm2 = vcmask 1043459   ;;  %vm89_vm3 = vcmask 1044484   ;;  %s2952_s1 = inlined_call_operand.vmem [shape: f32[8,8,8], index: 1, kind: input, shape index: {}]   ;;  %s2953_s0 = inlined_call_operand.vmem [shape: f32[8,8,8], index: 0, kind: input, shape index: {}]   ;;  %s2954_s2 = inlined_call_operand.vmem [shape: f32[8,8,8], index: 2, kind: input, shape index: {}]   ;;  %s2955_s3 = inlined_call_operand.vmem [shape: f32[8,8,8], index: 3, kind: output, shape index: {}]  }
   0x1   :  { %v31_v0 = vld [vmem:[%s2952_s1] sm:$0x1]  ;;  %v32_v1 = vld [vmem:[%s2952_s1 + $0x8] sm:$0x1]  ;;  %v33_v2 = vld [vmem:[%s2952_s1 + $0x10] sm:$0x1] }
   0x2   :  { %v34_v3 = vld [vmem:[%s2952_s1 + $0x18] sm:$0x1]  ;;  %v35_v4 = vld [vmem:[%s2952_s1 + $0x20] sm:$0x1]  ;;  %v36_v5 = vld [vmem:[%s2952_s1 + $0x28] sm:$0x1]  ;;  %v39_v6 = vpack.c.bf16 %v31_v0, %v31_v0  ;;  %v40_v7 = vpack.c.bf16 %v32_v1, %v32_v1  ;;  %v41_v8 = vpack.c.bf16 %v33_v2, %v33_v2 }
   0x3   :  { %v37_v9 = vld [vmem:[%s2952_s1 + $0x30] sm:$0x1]  ;;  %v38_v10 = vld [vmem:[%s2952_s1 + $0x38] sm:$0x1]  ;;  %v42_v11 = vpack.c.bf16 %v34_v3, %v34_v3  ;;  %v43_v12 = vpack.c.bf16 %v35_v4, %v35_v4  ;;  %v44_v13 = vpack.c.bf16 %v36_v5, %v36_v5  ;;  %vm92_vm4 = vcmask 1045509  }
   0x4   :  { %v45_v14 = vpack.c.bf16 %v37_v9, %v37_v9  ;;  %v46_v15 = vpack.c.bf16 %v38_v10, %v38_v10  ;;  %vm95_vm5 = vcmask 1046534   ;;  %vm98_vm6 = vcmask 1047559   ;;  %v15_v20 = vld [vmem:[%s2953_s0] sm:$0x1]  ;;  %v16_v21 = vld [vmem:[%s2953_s0 + $0x8] sm:$0x1] }
   0x5   :  { %v109_v16 = vunpack.c.l.b16 %v39_v6  ;;  %v110_v17 = vunpack.c.l.b16 %v40_v7  ;;  %v111_v18 = vunpack.c.l.b16 %v41_v8  ;;  %v112_v19 = vunpack.c.l.b16 %v42_v11  ;;  %v17_v22 = vld [vmem:[%s2953_s0 + $0x10] sm:$0x1]  ;;  %v18_v27 = vld [vmem:[%s2953_s0 + $0x18] sm:$0x1]  ;;  %v19_v28 = vld [vmem:[%s2953_s0 + $0x20] sm:$0x1] }
   0x6   :  { %v113_v23 = vunpack.c.l.b16 %v43_v12  ;;  %v114_v24 = vunpack.c.l.b16 %v44_v13  ;;  %v115_v25 = vunpack.c.l.b16 %v45_v14  ;;  %v116_v26 = vunpack.c.l.b16 %v46_v15  ;;  %v20_v29 = vld [vmem:[%s2953_s0 + $0x28] sm:$0x1]  ;;  %v21_v33 = vld [vmem:[%s2953_s0 + $0x30] sm:$0x1]  ;;  %v22_v38 = vld [vmem:[%s2953_s0 + $0x38] sm:$0x1] }
   0x7   :  { %v117_v30 = vrot.slane %v110_v17, 7  ;;  %v119_v31 = vrot.slane %v111_v18, 6  ;;  %v121_v32 = vrot.slane %v112_v19, 5  ;;  %vm132_vm7 = vcmask 64512   ;;  %v256_v59 = vld [vmem:[%s2952_s1 + $0x1] sm:$0x1] }
   0x8   :  { %v123_v34 = vrot.slane %v113_v23, 4  ;;  %v125_v35 = vrot.slane %v114_v24, 3  ;;  %v127_v36 = vrot.slane %v115_v25, 2  ;;  %v129_v37 = vrot.slane %v116_v26, 1  ;;  %v257_v60 = vld [vmem:[%s2952_s1 + $0x9] sm:$0x1] }
   0x9   :  { %v118_v39 = vsel %vm80_vm0, %v117_v30, %v109_v16  ;;  %v23_v40 = vpack.c.bf16 %v15_v20, %v15_v20  ;;  %v24_v41 = vpack.c.bf16 %v16_v21, %v16_v21  ;;  %v25_v42 = vpack.c.bf16 %v17_v22, %v17_v22  ;;  %v258_v61 = vld [vmem:[%s2952_s1 + $0x11] sm:$0x1]  ;;  %v259_v2 = vld [vmem:[%s2952_s1 + $0x19] sm:$0x1]  ;;  %v260_v3 = vld [vmem:[%s2952_s1 + $0x21] sm:$0x1] }
   0xa   :  { %v120_v43 = vsel %vm83_vm1, %v119_v31, %v118_v39  ;;  %v26_v44 = vpack.c.bf16 %v18_v27, %v18_v27  ;;  %v27_v45 = vpack.c.bf16 %v19_v28, %v19_v28  ;;  %v28_v46 = vpack.c.bf16 %v20_v29, %v20_v29  ;;  %v261_v8 = vld [vmem:[%s2952_s1 + $0x29] sm:$0x1]  ;;  %v262_v13 = vld [vmem:[%s2952_s1 + $0x31] sm:$0x1]  ;;  %v263_v14 = vld [vmem:[%s2952_s1 + $0x39] sm:$0x1] }
   0xb   :  { %v122_v47 = vsel %vm86_vm2, %v121_v32, %v120_v43  ;;  %v29_v48 = vpack.c.bf16 %v21_v33, %v21_v33  ;;  %v30_v49 = vpack.c.bf16 %v22_v38, %v22_v38  ;;  %v71_v50 = vunpack.c.l.b16 %v23_v40 }
   0xc   :  { %v124_v51 = vsel %vm89_vm3, %v123_v34, %v122_v47  ;;  %v72_v52 = vunpack.c.l.b16 %v24_v41  ;;  %v73_v53 = vunpack.c.l.b16 %v25_v42  ;;  %v74_v54 = vunpack.c.l.b16 %v26_v44 }
   0xd   :  { %v126_v55 = vsel %vm92_vm4, %v125_v35, %v124_v51  ;;  %v75_v56 = vunpack.c.l.b16 %v27_v45  ;;  %v76_v57 = vunpack.c.l.b16 %v28_v46  ;;  %v77_v58 = vunpack.c.l.b16 %v29_v48 }
   0xe   :  { %v128_v62 = vsel %vm95_vm5, %v127_v36, %v126_v55  ;;  %v78_v63 = vunpack.c.l.b16 %v30_v49  ;;  %v79_v0 = vrot.slane %v72_v52, 7  ;;  %v82_v1 = vrot.slane %v73_v53, 6  ;;  %v241_v55 = vld [vmem:[%s2953_s0 + $0x9] sm:$0x1] }
   0xf   :  { %v130_v4 = vsel %vm98_vm6, %v129_v37, %v128_v62  ;;  %v85_v5 = vrot.slane %v74_v54, 5  ;;  %v88_v6 = vrot.slane %v75_v56, 4  ;;  %v91_v7 = vrot.slane %v76_v57, 3  ;;  %v242_v56 = vld [vmem:[%s2953_s0 + $0x11] sm:$0x1] }
  0x10   :  { %v131_v9 = vpack.c.b16 %v130_v4, %v130_v4  ;;  %v81_v10 = vsel %vm80_vm0, %v79_v0, %v71_v50  ;;  %v94_v11 = vrot.slane %v77_v58, 2  ;;  %v97_v12 = vrot.slane %v78_v63, 1  ;;  %v240_v58 = vld [vmem:[%s2953_s0 + $0x1] sm:$0x1]  ;;  %v246_v4 = vld [vmem:[%s2953_s0 + $0x31] sm:$0x1] }
  0x11   :  { %v84_v15 = vsel %vm83_vm1, %v82_v1, %v81_v10  ;;  %v264_v16 = vpack.c.bf16 %v256_v59, %v256_v59  ;;  %v265_v17 = vpack.c.bf16 %v257_v60, %v257_v60  ;;  %v266_v18 = vpack.c.bf16 %v258_v61, %v258_v61  ;;  %v243_v59 = vld [vmem:[%s2953_s0 + $0x19] sm:$0x1]  ;;  %v244_v61 = vld [vmem:[%s2953_s0 + $0x21] sm:$0x1]  ;;  %v245_v1 = vld [vmem:[%s2953_s0 + $0x29] sm:$0x1] }
  0x12   :  { %v137_v19 = vsel %vm132_vm7, %v131_v9, 0  ;;  %v87_v20 = vsel %vm86_vm2, %v85_v5, %v84_v15  ;;  %v267_v21 = vpack.c.bf16 %v259_v2, %v259_v2  ;;  %v268_v22 = vpack.c.bf16 %v260_v3, %v260_v3  ;;  %v247_v9 = vld [vmem:[%s2953_s0 + $0x39] sm:$0x1] }
  0x13   :  { %146 = vmatpush.bf16.xpose.msra.mxu0 %v137_v19  ;;  %v90_v23 = vsel %vm89_vm3, %v88_v6, %v87_v20  ;;  %v269_v24 = vpack.c.bf16 %v261_v8, %v261_v8  ;;  %v270_v25 = vpack.c.bf16 %v262_v13, %v262_v13  ;;  %v271_v26 = vpack.c.bf16 %v263_v14, %v263_v14 }
  0x14   :  { %v93_v27 = vsel %vm92_vm4, %v91_v7, %v90_v23  ;;  %v327_v28 = vunpack.c.l.b16 %v264_v16  ;;  %v328_v29 = vunpack.c.l.b16 %v265_v17  ;;  %v329_v30 = vunpack.c.l.b16 %v266_v18 }
  0x15   :  { %v96_v31 = vsel %vm95_vm5, %v94_v11, %v93_v27  ;;  %v330_v32 = vunpack.c.l.b16 %v267_v21  ;;  %v331_v33 = vunpack.c.l.b16 %v268_v22  ;;  %v332_v34 = vunpack.c.l.b16 %v269_v24 }
  0x16   :  { %v99_v35 = vsel %vm98_vm6, %v97_v12, %v96_v31  ;;  %v333_v36 = vunpack.c.l.b16 %v270_v25  ;;  %v334_v37 = vunpack.c.l.b16 %v271_v26  ;;  %v335_v38 = vrot.slane %v328_v29, 7  ;;  %v687_v31 = vld [vmem:[%s2952_s1 + $0xb] sm:$0x1] }
  0x17   :  { %v100_v39 = vpack.c.b16 %v99_v35, %v99_v35  ;;  %v337_v40 = vrot.slane %v329_v30, 6  ;;  %v339_v41 = vrot.slane %v330_v32, 5  ;;  %v341_v42 = vrot.slane %v331_v33, 4  ;;  %v686_v30 = vld [vmem:[%s2952_s1 + $0x3] sm:$0x1] }
  0x18   :  { %v336_v43 = vsel %vm80_vm0, %v335_v38, %v327_v28  ;;  %v343_v44 = vrot.slane %v332_v34, 3  ;;  %v345_v46 = vrot.slane %v333_v36, 2  ;;  %v347_v48 = vrot.slane %v334_v37, 1  ;;  %v688_v32 = vld [vmem:[%s2952_s1 + $0x13] sm:$0x1] }
  0x19   :  { %v338_v45 = vsel %vm83_vm1, %v337_v40, %v336_v43  ;;  %v249_v57 = vpack.c.bf16 %v241_v55, %v241_v55  ;;  %v250_v60 = vpack.c.bf16 %v242_v56, %v242_v56  ;;  %v248_v62 = vpack.c.bf16 %v240_v58, %v240_v58  ;;  %v689_v33 = vld [vmem:[%s2952_s1 + $0x1b] sm:$0x1]  ;;  %v690_v34 = vld [vmem:[%s2952_s1 + $0x23] sm:$0x1]  ;;  %v691_v35 = vld [vmem:[%s2952_s1 + $0x2b] sm:$0x1] }
  0x1a   :  { %1749 = vmatmul.msk.bf16.vlgmr.msra.gmra.mxu0 %vm132_vm7, %v100_v39  ;;  %v340_v47 = vsel %vm86_vm2, %v339_v41, %v338_v45  ;;  %v251_v63 = vpack.c.bf16 %v243_v59, %v243_v59  ;;  %v252_v2 = vpack.c.bf16 %v244_v61, %v244_v61  ;;  %v253_v5 = vpack.c.bf16 %v245_v1, %v245_v1  ;;  %v692_v39 = vld [vmem:[%s2952_s1 + $0x33] sm:$0x1]  ;;  %v693_v40 = vld [vmem:[%s2952_s1 + $0x3b] sm:$0x1]  ;;  %v674_v56 = vld [vmem:[%s2953_s0 + $0x23] sm:$0x1] }
  0x1b   :  { %v342_v49 = vsel %vm89_vm3, %v341_v42, %v340_v47  ;;  %v297_v0 = vunpack.c.l.b16 %v249_v57  ;;  %v298_v3 = vunpack.c.l.b16 %v250_v60  ;;  %v296_v6 = vunpack.c.l.b16 %v248_v62  ;;  %v673_v55 = vld [vmem:[%s2953_s0 + $0x1b] sm:$0x1]  ;;  %v675_v60 = vld [vmem:[%s2953_s0 + $0x2b] sm:$0x1]  ;;  %v676_v61 = vld [vmem:[%s2953_s0 + $0x33] sm:$0x1] }
  0x1c   :  { %v344_v50 = vsel %vm92_vm4, %v343_v44, %v342_v49  ;;  %v299_v7 = vunpack.c.l.b16 %v251_v63  ;;  %v254_v10 = vpack.c.bf16 %v246_v4, %v246_v4  ;;  %v300_v11 = vunpack.c.l.b16 %v252_v2  ;;  %v670_v44 = vld [vmem:[%s2953_s0 + $0x3] sm:$0x1]  ;;  %v671_v49 = vld [vmem:[%s2953_s0 + $0xb] sm:$0x1] }
  0x1d   :  { %v346_v51 = vsel %vm95_vm5, %v345_v46, %v344_v50  ;;  %v304_v8 = vrot.slane %v297_v0, 7  ;;  %v306_v12 = vrot.slane %v298_v3, 6  ;;  %v255_v13 = vpack.c.bf16 %v247_v9, %v247_v9  ;;  %v677_v3 = vld [vmem:[%s2953_s0 + $0x3b] sm:$0x1] }
  0x1e   :  { %v348_v52 = vsel %vm98_vm6, %v347_v48, %v346_v51  ;;  %v301_v14 = vunpack.c.l.b16 %v253_v5  ;;  %v308_v16 = vrot.slane %v299_v7, 5  ;;  %v302_v17 = vunpack.c.l.b16 %v254_v10 }
  0x1f   :  { %v349_v53 = vpack.c.b16 %v348_v52, %v348_v52  ;;  %v305_v15 = vsel %vm80_vm0, %v304_v8, %v296_v6  ;;  %v310_v19 = vrot.slane %v300_v11, 4  ;;  %v303_v20 = vunpack.c.l.b16 %v255_v13 }
  0x20   :  { %v307_v18 = vsel %vm83_vm1, %v306_v12, %v305_v15  ;;  %v312_v22 = vrot.slane %v301_v14, 3  ;;  %v314_v24 = vrot.slane %v302_v17, 2  ;;  %v694_v36 = vpack.c.bf16 %v686_v30, %v686_v30 }
  0x21   :  { %v354_v54 = vsel %vm132_vm7, %v349_v53, 0  ;;  %v309_v21 = vsel %vm86_vm2, %v308_v16, %v307_v18  ;;  %v316_v26 = vrot.slane %v303_v20, 1  ;;  %v695_v37 = vpack.c.bf16 %v687_v31, %v687_v31 }
  0x22   :  { %363 = vmatpush.bf16.xpose.msra.mxu2 %v354_v54  ;;  %v311_v23 = vsel %vm89_vm3, %v310_v19, %v309_v21  ;;  %v696_v38 = vpack.c.bf16 %v688_v32, %v688_v32  ;;  %v697_v41 = vpack.c.bf16 %v689_v33, %v689_v33  ;;  %v698_v42 = vpack.c.bf16 %v690_v34, %v690_v34  ;;  %v672_v54 = vld [vmem:[%s2953_s0 + $0x13] sm:$0x1] }
  0x23   :  { %v313_v25 = vsel %vm92_vm4, %v312_v22, %v311_v23  ;;  %v699_v43 = vpack.c.bf16 %v691_v35, %v691_v35  ;;  %v700_v45 = vpack.c.bf16 %v692_v39, %v692_v39  ;;  %v701_v46 = vpack.c.bf16 %v693_v40, %v693_v40 }
  0x24   :  { %v315_v27 = vsel %vm95_vm5, %v314_v24, %v313_v25  ;;  %v757_v47 = vunpack.c.l.b16 %v694_v36  ;;  %v758_v48 = vunpack.c.l.b16 %v695_v37  ;;  %v759_v50 = vunpack.c.l.b16 %v696_v38 }
  0x25   :  { %v317_v28 = vsel %vm98_vm6, %v316_v26, %v315_v27  ;;  %v760_v51 = vunpack.c.l.b16 %v697_v41  ;;  %v761_v52 = vunpack.c.l.b16 %v698_v42  ;;  %v762_v53 = vunpack.c.l.b16 %v699_v43 }
  0x26   :  { %v318_v29 = vpack.c.b16 %v317_v28, %v317_v28  ;;  %v763_v57 = vunpack.c.l.b16 %v700_v45  ;;  %v764_v58 = vunpack.c.l.b16 %v701_v46  ;;  %v765_v59 = vrot.slane %v758_v48, 7 }
  0x27   :  { %v678_v62 = vpack.c.bf16 %v670_v44, %v670_v44  ;;  %v767_v63 = vrot.slane %v759_v50, 6  ;;  %v769_v0 = vrot.slane %v760_v51, 5  ;;  %v771_v1 = vrot.slane %v761_v52, 4  ;;  %v1118_v50 = vld [vmem:[%s2952_s1 + $0x15] sm:$0x1] }
  0x28   :  { %v773_v2 = vrot.slane %v762_v53, 3  ;;  %v766_v4 = vsel %vm80_vm0, %v765_v59, %v757_v47  ;;  %v775_v5 = vrot.slane %v763_v57, 2  ;;  %v777_v6 = vrot.slane %v764_v58, 1  ;;  %v1116_v52 = vld [vmem:[%s2952_s1 + $0x5] sm:$0x1] }
  0x29   :  { %1751 = vmatmul.msk.bf16.vlgmr.msra.gmra.mxu2 %vm132_vm7, %v318_v29  ;;  %v679_v7 = vpack.c.bf16 %v671_v49, %v671_v49  ;;  %v768_v8 = vsel %vm83_vm1, %v767_v63, %v766_v4  ;;  %v680_v9 = vpack.c.bf16 %v672_v54, %v672_v54  ;;  %v681_v10 = vpack.c.bf16 %v673_v55, %v673_v55  ;;  %v1117_v49 = vld [vmem:[%s2952_s1 + $0xd] sm:$0x1]  ;;  %v1119_v53 = vld [vmem:[%s2952_s1 + $0x1d] sm:$0x1]  ;;  %v1120_v55 = vld [vmem:[%s2952_s1 + $0x25] sm:$0x1] }
  0x2a   :  { %v682_v11 = vpack.c.bf16 %v674_v56, %v674_v56  ;;  %v770_v12 = vsel %vm86_vm2, %v769_v0, %v768_v8  ;;  %v683_v13 = vpack.c.bf16 %v675_v60, %v675_v60  ;;  %v684_v14 = vpack.c.bf16 %v676_v61, %v676_v61  ;;  %v1121_v59 = vld [vmem:[%s2952_s1 + $0x2d] sm:$0x1] }
  0x2b   :  { %v685_v15 = vpack.c.bf16 %v677_v3, %v677_v3  ;;  %v772_v16 = vsel %vm89_vm3, %v771_v1, %v770_v12  ;;  %v726_v17 = vunpack.c.l.b16 %v678_v62  ;;  %v727_v18 = vunpack.c.l.b16 %v679_v7  ;;  %v1122_v62 = vld [vmem:[%s2952_s1 + $0x35] sm:$0x1]  ;;  %v1123_v3 = vld [vmem:[%s2952_s1 + $0x3d] sm:$0x1] }
  0x2c   :  { %v728_v19 = vunpack.c.l.b16 %v680_v9  ;;  %v774_v20 = vsel %vm92_vm4, %v773_v2, %v772_v16  ;;  %v729_v21 = vunpack.c.l.b16 %v681_v10  ;;  %v730_v22 = vunpack.c.l.b16 %v682_v11 }
  0x2d   :  { %v731_v23 = vunpack.c.l.b16 %v683_v13  ;;  %v776_v24 = vsel %vm95_vm5, %v775_v5, %v774_v20  ;;  %v732_v25 = vunpack.c.l.b16 %v684_v14  ;;  %v733_v26 = vunpack.c.l.b16 %v685_v15  ;;  %v1101_v14 = vld [vmem:[%s2953_s0 + $0xd] sm:$0x1] }
  0x2e   :  { %v734_v27 = vrot.slane %v727_v18, 7  ;;  %v778_v28 = vsel %vm98_vm6, %v777_v6, %v776_v24  ;;  %v736_v29 = vrot.slane %v728_v19, 6  ;;  %v738_v30 = vrot.slane %v729_v21, 5  ;;  %v1102_v18 = vld [vmem:[%s2953_s0 + $0x15] sm:$0x1] }
  0x2f   :  { %v740_v31 = vrot.slane %v730_v22, 4  ;;  %v779_v32 = vpack.c.b16 %v778_v28, %v778_v28  ;;  %v742_v34 = vrot.slane %v731_v23, 3  ;;  %v744_v36 = vrot.slane %v732_v25, 2  ;;  %v1100_v22 = vld [vmem:[%s2953_s0 + $0x5] sm:$0x1] }
  0x30   :  { %v735_v33 = vsel %vm80_vm0, %v734_v27, %v726_v17  ;;  %v746_v39 = vrot.slane %v733_v26, 1  ;;  %v1125_v51 = vpack.c.bf16 %v1117_v49, %v1117_v49  ;;  %v1126_v54 = vpack.c.bf16 %v1118_v50, %v1118_v50  ;;  %v1103_v23 = vld [vmem:[%s2953_s0 + $0x1d] sm:$0x1]  ;;  %v1104_v27 = vld [vmem:[%s2953_s0 + $0x25] sm:$0x1] }
  0x31   :  { %v737_v35 = vsel %vm83_vm1, %v736_v29, %v735_v33  ;;  %v784_v37 = vsel %vm132_vm7, %v779_v32, 0  ;;  %v1124_v56 = vpack.c.bf16 %v1116_v52, %v1116_v52  ;;  %v1127_v57 = vpack.c.bf16 %v1119_v53, %v1119_v53 }
  0x32   :  { %v739_v38 = vsel %vm86_vm2, %v738_v30, %v737_v35  ;;  %793 = vmatpush.bf16.xpose.msrb.mxu0 %v784_v37  ;;  %v1188_v58 = vunpack.c.l.b16 %v1125_v51  ;;  %v1128_v60 = vpack.c.bf16 %v1120_v55, %v1120_v55  ;;  %v1189_v61 = vunpack.c.l.b16 %v1126_v54 }
  0x33   :  { %v741_v40 = vsel %vm89_vm3, %v740_v31, %v739_v38  ;;  %v1129_v63 = vpack.c.bf16 %v1121_v59, %v1121_v59  ;;  %v1187_v0 = vunpack.c.l.b16 %v1124_v56  ;;  %v1190_v1 = vunpack.c.l.b16 %v1127_v57  ;;  %v1105_v31 = vld [vmem:[%s2953_s0 + $0x2d] sm:$0x1] }
  0x34   :  { %v743_v41 = vsel %vm92_vm4, %v742_v34, %v741_v40  ;;  %v1195_v2 = vrot.slane %v1188_v58, 7  ;;  %v1130_v4 = vpack.c.bf16 %v1122_v62, %v1122_v62  ;;  %v1191_v5 = vunpack.c.l.b16 %v1128_v60 }
  0x35   :  { %v745_v42 = vsel %vm95_vm5, %v744_v36, %v743_v41  ;;  %v1197_v6 = vrot.slane %v1189_v61, 6  ;;  %v1131_v7 = vpack.c.bf16 %v1123_v3, %v1123_v3  ;;  %v1192_v8 = vunpack.c.l.b16 %v1129_v63  ;;  %v1106_v36 = vld [vmem:[%s2953_s0 + $0x35] sm:$0x1]  ;;  %v1107_v41 = vld [vmem:[%s2953_s0 + $0x3d] sm:$0x1] }
  0x36   :  { %v747_v43 = vsel %vm98_vm6, %v746_v39, %v745_v42  ;;  %v1196_v9 = vsel %vm80_vm0, %v1195_v2, %v1187_v0  ;;  %v1199_v10 = vrot.slane %v1190_v1, 5  ;;  %v1193_v11 = vunpack.c.l.b16 %v1130_v4 }
  0x37   :  { %v748_v44 = vpack.c.b16 %v747_v43, %v747_v43  ;;  %v1198_v12 = vsel %vm83_vm1, %v1197_v6, %v1196_v9  ;;  %v1201_v13 = vrot.slane %v1191_v5, 4  ;;  %v1194_v15 = vunpack.c.l.b16 %v1131_v7 }
  0x38   :  { %v1200_v16 = vsel %vm86_vm2, %v1199_v10, %v1198_v12  ;;  %v1203_v17 = vrot.slane %v1192_v8, 3  ;;  %v1109_v19 = vpack.c.bf16 %v1101_v14, %v1101_v14  ;;  %v1205_v21 = vrot.slane %v1193_v11, 2  ;;  %v48_v12 = vld [vmem:[%s2954_s2 + $0x8] sm:$0x1]  ;;  %v47_v14 = vld [vmem:[%s2954_s2] sm:$0x1] }
  0x39   :  { %1755 = vmatmul.msk.bf16.vlgmr.msrb.gmra.mxu0 %vm132_vm7, %v748_v44  ;;  %v1202_v20 = vsel %vm89_vm3, %v1201_v13, %v1200_v16  ;;  %v1110_v24 = vpack.c.bf16 %v1102_v18, %v1102_v18  ;;  %v1207_v26 = vrot.slane %v1194_v15, 1  ;;  %v1108_v28 = vpack.c.bf16 %v1100_v22, %v1100_v22  ;;  %v49_v13 = vld [vmem:[%s2954_s2 + $0x10] sm:$0x1]  ;;  %v50_v15 = vld [vmem:[%s2954_s2 + $0x18] sm:$0x1] }
  0x3a   :  { %v1204_v25 = vsel %vm92_vm4, %v1203_v17, %v1202_v20  ;;  %v1111_v29 = vpack.c.bf16 %v1103_v23, %v1103_v23  ;;  %v1112_v32 = vpack.c.bf16 %v1104_v27, %v1104_v27  ;;  %v1157_v33 = vunpack.c.l.b16 %v1109_v19  ;;  %v51_v17 = vld [vmem:[%s2954_s2 + $0x20] sm:$0x1] }
  0x3b   :  { %v1206_v30 = vsel %vm95_vm5, %v1205_v21, %v1204_v25  ;;  %v1158_v34 = vunpack.c.l.b16 %v1110_v24  ;;  %v1113_v37 = vpack.c.bf16 %v1105_v31, %v1105_v31  ;;  %v1156_v38 = vunpack.c.l.b16 %v1108_v28  ;;  %v52_v21 = vld [vmem:[%s2954_s2 + $0x28] sm:$0x1]  ;;  %v53_v24 = vld [vmem:[%s2954_s2 + $0x30] sm:$0x1] }
  0x3c   :  { %v1208_v35 = vsel %vm98_vm6, %v1207_v26, %v1206_v30  ;;  %v1159_v39 = vunpack.c.l.b16 %v1111_v29  ;;  %v1114_v42 = vpack.c.bf16 %v1106_v36, %v1106_v36  ;;  %v1160_v43 = vunpack.c.l.b16 %v1112_v32  ;;  %v54_v29 = vld [vmem:[%s2954_s2 + $0x38] sm:$0x1] }
  0x3d   :  { %v1209_v40 = vpack.c.b16 %v1208_v35, %v1208_v35  ;;  %v1164_v44 = vrot.slane %v1157_v33, 7  ;;  %v57_v16 = vpack.c.bf16 %v49_v13, %v49_v13  ;;  %v55_v18 = vpack.c.bf16 %v47_v14, %v47_v14  ;;  %v478_v13 = vld [vmem:[%s2952_s1 + $0x3a] sm:$0x1] }
  0x3e   :  { %v1168_v49 = vrot.slane %v1159_v39, 5  ;;  %v1162_v51 = vunpack.c.l.b16 %v1114_v42  ;;  %v1170_v53 = vrot.slane %v1160_v43, 4  ;;  %v58_v19 = vpack.c.bf16 %v50_v15, %v50_v15 }
  0x3f   :  { %v1214_v50 = vsel %vm132_vm7, %v1209_v40, 0  ;;  %v1165_v52 = vsel %vm80_vm0, %v1164_v44, %v1156_v38  ;;  %v59_v22 = vpack.c.bf16 %v51_v17, %v51_v17  ;;  %v175_v23 = vunpack.c.l.b16 %v57_v16 }
  0x40   :  { %1223 = vmatpush.bf16.xpose.msra.mxu0 %v1214_v50  ;;  %v1174_v58 = vrot.slane %v1162_v51, 2  ;;  %v60_v25 = vpack.c.bf16 %v52_v21, %v52_v21  ;;  %v173_v26 = vunpack.c.l.b16 %v55_v18  ;;  %v176_v27 = vunpack.c.l.b16 %v58_v19  ;;  %v473_v51 = vld [vmem:[%s2952_s1 + $0x12] sm:$0x1] }
  0x41   :  { %v61_v30 = vpack.c.bf16 %v53_v24, %v53_v24  ;;  %v177_v31 = vunpack.c.l.b16 %v59_v22  ;;  %v183_v32 = vrot.slane %v175_v23, 6  ;;  %v62_v33 = vpack.c.bf16 %v54_v29, %v54_v29  ;;  %v455_v22 = vld [vmem:[%s2953_s0 + $0x2] sm:$0x1]  ;;  %v456_v23 = vld [vmem:[%s2953_s0 + $0xa] sm:$0x1] }
  0x42   :  { %v185_v36 = vrot.slane %v176_v27, 5  ;;  %vm199_vm8 = vcmask 1043456   ;;  %v486_v15 = vpack.c.bf16 %v478_v13, %v478_v13  ;;  %v458_v29 = vld [vmem:[%s2953_s0 + $0x1a] sm:$0x1]  ;;  %vm231_vm9 = vcmask 57344  }
  0x43   :  { %v187_v39 = vrot.slane %v177_v31, 4  ;;  %v180_v40 = vunpack.c.l.b16 %v62_v33  ;;  %v460_v33 = vld [vmem:[%s2953_s0 + $0x2a] sm:$0x1] }
  0x44   :  { %v549_v24 = vunpack.c.l.b16 %v486_v15  ;;  %v905_v15 = vld [vmem:[%s2952_s1 + $0x24] sm:$0x1] }
  0x97   :  { %v148_v45 = vpop.f32.mrf.mxu0 }
  0x98   :  { %v2009_v46 = vmul.f32 0.35355338, %v148_v45  ;;  %v1115_v45 = vpack.c.bf16 %v1107_v41, %v1107_v41 }
  0x9a   :  { %v153_v47 = vsel %vm132_vm7, %v2009_v46, -inf  ;;  %v1163_v54 = vunpack.c.l.b16 %v1115_v45 }
  0x9b   :  { %154 = vmax.xlane.f32.xlu0 %v153_v47  ;;  %v1161_v47 = vunpack.c.l.b16 %v1113_v37  ;;  %v179_v37 = vunpack.c.l.b16 %v61_v30 }
  0x9c   :  { %v1176_v60 = vrot.slane %v1163_v54, 1  ;;  %v471_v54 = vld [vmem:[%s2952_s1 + $0x2] sm:$0x1] }
  0x9d   :  { %v1172_v56 = vrot.slane %v1161_v47, 3  ;;  %v191_v44 = vrot.slane %v179_v37, 2  ;;  %v193_v47 = vrot.slane %v180_v40, 1  ;;  %v562_v37 = vrot.slane %v549_v24, 1  ;;  %v907_v24 = vld [vmem:[%s2952_s1 + $0x34] sm:$0x1] }
  0x9f   :  { %v150_v48 = vpop.f32.mrf.mxu0 }
  0xa0   :  { %v1166_v48 = vrot.slane %v1158_v34, 6  ;;  %v178_v34 = vunpack.c.l.b16 %v60_v25 }
  0xa2   :  { %v1167_v55 = vsel %vm83_vm1, %v1166_v48, %v1165_v52  ;;  %v189_v42 = vrot.slane %v178_v34, 3  ;;  %v463_v34 = vpack.c.bf16 %v455_v22, %v455_v22 }
  0xa3   :  { %v1169_v57 = vsel %vm86_vm2, %v1168_v49, %v1167_v55  ;;  %v472_v49 = vld [vmem:[%s2952_s1 + $0xa] sm:$0x1]  ;;  %v474_v55 = vld [vmem:[%s2952_s1 + $0x1a] sm:$0x1] }
  0xa4   :  { %v1171_v59 = vsel %vm89_vm3, %v1170_v53, %v1169_v57  ;;  %v480_v52 = vpack.c.bf16 %v472_v49, %v472_v49  ;;  %v511_v49 = vunpack.c.l.b16 %v463_v34 }
  0xa5   :  { %v1173_v61 = vsel %vm92_vm4, %v1172_v56, %v1171_v59  ;;  %v481_v56 = vpack.c.bf16 %v473_v51, %v473_v51  ;;  %v479_v59 = vpack.c.bf16 %v471_v54, %v471_v54 }
  0xa6   :  { %v1175_v62 = vsel %vm95_vm5, %v1174_v58, %v1173_v61  ;;  %v475_v58 = vld [vmem:[%s2952_s1 + $0x22] sm:$0x1]  ;;  %v543_v61 = vunpack.c.l.b16 %v480_v52 }
  0xa7   :  { %v1177_v63 = vsel %vm98_vm6, %v1176_v60, %v1175_v62  ;;  %v482_v60 = vpack.c.bf16 %v474_v55, %v474_v55 }
  0xa8   :  { %v1178_v0 = vpack.c.b16 %v1177_v63, %v1177_v63 }
  0xaa   :  { %1759 = vmatmul.msk.bf16.vlgmr.msra.gmra.mxu0 %vm132_vm7, %v1178_v0  ;;  %v476_v0 = vld [vmem:[%s2952_s1 + $0x2a] sm:$0x1] }
  0xac   :  { %v365_v1 = vpop.f32.mrf.mxu2 }
  0xad   :  { %v2077_v2 = vmul.f32 0.35355338, %v365_v1  ;;  %v483_v1 = vpack.c.bf16 %v475_v58, %v475_v58 }
  0xaf   :  { %v370_v3 = vsel %vm132_vm7, %v2077_v2, -inf  ;;  %v546_v14 = vunpack.c.l.b16 %v483_v1 }
  0xb0   :  { %371 = vmax.xlane.f32.xlu1 %v370_v3  ;;  %v544_v3 = vunpack.c.l.b16 %v481_v56 }
  0xb1   :  { %v556_v21 = vrot.slane %v546_v14, 4 }
  0xb2   :  { %v552_v18 = vrot.slane %v544_v3, 6 }
  0xb4   :  { %v367_v4 = vpop.f32.mrf.mxu2 }
  0xb6   :  { %v2082_v8 = vpop.f32.mrf.mxu0 }
  0xb7   :  { %v2188_v1 = vmul.f32 0.35355338, %v2082_v8  ;;  %v904_v8 = vld [vmem:[%s2952_s1 + $0x1c] sm:$0x1] }
  0xbe   :  { %v797_v11 = vpop.f32.mrf.mxu0 }
  0xbf   :  { %v550_v11 = vrot.slane %v543_v61, 7 }
 0x10e   :  { %v155_v5 = vpop.xlane.xlu0 %154 }
 0x10f   :  { %v156_v6 = vsub.f32 %v2009_v46, %v155_v5  ;;  %v56_v46 = vpack.c.bf16 %v48_v12, %v48_v12  ;;  %v477_v5 = vld [vmem:[%s2952_s1 + $0x32] sm:$0x1] }
 0x111   :  { %v157_v7 = vmul.f32 1.442695, %v156_v6  ;;  %v174_v20 = vunpack.c.l.b16 %v56_v46  ;;  %v484_v6 = vpack.c.bf16 %v476_v0, %v476_v0  ;;  %v485_v46 = vpack.c.bf16 %v477_v5, %v477_v5  ;;  %v902_v0 = vld [vmem:[%s2952_s1 + $0xc] sm:$0x1] }
 0x113   :  { %1765 = vpow2.f32 %v157_v7  ;;  %v181_v28 = vrot.slane %v174_v20, 7  ;;  %v542_v7 = vunpack.c.l.b16 %v479_v59  ;;  %v547_v16 = vunpack.c.l.b16 %v484_v6  ;;  %v903_v6 = vld [vmem:[%s2952_s1 + $0x14] sm:$0x1] }
 0x114   :  { %v548_v19 = vunpack.c.l.b16 %v485_v46  ;;  %v911_v13 = vpack.c.bf16 %v903_v6, %v903_v6 }
 0x115   :  { %v182_v35 = vsel %vm80_vm0, %v181_v28, %v173_v26  ;;  %v551_v17 = vsel %vm80_vm0, %v550_v11, %v542_v7  ;;  %v558_v26 = vrot.slane %v547_v16, 3  ;;  %v457_v28 = vld [vmem:[%s2953_s0 + $0x12] sm:$0x1]  ;;  %v901_v11 = vld [vmem:[%s2952_s1 + $0x4] sm:$0x1] }
 0x116   :  { %v184_v38 = vsel %vm83_vm1, %v183_v32, %v182_v35  ;;  %v553_v25 = vsel %vm83_vm1, %v552_v18, %v551_v17  ;;  %v560_v31 = vrot.slane %v548_v19, 2  ;;  %v459_v32 = vld [vmem:[%s2953_s0 + $0x22] sm:$0x1]  ;;  %v464_v35 = vpack.c.bf16 %v456_v23, %v456_v23  ;;  %v906_v19 = vld [vmem:[%s2952_s1 + $0x2c] sm:$0x1] }
 0x117   :  { %v186_v41 = vsel %vm86_vm2, %v185_v36, %v184_v38  ;;  %v461_v38 = vld [vmem:[%s2953_s0 + $0x32] sm:$0x1]  ;;  %v465_v40 = vpack.c.bf16 %v457_v28, %v457_v28  ;;  %v909_v16 = vpack.c.bf16 %v901_v11, %v901_v11  ;;  %v912_v17 = vpack.c.bf16 %v904_v8, %v904_v8 }
 0x118   :  { %v188_v43 = vsel %vm89_vm3, %v187_v39, %v186_v41  ;;  %v462_v39 = vld [vmem:[%s2953_s0 + $0x3a] sm:$0x1]  ;;  %v466_v41 = vpack.c.bf16 %v458_v29, %v458_v29  ;;  %v974_v22 = vunpack.c.l.b16 %v911_v13  ;;  %v908_v29 = vld [vmem:[%s2952_s1 + $0x3c] sm:$0x1] }
 0x119   :  { %v2084_v9 = vpop.eup %1765  ;;  %v190_v45 = vsel %vm92_vm4, %v189_v42, %v188_v43  ;;  %v467_v43 = vpack.c.bf16 %v459_v32, %v459_v32  ;;  %v513_v54 = vunpack.c.l.b16 %v465_v40  ;;  %v885_v40 = vld [vmem:[%s2953_s0 + $0x4] sm:$0x1]  ;;  %v892_v13 = vld [vmem:[%s2953_s0 + $0x3c] sm:$0x1] }
 0x11a   :  { %v159_v10 = vsel %vm132_vm7, %v2084_v9, 0.0  ;;  %v192_v48 = vsel %vm95_vm5, %v191_v44, %v190_v45  ;;  %v468_v44 = vpack.c.bf16 %v460_v33, %v460_v33  ;;  %v469_v45 = vpack.c.bf16 %v461_v38, %v461_v38 }
 0x11b   :  { %160 = vadd.xlane.f32.xlu0 %v159_v10  ;;  %v194_v50 = vsel %vm98_vm6, %v193_v47, %v192_v48  ;;  %v545_v10 = vunpack.c.l.b16 %v482_v60  ;;  %v470_v48 = vpack.c.bf16 %v462_v39, %v462_v39  ;;  %v514_v55 = vunpack.c.l.b16 %v466_v41  ;;  %v886_v41 = vld [vmem:[%s2953_s0 + $0xc] sm:$0x1] }
 0x11c   :  { %v195_v53 = vpack.c.b16 %v194_v50, %v194_v50  ;;  %v512_v50 = vunpack.c.l.b16 %v464_v35  ;;  %v515_v56 = vunpack.c.l.b16 %v467_v43  ;;  %v516_v59 = vunpack.c.l.b16 %v468_v44 }
 0x11d   :  { %v554_v20 = vrot.slane %v545_v10, 5  ;;  %v517_v60 = vunpack.c.l.b16 %v469_v45  ;;  %v916_v33 = vpack.c.bf16 %v908_v29, %v908_v29  ;;  %v982_v35 = vrot.slane %v974_v22, 6 }
 0x11e   :  { %v201_v63 = vsel %vm199_vm8, %v195_v53, 0  ;;  %v519_v61 = vrot.slane %v512_v50, 7  ;;  %v525_v5 = vrot.slane %v515_v56, 4  ;;  %v527_v10 = vrot.slane %v516_v59, 3 }
 0x11f   :  { %210 = vmatpush.bf16.msra.mxu1 %v201_v63  ;;  %v555_v30 = vsel %vm86_vm2, %v554_v20, %v553_v25  ;;  %v523_v63 = vrot.slane %v514_v55, 5  ;;  %v529_v14 = vrot.slane %v517_v60, 2  ;;  %v913_v20 = vpack.c.bf16 %v905_v15, %v905_v15 }
 0x120   :  { %v557_v36 = vsel %vm89_vm3, %v556_v21, %v555_v30  ;;  %v520_v7 = vsel %vm80_vm0, %v519_v61, %v511_v49  ;;  %v914_v25 = vpack.c.bf16 %v906_v19, %v906_v19  ;;  %v915_v30 = vpack.c.bf16 %v907_v24, %v907_v24 }
 0x121   :  { %v559_v42 = vsel %vm92_vm4, %v558_v26, %v557_v36  ;;  %v972_v26 = vunpack.c.l.b16 %v909_v16  ;;  %v979_v43 = vunpack.c.l.b16 %v916_v33  ;;  %v893_v59 = vpack.c.bf16 %v885_v40, %v885_v40 }
 0x122   :  { %v561_v47 = vsel %vm95_vm5, %v560_v31, %v559_v42  ;;  %v976_v31 = vunpack.c.l.b16 %v913_v20  ;;  %v977_v34 = vunpack.c.l.b16 %v914_v25  ;;  %v894_v60 = vpack.c.bf16 %v886_v41, %v886_v41 }
 0x123   :  { %v372_v57 = vpop.xlane.xlu1 %371  ;;  %v563_v53 = vsel %vm98_vm6, %v562_v37, %v561_v47  ;;  %v978_v37 = vunpack.c.l.b16 %v915_v30  ;;  %v887_v47 = vld [vmem:[%s2953_s0 + $0x14] sm:$0x1]  ;;  %v992_v56 = vrot.slane %v979_v43, 1  ;;  %v941_v11 = vunpack.c.l.b16 %v893_v59  ;;  %v1337_v43 = vld [vmem:[%s2952_s1 + $0x36] sm:$0x1] }
 0x124   :  { %v373_v62 = vsub.f32 %v2077_v2, %v372_v57  ;;  %v564_v57 = vpack.c.b16 %v563_v53, %v563_v53  ;;  %v986_v45 = vrot.slane %v976_v31, 4  ;;  %v988_v50 = vrot.slane %v977_v34, 3  ;;  %v1334_v31 = vld [vmem:[%s2952_s1 + $0x1e] sm:$0x1] }
 0x125   :  { %v800_v53 = vsel %vm132_vm7, %v2188_v1, -inf  ;;  %v942_v8 = vunpack.c.l.b16 %v894_v60  ;;  %v900_v25 = vpack.c.bf16 %v892_v13, %v892_v13 }
 0x126   :  { %v374_v12 = vmul.f32 1.442695, %v373_v62  ;;  %v521_v62 = vrot.slane %v513_v54, 6  ;;  %v569_v3 = vsel %vm132_vm7, %v564_v57, 0  ;;  %v889_v54 = vld [vmem:[%s2953_s0 + $0x24] sm:$0x1]  ;;  %801 = vmax.xlane.f32.xlu2 %v800_v53 }
 0x127   :  { %v1225_v4 = vpop.f32.mrf.mxu0  ;;  %578 = vmatpush.bf16.xpose.msrb.mxu1 %v569_v3  ;;  %v890_v57 = vld [vmem:[%s2953_s0 + $0x2c] sm:$0x1]  ;;  %v897_v3 = vpack.c.bf16 %v889_v54, %v889_v54 }
 0x128   :  { %v2142_v2 = vmul.f32 0.35355338, %v1225_v4  ;;  %1767 = vpow2.f32 %v374_v12  ;;  %v2191_v4 = vunpack.c.l.b16 %v470_v48  ;;  %v910_v12 = vpack.c.bf16 %v902_v0, %v902_v0  ;;  %v888_v48 = vld [vmem:[%s2953_s0 + $0x1c] sm:$0x1] }
 0x129   :  { %v522_v46 = vsel %vm83_vm1, %v521_v62, %v520_v7  ;;  %v896_v0 = vpack.c.bf16 %v888_v48, %v888_v48  ;;  %v898_v6 = vpack.c.bf16 %v890_v57, %v890_v57  ;;  %v945_v15 = vunpack.c.l.b16 %v897_v3  ;;  %v1547_v57 = vld [vmem:[%s2952_s1 + $0xf] sm:$0x1] }
 0x12a   :  { %v1230_v27 = vsel %vm132_vm7, %v2142_v2, -inf  ;;  %v524_v18 = vsel %vm86_vm2, %v523_v63, %v522_v46  ;;  %v973_v21 = vunpack.c.l.b16 %v910_v12  ;;  %v531_v36 = vrot.slane %v2191_v4, 1 }
 0x12b   :  { %1231 = vmax.xlane.f32.xlu0 %v1230_v27  ;;  %v526_v23 = vsel %vm89_vm3, %v525_v5, %v524_v18  ;;  %v975_v27 = vunpack.c.l.b16 %v912_v17  ;;  %v895_v63 = vpack.c.bf16 %v887_v47, %v887_v47  ;;  %v949_v17 = vrot.slane %v942_v8, 7  ;;  %v1332_v18 = vld [vmem:[%s2952_s1 + $0xe] sm:$0x1] }
 0x12c   :  { %v528_v28 = vsel %vm92_vm4, %v527_v10, %v526_v23  ;;  %v980_v32 = vrot.slane %v973_v21, 7  ;;  %v946_v19 = vunpack.c.l.b16 %v898_v6  ;;  %v955_v22 = vrot.slane %v945_v15, 4  ;;  %v1333_v23 = vld [vmem:[%s2952_s1 + $0x16] sm:$0x1] }
 0x12d   :  { %v984_v39 = vrot.slane %v975_v27, 5  ;;  %v530_v42 = vsel %vm95_vm5, %v529_v14, %v528_v28  ;;  %v943_v46 = vunpack.c.l.b16 %v895_v63  ;;  %v944_v14 = vunpack.c.l.b16 %v896_v0  ;;  %v1331_v28 = vld [vmem:[%s2952_s1 + $0x6] sm:$0x1]  ;;  %v1549_v63 = vld [vmem:[%s2952_s1 + $0x1f] sm:$0x1] }
 0x12e   :  { %v2179_v52 = vpop.eup %1767  ;;  %v981_v38 = vsel %vm80_vm0, %v980_v32, %v972_v26  ;;  %v2250_v4 = vsel %vm98_vm6, %v531_v36, %v530_v42  ;;  %v950_v27 = vsel %vm80_vm0, %v949_v17, %v941_v11  ;;  %v1335_v32 = vld [vmem:[%s2952_s1 + $0x26] sm:$0x1]  ;;  %v1339_v33 = vpack.c.bf16 %v1331_v28, %v1331_v28  ;;  %v1550_v0 = vld [vmem:[%s2952_s1 + $0x27] sm:$0x1]  ;;  %v1552_v11 = vld [vmem:[%s2952_s1 + $0x37] sm:$0x1] }
 0x12f   :  { %v1227_v51 = vpop.f32.mrf.mxu0  ;;  %v376_v58 = vsel %vm132_vm7, %v2179_v52, 0.0  ;;  %v983_v44 = vsel %vm83_vm1, %v982_v35, %v981_v38  ;;  %v533_v16 = vpack.c.b16 %v2250_v4, %v2250_v4  ;;  %v951_v20 = vrot.slane %v943_v46, 6  ;;  %v1336_v38 = vld [vmem:[%s2952_s1 + $0x2e] sm:$0x1] }
 0x130   :  { %v985_v49 = vsel %vm86_vm2, %v984_v39, %v983_v44  ;;  %v990_v51 = vrot.slane %v978_v37, 2  ;;  %v953_v21 = vrot.slane %v944_v14, 5  ;;  %v1340_v34 = vpack.c.bf16 %v1332_v18, %v1332_v18  ;;  %v1553_v14 = vld [vmem:[%s2952_s1 + $0x3f] sm:$0x1] }
 0x131   :  { %v987_v55 = vsel %vm89_vm3, %v986_v45, %v985_v49  ;;  %v952_v30 = vsel %vm83_vm1, %v951_v20, %v950_v27  ;;  %v1341_v35 = vpack.c.bf16 %v1333_v23, %v1333_v23  ;;  %v1342_v39 = vpack.c.bf16 %v1334_v31, %v1334_v31 }
 0x132   :  { %v989_v62 = vsel %vm92_vm4, %v988_v50, %v987_v55  ;;  %v954_v37 = vsel %vm86_vm2, %v953_v21, %v952_v30  ;;  %v1343_v40 = vpack.c.bf16 %v1335_v32, %v1335_v32  ;;  %v957_v42 = vrot.slane %v946_v19, 3 }
 0x133   :  { %377 = vadd.xlane.f32.xlu0 %v376_v58  ;;  %v891_v58 = vld [vmem:[%s2953_s0 + $0x34] sm:$0x1]  ;;  %v991_v5 = vsel %vm95_vm5, %v990_v51, %v989_v62  ;;  %v956_v41 = vsel %vm89_vm3, %v955_v22, %v954_v37  ;;  %v1344_v44 = vpack.c.bf16 %v1336_v38, %v1336_v38  ;;  %v1403_v45 = vunpack.c.l.b16 %v1340_v34  ;;  %v1530_v38 = vld [vmem:[%s2953_s0 + $0x7] sm:$0x1] }
 0x134   :  { %v993_v7 = vsel %vm98_vm6, %v992_v56, %v991_v5  ;;  %v899_v10 = vpack.c.bf16 %v891_v58, %v891_v58  ;;  %v1345_v48 = vpack.c.bf16 %v1337_v43, %v1337_v43  ;;  %v1402_v49 = vunpack.c.l.b16 %v1339_v33  ;;  %v1546_v56 = vld [vmem:[%s2952_s1 + $0x7] sm:$0x1]  ;;  %v1548_v58 = vld [vmem:[%s2952_s1 + $0x17] sm:$0x1]  ;;  %v1531_v33 = vld [vmem:[%s2953_s0 + $0xf] sm:$0x1] }
 0x135   :  { %v994_v12 = vpack.c.b16 %v993_v7, %v993_v7  ;;  %v1404_v50 = vunpack.c.l.b16 %v1341_v35  ;;  %v2291_v51 = vunpack.c.l.b16 %v900_v25  ;;  %v1405_v54 = vunpack.c.l.b16 %v1342_v39  ;;  %v1532_v39 = vld [vmem:[%s2953_s0 + $0x17] sm:$0x1] }
 0x136   :  { %v2266_v26 = vunpack.c.l.b16 %v899_v10  ;;  %v1406_v55 = vunpack.c.l.b16 %v1343_v40  ;;  %v1407_v60 = vunpack.c.l.b16 %v1344_v44  ;;  %v1410_v62 = vrot.slane %v1403_v45, 7  ;;  %v1551_v10 = vld [vmem:[%s2952_s1 + $0x2f] sm:$0x1]  ;;  %v1533_v40 = vld [vmem:[%s2953_s0 + $0x1f] sm:$0x1] }
 0x137   :  { %v999_v24 = vsel %vm132_vm7, %v994_v12, 0  ;;  %v2311_v3 = vsel %vm92_vm4, %v957_v42, %v956_v41  ;;  %v1412_v6 = vrot.slane %v1404_v50, 6  ;;  %v1414_v7 = vrot.slane %v1405_v54, 5  ;;  %v1534_v45 = vld [vmem:[%s2953_s0 + $0x27] sm:$0x1] }
 0x138   :  { %v959_v59 = vrot.slane %v2266_v26, 2  ;;  %v1411_v8 = vsel %vm80_vm0, %v1410_v62, %v1402_v49  ;;  %v1416_v12 = vrot.slane %v1406_v55, 4  ;;  %v1418_v13 = vrot.slane %v1407_v60, 3 }
 0x139   :  { %v1413_v15 = vsel %vm83_vm1, %v1412_v6, %v1411_v8  ;;  %v1554_v18 = vpack.c.bf16 %v1546_v56, %v1546_v56  ;;  %v1555_v19 = vpack.c.bf16 %v1547_v57, %v1547_v57  ;;  %v1556_v21 = vpack.c.bf16 %v1548_v58, %v1548_v58  ;;  %v1537_v58 = vld [vmem:[%s2953_s0 + $0x3f] sm:$0x1] }
 0x13a   :  { %v1415_v20 = vsel %vm86_vm2, %v1414_v7, %v1413_v15  ;;  %v1557_v22 = vpack.c.bf16 %v1549_v63, %v1549_v63  ;;  %v1558_v23 = vpack.c.bf16 %v1550_v0, %v1550_v0  ;;  %v1559_v25 = vpack.c.bf16 %v1551_v10, %v1551_v10 }
 0x13b   :  { %v1560_v27 = vpack.c.bf16 %v1552_v11, %v1552_v11  ;;  %v1561_v28 = vpack.c.bf16 %v1553_v14, %v1553_v14  ;;  %v1617_v30 = vunpack.c.l.b16 %v1554_v18  ;;  %v1618_v31 = vunpack.c.l.b16 %v1555_v19 }
 0x13c   :  { %v1619_v32 = vunpack.c.l.b16 %v1556_v21  ;;  %v1620_v35 = vunpack.c.l.b16 %v1557_v22  ;;  %v1622_v37 = vunpack.c.l.b16 %v1559_v25  ;;  %v1538_v62 = vpack.c.bf16 %v1530_v38, %v1530_v38  ;;  %v1315_v21 = vld [vmem:[%s2953_s0 + $0x6] sm:$0x1]  ;;  %v1316_v22 = vld [vmem:[%s2953_s0 + $0xe] sm:$0x1] }
 0x13d   :  { %v1623_v42 = vunpack.c.l.b16 %v1560_v27  ;;  %v1624_v43 = vunpack.c.l.b16 %v1561_v28  ;;  %v1625_v44 = vrot.slane %v1618_v31, 7  ;;  %v1539_v63 = vpack.c.bf16 %v1531_v33, %v1531_v33  ;;  %v1317_v28 = vld [vmem:[%s2953_s0 + $0x16] sm:$0x1] }
 0x13e   :  { %v1629_v49 = vrot.slane %v1620_v35, 5  ;;  %v1633_v55 = vrot.slane %v1622_v37, 3  ;;  %v1541_v6 = vpack.c.bf16 %v1533_v40, %v1533_v40  ;;  %v1542_v7 = vpack.c.bf16 %v1534_v45, %v1534_v45 }
 0x13f   :  { %v1626_v54 = vsel %vm80_vm0, %v1625_v44, %v1617_v30  ;;  %v1635_v56 = vrot.slane %v1623_v42, 2  ;;  %v1637_v57 = vrot.slane %v1624_v43, 1  ;;  %v1587_v14 = vunpack.c.l.b16 %v1539_v63  ;;  %v1320_v42 = vld [vmem:[%s2953_s0 + $0x2e] sm:$0x1]  ;;  %v1322_v63 = vld [vmem:[%s2953_s0 + $0x3e] sm:$0x1] }
 0x140   :  { %v1589_v18 = vunpack.c.l.b16 %v1541_v6  ;;  %v1590_v19 = vunpack.c.l.b16 %v1542_v7  ;;  %v1324_v40 = vpack.c.bf16 %v1316_v22, %v1316_v22  ;;  %v1325_v43 = vpack.c.bf16 %v1317_v28, %v1317_v28  ;;  %v272_v28 = vld [vmem:[%s2954_s2 + $0x1] sm:$0x1] }
 0x141   :  { %v1594_v27 = vrot.slane %v1587_v14, 7 }
 0x142   :  { %v1600_v4 = vrot.slane %v1590_v19, 4 }
 0x18e   :  { %v161_v61 = vpop.xlane.xlu0 %160 }
 0x18f   :  { %1769 = vrcp.f32 %v161_v61  ;;  %v1408_v61 = vunpack.c.l.b16 %v1345_v48  ;;  %v1627_v48 = vrot.slane %v1619_v32, 6  ;;  %v1598_v32 = vrot.slane %v1589_v18, 5 }
 0x191   :  { %v1420_v46 = vrot.slane %v1408_v61, 2  ;;  %v1628_v61 = vsel %vm83_vm1, %v1627_v48, %v1626_v54  ;;  %v1373_v54 = vunpack.c.l.b16 %v1325_v43 }
 0x192   :  { %v1630_v0 = vsel %vm86_vm2, %v1629_v49, %v1628_v61 }
 0x193   :  { %v1381_v61 = vrot.slane %v1373_v54, 6 }
 0x195   :  { %v1770_v29 = vpop.eup %1769 }
 0x196   :  { %v163_v36 = vmul.f32 %v1770_v29, %v2084_v9  ;;  %v1338_v9 = vld [vmem:[%s2952_s1 + $0x3e] sm:$0x1] }
 0x197   :  { %v1346_v53 = vpack.c.bf16 %v1338_v9, %v1338_v9 }
 0x198   :  { %v164_v47 = vpack.c.bf16 %v163_v36, %v163_v36  ;;  %v1621_v36 = vunpack.c.l.b16 %v1558_v23 }
 0x199   :  { %v1409_v5 = vunpack.c.l.b16 %v1346_v53  ;;  %v1536_v53 = vld [vmem:[%s2953_s0 + $0x37] sm:$0x1] }
 0x19a   :  { %1750 = vmatmul.msk.bf16.vlgmr.msra.gmra.mxu1 %vm132_vm7, %v164_v47  ;;  %v1535_v47 = vld [vmem:[%s2953_s0 + $0x2f] sm:$0x1]  ;;  %v1631_v50 = vrot.slane %v1621_v36, 4  ;;  %v1544_v8 = vpack.c.bf16 %v1536_v53, %v1536_v53  ;;  %v1372_v53 = vunpack.c.l.b16 %v1324_v40  ;;  %v279_v40 = vld [vmem:[%s2954_s2 + $0x39] sm:$0x1] }
 0x19b   :  { %1008 = vmatpush.bf16.xpose.msra.mxu1 %v999_v24  ;;  %v1422_v17 = vrot.slane %v1409_v5, 1  ;;  %v1417_v24 = vsel %vm89_vm3, %v1416_v12, %v1415_v20  ;;  %v1540_v5 = vpack.c.bf16 %v1532_v39, %v1532_v39  ;;  %v1543_v11 = vpack.c.bf16 %v1535_v47, %v1535_v47 }
 0x19c   :  { %v1419_v29 = vsel %vm92_vm4, %v1418_v13, %v1417_v24  ;;  %v1632_v10 = vsel %vm89_vm3, %v1631_v50, %v1630_v0  ;;  %v1545_v12 = vpack.c.bf16 %v1537_v58, %v1537_v58  ;;  %v1592_v24 = vunpack.c.l.b16 %v1544_v8 }
 0x19d   :  { %v1421_v34 = vsel %vm95_vm5, %v1420_v46, %v1419_v29  ;;  %v1634_v13 = vsel %vm92_vm4, %v1633_v55, %v1632_v10  ;;  %v1586_v46 = vunpack.c.l.b16 %v1538_v62  ;;  %v1588_v15 = vunpack.c.l.b16 %v1540_v5  ;;  %v1318_v29 = vld [vmem:[%s2953_s0 + $0x1e] sm:$0x1] }
 0x19e   :  { %v1423_v41 = vsel %vm98_vm6, %v1422_v17, %v1421_v34  ;;  %v1636_v17 = vsel %vm95_vm5, %v1635_v56, %v1634_v13  ;;  %v1591_v20 = vunpack.c.l.b16 %v1543_v11  ;;  %v1593_v25 = vunpack.c.l.b16 %v1545_v12  ;;  %v1321_v56 = vld [vmem:[%s2953_s0 + $0x36] sm:$0x1] }
 0x19f   :  { %v1424_v9 = vpack.c.b16 %v1423_v41, %v1423_v41  ;;  %v1638_v23 = vsel %vm98_vm6, %v1637_v57, %v1636_v17  ;;  %v1596_v31 = vrot.slane %v1588_v15, 6  ;;  %v1595_v33 = vsel %vm80_vm0, %v1594_v27, %v1586_v46 }
 0x1a0   :  { %v1639_v30 = vpack.c.b16 %v1638_v23, %v1638_v23  ;;  %v1602_v34 = vrot.slane %v1591_v20, 3  ;;  %v1604_v35 = vrot.slane %v1592_v24, 2  ;;  %v1606_v36 = vrot.slane %v1593_v25, 1  ;;  %v2413_v23 = vpop.xlane.xlu0 %1231  ;;  %v273_v24 = vld [vmem:[%s2954_s2 + $0x9] sm:$0x1] }
 0x1a1   :  { %v1429_v60 = vsel %vm132_vm7, %v1424_v9, 0  ;;  %v1597_v38 = vsel %vm83_vm1, %v1596_v31, %v1595_v33  ;;  %v1323_v39 = vpack.c.bf16 %v1315_v21, %v1315_v21  ;;  %v1326_v44 = vpack.c.bf16 %v1318_v29, %v1318_v29  ;;  %v274_v25 = vld [vmem:[%s2954_s2 + $0x11] sm:$0x1]  ;;  %v275_v29 = vld [vmem:[%s2954_s2 + $0x19] sm:$0x1] }
 0x1a2   :  { %v1644_v37 = vsel %vm132_vm7, %v1639_v30, 0  ;;  %v1599_v41 = vsel %vm86_vm2, %v1598_v32, %v1597_v38  ;;  %v960_v47 = vsel %vm95_vm5, %v959_v59, %v2311_v3  ;;  %v961_v9 = vrot.slane %v2291_v51, 1  ;;  %v276_v31 = vld [vmem:[%s2954_s2 + $0x21] sm:$0x1] }
 0x1a3   :  { %1653 = vmatpush.bf16.xpose.msrb.mxu0 %v1644_v37  ;;  %v1601_v48 = vsel %vm89_vm3, %v1600_v4, %v1599_v41  ;;  %v1371_v50 = vunpack.c.l.b16 %v1323_v39  ;;  %v1328_v57 = vpack.c.bf16 %v1320_v42, %v1320_v42  ;;  %v1374_v58 = vunpack.c.l.b16 %v1326_v44  ;;  %v278_v37 = vld [vmem:[%s2954_s2 + $0x31] sm:$0x1] }
 0x1a4   :  { %v1603_v49 = vsel %vm92_vm4, %v1602_v34, %v1601_v48  ;;  %v1379_v3 = vrot.slane %v1372_v53, 7  ;;  %v962_v51 = vsel %vm98_vm6, %v961_v9, %v960_v47  ;;  %v1329_v0 = vpack.c.bf16 %v1321_v56, %v1321_v56  ;;  %v277_v34 = vld [vmem:[%s2954_s2 + $0x29] sm:$0x1] }
 0x1a5   :  { %v1605_v55 = vsel %vm95_vm5, %v1604_v35, %v1603_v49  ;;  %v1383_v62 = vrot.slane %v1374_v58, 5  ;;  %v1376_v6 = vunpack.c.l.b16 %v1328_v57  ;;  %v963_v10 = vpack.c.b16 %v962_v51, %v962_v51 }
 0x1a6   :  { %v1607_v26 = vsel %vm98_vm6, %v1606_v36, %v1605_v55  ;;  %v1380_v5 = vsel %vm80_vm0, %v1379_v3, %v1371_v50  ;;  %v1330_v8 = vpack.c.bf16 %v1322_v63, %v1322_v63  ;;  %v1377_v13 = vunpack.c.l.b16 %v1329_v0 }
 0x1a7   :  { %v1382_v7 = vsel %vm83_vm1, %v1381_v61, %v1380_v5  ;;  %v1387_v46 = vrot.slane %v1376_v6, 3  ;;  %v281_v27 = vpack.c.bf16 %v273_v24, %v273_v24  ;;  %v282_v30 = vpack.c.bf16 %v274_v25, %v274_v25 }
 0x1a8   :  { %v1384_v12 = vsel %vm86_vm2, %v1383_v62, %v1382_v7  ;;  %v1378_v15 = vunpack.c.l.b16 %v1330_v8  ;;  %v1389_v17 = vrot.slane %v1377_v13, 2  ;;  %v280_v32 = vpack.c.bf16 %v272_v28, %v272_v28  ;;  %v378_v33 = vpop.xlane.xlu0 %377 }
 0x1a9   :  { %v283_v4 = vpack.c.bf16 %v275_v29, %v275_v29  ;;  %v284_v35 = vpack.c.bf16 %v276_v31, %v276_v31  ;;  %v392_v36 = vunpack.c.l.b16 %v282_v30  ;;  %1771 = vrcp.f32 %v378_v33 }
 0x1aa   :  { %1753 = vmatmul.msk.bf16.vlgmr.msrb.gmra.mxu1 %vm132_vm7, %v533_v16  ;;  %v1319_v16 = vld [vmem:[%s2953_s0 + $0x26] sm:$0x1]  ;;  %v1391_v19 = vrot.slane %v1378_v15, 1  ;;  %v285_v38 = vpack.c.bf16 %v277_v34, %v277_v34  ;;  %v390_v39 = vunpack.c.l.b16 %v280_v32  ;;  %v286_v41 = vpack.c.bf16 %v278_v37, %v278_v37 }
 0x1ab   :  { %1438 = vmatpush.bf16.xpose.msrb.mxu1 %v1429_v60  ;;  %v1327_v45 = vpack.c.bf16 %v1319_v16, %v1319_v16  ;;  %v1608_v60 = vpack.c.b16 %v1607_v26, %v1607_v26  ;;  %v391_v16 = vunpack.c.l.b16 %v281_v27  ;;  %v393_v42 = vunpack.c.l.b16 %v283_v4 }
 0x1ac   :  { %v394_v43 = vunpack.c.l.b16 %v284_v35  ;;  %v395_v47 = vunpack.c.l.b16 %v285_v38  ;;  %v400_v9 = vrot.slane %v392_v36, 6  ;;  %v396_v48 = vunpack.c.l.b16 %v286_v41 }
 0x1ad   :  { %v1375_v59 = vunpack.c.l.b16 %v1327_v45  ;;  %1763 = vmatmul.msk.bf16.vlgmr.msrb.gmra.mxu0 %vm132_vm7, %v1608_v60  ;;  %v398_v44 = vrot.slane %v391_v16, 7  ;;  %v287_v45 = vpack.c.bf16 %v279_v40, %v279_v40  ;;  %v402_v50 = vrot.slane %v393_v42, 5 }
 0x1ae   :  { %v404_v53 = vrot.slane %v394_v43, 4  ;;  %v406_v56 = vrot.slane %v395_v47, 3  ;;  %v408_v58 = vrot.slane %v396_v48, 2  ;;  %v702_v48 = vld [vmem:[%s2954_s2 + $0x3] sm:$0x1] }
 0x1af   :  { %v1385_v11 = vrot.slane %v1375_v59, 4  ;;  %v399_v49 = vsel %vm80_vm0, %v398_v44, %v390_v39  ;;  %v397_v54 = vunpack.c.l.b16 %v287_v45  ;;  %v1772_v26 = vpop.eup %1771  ;;  %v703_v44 = vld [vmem:[%s2954_s2 + $0xb] sm:$0x1]  ;;  %v704_v45 = vld [vmem:[%s2954_s2 + $0x13] sm:$0x1] }
 0x1b0   :  { %v401_v55 = vsel %vm83_vm1, %v400_v9, %v399_v49  ;;  %v380_v61 = vmul.f32 %v1772_v26, %v2179_v52  ;;  %v711_v47 = vpack.c.bf16 %v703_v44, %v703_v44  ;;  %v705_v49 = vld [vmem:[%s2954_s2 + $0x1b] sm:$0x1]  ;;  %v707_v26 = vld [vmem:[%s2954_s2 + $0x2b] sm:$0x1] }
 0x1b1   :  { %v1386_v14 = vsel %vm89_vm3, %v1385_v11, %v1384_v12  ;;  %v403_v57 = vsel %vm86_vm2, %v402_v50, %v401_v55  ;;  %v410_v3 = vrot.slane %v397_v54, 1  ;;  %v712_v50 = vpack.c.bf16 %v704_v45, %v704_v45  ;;  %v706_v54 = vld [vmem:[%s2954_s2 + $0x23] sm:$0x1] }
 0x1b2   :  { %v1388_v18 = vsel %vm92_vm4, %v1387_v46, %v1386_v14  ;;  %v405_v59 = vsel %vm89_vm3, %v404_v53, %v403_v57  ;;  %v381_v5 = vpack.c.bf16 %v380_v61, %v380_v61  ;;  %v710_v55 = vpack.c.bf16 %v702_v48, %v702_v48 }
 0x1b3   :  { %v1390_v20 = vsel %vm95_vm5, %v1389_v17, %v1388_v18  ;;  %v407_v51 = vsel %vm92_vm4, %v406_v56, %v405_v59  ;;  %v713_v56 = vpack.c.bf16 %v705_v49, %v705_v49  ;;  %v821_v57 = vunpack.c.l.b16 %v711_v47 }
 0x1b4   :  { %v1392_v21 = vsel %vm98_vm6, %v1391_v19, %v1390_v20  ;;  %v409_v60 = vsel %vm95_vm5, %v408_v58, %v407_v51  ;;  %v802_v20 = vpop.xlane.xlu2 %801  ;;  %v1233_v58 = vsub.f32 %v2142_v2, %v2413_v23  ;;  %v714_v59 = vpack.c.bf16 %v706_v54, %v706_v54 }
 0x1b5   :  { %v1393_v22 = vpack.c.b16 %v1392_v21, %v1392_v21  ;;  %v411_v62 = vsel %vm98_vm6, %v410_v3, %v409_v60  ;;  %v803_v24 = vsub.f32 %v2188_v1, %v802_v20  ;;  %v822_v3 = vunpack.c.l.b16 %v712_v50  ;;  %v708_v60 = vld [vmem:[%s2954_s2 + $0x33] sm:$0x1] }
 0x1b6   :  { %v412_v63 = vpack.c.b16 %v411_v62, %v411_v62  ;;  %v715_v61 = vpack.c.bf16 %v707_v26, %v707_v26  ;;  %v820_v62 = vunpack.c.l.b16 %v710_v55  ;;  %v824_v2 = vunpack.c.l.b16 %v714_v59 }
 0x1b7   :  { %v804_v29 = vmul.f32 1.442695, %v803_v24  ;;  %v828_v23 = vrot.slane %v821_v57, 7 }
 0x1b8   :  { %v417_v0 = vsel %vm199_vm8, %v412_v63, 0  ;;  %v823_v63 = vunpack.c.l.b16 %v713_v56 }
 0x1b9   :  { %426 = vmatpush.bf16.msra.mxu3 %v417_v0  ;;  %1773 = vpow2.f32 %v804_v29  ;;  %v709_v0 = vld [vmem:[%s2954_s2 + $0x3b] sm:$0x1] }
 0x1ba   :  { %1757 = vmatmul.msk.bf16.vlgmr.msra.gmra.mxu1 %vm132_vm7, %v963_v10 }
 0x1bc   :  { %1752 = vmatmul.msk.bf16.vlgmr.msra.gmra.mxu3 %vm132_vm7, %v381_v5  ;;  %v716_v5 = vpack.c.bf16 %v708_v60, %v708_v60 }
 0x1bf   :  { %v2491_v32 = vpop.eup %1773 }
 0x1c0   :  { %v806_v33 = vsel %vm132_vm7, %v2491_v32, 0.0 }
 0x1ca   :  { %1761 = vmatmul.msk.bf16.vlgmr.msrb.gmra.mxu1 %vm132_vm7, %v1393_v22 }
 0x217   :  { %v212_v6 = vpop.f32.mrf.mxu1 }
 0x218   :  { %v217_v7 = vrot.slane %v212_v6, 1  ;;  %v218_v10 = vrot.slane %v212_v6, 2  ;;  %v219_v11 = vrot.slane %v212_v6, 3  ;;  %232 = vst.msk [vmem:[%s2955_s3] sm:$0x1] %vm231_vm9, %v212_v6  ;;  %v220_v52 = vrot.slane %v212_v6, 4 }
 0x219   :  { %v221_v8 = vrot.slane %v212_v6, 5  ;;  %v222_v12 = vrot.slane %v212_v6, 6  ;;  %v223_v13 = vrot.slane %v212_v6, 7  ;;  %v830_v6 = vrot.slane %v822_v3, 6 }
 0x21a   :  { %233 = vst.msk [vmem:[%s2955_s3 + $0x8] sm:$0x1] %vm231_vm9, %v217_v7  ;;  %v717_v7 = vpack.c.bf16 %v709_v0, %v709_v0 }
 0x21b   :  { %234 = vst.msk [vmem:[%s2955_s3 + $0x10] sm:$0x1] %vm231_vm9, %v218_v10  ;;  %v825_v10 = vunpack.c.l.b16 %v715_v61 }
 0x21c   :  { %235 = vst.msk [vmem:[%s2955_s3 + $0x18] sm:$0x1] %vm231_vm9, %v219_v11  ;;  %v832_v11 = vrot.slane %v823_v63, 5 }
 0x21d   :  { %236 = vst.msk [vmem:[%s2955_s3 + $0x20] sm:$0x1] %vm231_vm9, %v220_v52  ;;  %v826_v52 = vunpack.c.l.b16 %v716_v5 }
 0x21e   :  { %237 = vst.msk [vmem:[%s2955_s3 + $0x28] sm:$0x1] %vm231_vm9, %v221_v8  ;;  %v829_v8 = vsel %vm80_vm0, %v828_v23, %v820_v62 }
 0x21f   :  { %238 = vst.msk [vmem:[%s2955_s3 + $0x30] sm:$0x1] %vm231_vm9, %v222_v12  ;;  %v214_v46 = vpop.f32.mrf.mxu1  ;;  %v834_v12 = vrot.slane %v824_v2, 4 }
 0x220   :  { %239 = vst.msk [vmem:[%s2955_s3 + $0x38] sm:$0x1] %vm231_vm9, %v223_v13  ;;  %v1234_v13 = vmul.f32 1.442695, %v1233_v58  ;;  %v827_v46 = vunpack.c.l.b16 %v717_v7 }
 0x222   :  { %v840_v20 = vrot.slane %v827_v46, 1 }
 0x227   :  { %v580_v14 = vpop.f32.mrf.mxu1 }
 0x228   :  { %v584_v15 = vmul.f32 0.35355338, %v580_v14  ;;  %v831_v14 = vsel %vm83_vm1, %v830_v6, %v829_v8 }
 0x22a   :  { %v585_v17 = vsel %vm132_vm7, %v584_v15, -inf  ;;  %v1655_v19 = vpop.f32.mrf.mxu0 }
 0x22b   :  { %586 = vmax.xlane.f32.xlu1 %v585_v17  ;;  %v2487_v28 = vmul.f32 0.35355338, %v1655_v19  ;;  %v833_v17 = vsel %vm86_vm2, %v832_v11, %v831_v14 }
 0x22c   :  { %v835_v19 = vsel %vm89_vm3, %v834_v12, %v833_v17 }
 0x22d   :  { %v1660_v31 = vsel %vm132_vm7, %v2487_v28, -inf }
 0x22f   :  { %v582_v18 = vpop.f32.mrf.mxu1 }
 0x230   :  { %v838_v18 = vrot.slane %v826_v52, 2 }
 0x232   :  { %v1657_v27 = vpop.f32.mrf.mxu0 }
 0x237   :  { %v1010_v21 = vpop.f32.mrf.mxu1 }
 0x238   :  { %v2482_v22 = vmul.f32 0.35355338, %v1010_v21 }
 0x23a   :  { %v1015_v25 = vsel %vm132_vm7, %v2482_v22, -inf }
 0x23b   :  { %1016 = vmax.xlane.f32.xlu2 %v1015_v25 }
 0x23f   :  { %v1012_v30 = vpop.f32.mrf.mxu1  ;;  %v428_v35 = vpop.f32.mrf.mxu3 }
 0x240   :  { %v433_v36 = vrot.slane %v428_v35, 1  ;;  %v434_v37 = vrot.slane %v428_v35, 2  ;;  %v435_v38 = vrot.slane %v428_v35, 3  ;;  %447 = vst.msk [vmem:[%s2955_s3 + $0x1] sm:$0x1] %vm231_vm9, %v428_v35  ;;  %v436_v39 = vrot.slane %v428_v35, 4 }
 0x241   :  { %v437_v40 = vrot.slane %v428_v35, 5  ;;  %v438_v41 = vrot.slane %v428_v35, 6  ;;  %v439_v42 = vrot.slane %v428_v35, 7  ;;  %v492_v35 = vld [vmem:[%s2954_s2 + $0x2a] sm:$0x1] }
 0x242   :  { %448 = vst.msk [vmem:[%s2955_s3 + $0x9] sm:$0x1] %vm231_vm9, %v433_v36  ;;  %v500_v44 = vpack.c.bf16 %v492_v35, %v492_v35  ;;  %v1136_v35 = vld [vmem:[%s2954_s2 + $0x25] sm:$0x1] }
 0x243   :  { %1661 = vmax.xlane.f32.xlu2 %v1660_v31  ;;  %449 = vst.msk [vmem:[%s2955_s3 + $0x11] sm:$0x1] %vm231_vm9, %v434_v37  ;;  %v487_v31 = vld [vmem:[%s2954_s2 + $0x2] sm:$0x1] }
 0x244   :  { %450 = vst.msk [vmem:[%s2955_s3 + $0x19] sm:$0x1] %vm231_vm9, %v435_v38  ;;  %v495_v36 = vpack.c.bf16 %v487_v31, %v487_v31  ;;  %v610_v57 = vunpack.c.l.b16 %v500_v44  ;;  %v1133_v31 = vld [vmem:[%s2954_s2 + $0xd] sm:$0x1] }
 0x245   :  { %451 = vst.msk [vmem:[%s2955_s3 + $0x21] sm:$0x1] %vm231_vm9, %v436_v39 }
 0x246   :  { %452 = vst.msk [vmem:[%s2955_s3 + $0x29] sm:$0x1] %vm231_vm9, %v437_v40  ;;  %v493_v40 = vld [vmem:[%s2954_s2 + $0x32] sm:$0x1]  ;;  %v605_v48 = vunpack.c.l.b16 %v495_v36  ;;  %v621_v0 = vrot.slane %v610_v57, 3 }
 0x247   :  { %v1440_v4 = vpop.f32.mrf.mxu1  ;;  %453 = vst.msk [vmem:[%s2955_s3 + $0x31] sm:$0x1] %vm231_vm9, %v438_v41  ;;  %v430_v43 = vpop.f32.mrf.mxu3  ;;  %v494_v41 = vld [vmem:[%s2954_s2 + $0x3a] sm:$0x1]  ;;  %v501_v47 = vpack.c.bf16 %v493_v40, %v493_v40  ;;  %v1144_v40 = vpack.c.bf16 %v1136_v35, %v1136_v35 }
 0x248   :  { %v2493_v16 = vmul.f32 0.35355338, %v1440_v4  ;;  %454 = vst.msk [vmem:[%s2955_s3 + $0x39] sm:$0x1] %vm231_vm9, %v439_v42  ;;  %v488_v4 = vld [vmem:[%s2954_s2 + $0xa] sm:$0x1] }
 0x249   :  { %v496_v37 = vpack.c.bf16 %v488_v4, %v488_v4  ;;  %v611_v58 = vunpack.c.l.b16 %v501_v47  ;;  %v1134_v4 = vld [vmem:[%s2954_s2 + $0x15] sm:$0x1] }
 0x24a   :  { %v1445_v1 = vsel %vm132_vm7, %v2493_v16, -inf }
 0x24b   :  { %1446 = vmax.xlane.f32.xlu1 %v1445_v1  ;;  %807 = vadd.xlane.f32.xlu2 %v806_v33  ;;  %v489_v1 = vld [vmem:[%s2954_s2 + $0x12] sm:$0x1]  ;;  %v490_v33 = vld [vmem:[%s2954_s2 + $0x1a] sm:$0x1]  ;;  %v606_v49 = vunpack.c.l.b16 %v496_v37  ;;  %v623_v5 = vrot.slane %v611_v58, 2 }
 0x24c   :  { %v497_v38 = vpack.c.bf16 %v489_v1, %v489_v1  ;;  %v498_v42 = vpack.c.bf16 %v490_v33, %v490_v33  ;;  %v1141_v1 = vpack.c.bf16 %v1133_v31, %v1133_v31  ;;  %v1135_v33 = vld [vmem:[%s2954_s2 + $0x1d] sm:$0x1]  ;;  %v918_v58 = vld [vmem:[%s2954_s2 + $0xc] sm:$0x1] }
 0x24d   :  { %v613_v59 = vrot.slane %v606_v49, 7  ;;  %v1143_v37 = vpack.c.bf16 %v1135_v33, %v1135_v33  ;;  %v1254_v49 = vunpack.c.l.b16 %v1144_v40 }
 0x24e   :  { %v607_v54 = vunpack.c.l.b16 %v497_v38  ;;  %v608_v55 = vunpack.c.l.b16 %v498_v42  ;;  %v1251_v38 = vunpack.c.l.b16 %v1141_v1  ;;  %v1138_v42 = vld [vmem:[%s2954_s2 + $0x35] sm:$0x1] }
 0x24f   :  { %v1442_v34 = vpop.f32.mrf.mxu1  ;;  %v614_v63 = vsel %vm80_vm0, %v613_v59, %v605_v48  ;;  %v1146_v48 = vpack.c.bf16 %v1138_v42, %v1138_v42 }
 0x250   :  { %v491_v34 = vld [vmem:[%s2954_s2 + $0x22] sm:$0x1]  ;;  %v617_v60 = vrot.slane %v608_v55, 5  ;;  %v1258_v47 = vrot.slane %v1251_v38, 7 }
 0x251   :  { %v499_v43 = vpack.c.bf16 %v491_v34, %v491_v34  ;;  %v1142_v34 = vpack.c.bf16 %v1134_v4, %v1134_v4 }
 0x253   :  { %v609_v56 = vunpack.c.l.b16 %v499_v43 }
 0x255   :  { %v619_v61 = vrot.slane %v609_v56, 4 }
 0x29e   :  { %v587_v9 = vpop.xlane.xlu1 %586 }
 0x29f   :  { %v588_v53 = vsub.f32 %v584_v15, %v587_v9  ;;  %v836_v15 = vrot.slane %v825_v10, 3  ;;  %v502_v9 = vpack.c.bf16 %v494_v41, %v494_v41  ;;  %v1252_v41 = vunpack.c.l.b16 %v1142_v34 }
 0x2a1   :  { %v589_v51 = vmul.f32 1.442695, %v588_v53  ;;  %v837_v21 = vsel %vm92_vm4, %v836_v15, %v835_v19  ;;  %v612_v26 = vunpack.c.l.b16 %v502_v9  ;;  %v1139_v9 = vld [vmem:[%s2954_s2 + $0x3d] sm:$0x1] }
 0x2a2   :  { %v839_v25 = vsel %vm95_vm5, %v838_v18, %v837_v21 }
 0x2a3   :  { %1775 = vpow2.f32 %v589_v51  ;;  %v841_v29 = vsel %vm98_vm6, %v840_v20, %v839_v25  ;;  %v615_v51 = vrot.slane %v607_v54, 6  ;;  %v625_v23 = vrot.slane %v612_v26, 1 }
 0x2a4   :  { %1777 = vpow2.f32 %v1234_v13  ;;  %v842_v30 = vpack.c.b16 %v841_v29, %v841_v29  ;;  %v1147_v54 = vpack.c.bf16 %v1139_v9, %v1139_v9  ;;  %v1256_v26 = vunpack.c.l.b16 %v1146_v48 }
 0x2a6   :  { %v847_v39 = vsel %vm199_vm8, %v842_v30, 0 }
 0x2a7   :  { %856 = vmatpush.bf16.msrb.mxu2 %v847_v39  ;;  %v1137_v39 = vld [vmem:[%s2954_s2 + $0x2d] sm:$0x1] }
 0x2a8   :  { %v1145_v43 = vpack.c.bf16 %v1137_v39, %v1137_v39 }
 0x2a9   :  { %v2562_v24 = vpop.eup %1775 }
 0x2aa   :  { %v591_v27 = vsel %vm132_vm7, %v2562_v24, 0.0  ;;  %v2593_v50 = vpop.eup %1777  ;;  %v1255_v55 = vunpack.c.l.b16 %v1145_v43 }
 0x2ab   :  { %592 = vadd.xlane.f32.xlu1 %v591_v27  ;;  %v1236_v62 = vsel %vm132_vm7, %v2593_v50, 0.0 }
 0x2ae   :  { %v1017_v45 = vpop.xlane.xlu2 %1016 }
 0x2af   :  { %v1018_v53 = vsub.f32 %v2482_v22, %v1017_v45  ;;  %v616_v22 = vsel %vm83_vm1, %v615_v51, %v614_v63  ;;  %v1253_v45 = vunpack.c.l.b16 %v1143_v37  ;;  %v919_v51 = vld [vmem:[%s2954_s2 + $0x14] sm:$0x1]  ;;  %v917_v63 = vld [vmem:[%s2954_s2 + $0x4] sm:$0x1] }
 0x2b0   :  { %v618_v2 = vsel %vm86_vm2, %v617_v60, %v616_v22  ;;  %v926_v60 = vpack.c.bf16 %v918_v58, %v918_v58  ;;  %v927_v22 = vpack.c.bf16 %v919_v51, %v919_v51 }
 0x2b1   :  { %v1019_v3 = vmul.f32 1.442695, %v1018_v53  ;;  %v620_v6 = vsel %vm89_vm3, %v619_v61, %v618_v2  ;;  %v1260_v53 = vrot.slane %v1252_v41, 6  ;;  %v1262_v57 = vrot.slane %v1253_v45, 5  ;;  %v1564_v41 = vld [vmem:[%s2954_s2 + $0x17] sm:$0x1] }
 0x2b2   :  { %v622_v10 = vsel %vm92_vm4, %v621_v0, %v620_v6  ;;  %v920_v0 = vld [vmem:[%s2954_s2 + $0x1c] sm:$0x1]  ;;  %v921_v6 = vld [vmem:[%s2954_s2 + $0x24] sm:$0x1]  ;;  %v1565_v45 = vld [vmem:[%s2954_s2 + $0x1f] sm:$0x1]  ;;  %v1572_v9 = vpack.c.bf16 %v1564_v41, %v1564_v41 }
 0x2b3   :  { %1779 = vpow2.f32 %v1019_v3  ;;  %1237 = vadd.xlane.f32.xlu1 %v1236_v62  ;;  %v624_v52 = vsel %vm95_vm5, %v623_v5, %v622_v10  ;;  %v1264_v3 = vrot.slane %v1254_v49, 4  ;;  %v1266_v62 = vrot.slane %v1255_v55, 3 }
 0x2b4   :  { %v626_v8 = vsel %vm98_vm6, %v625_v23, %v624_v52  ;;  %v1257_v5 = vunpack.c.l.b16 %v1147_v54  ;;  %v1268_v23 = vrot.slane %v1256_v26, 2  ;;  %v928_v10 = vpack.c.bf16 %v920_v0, %v920_v0  ;;  %v1569_v0 = vld [vmem:[%s2954_s2 + $0x3f] sm:$0x1] }
 0x2b5   :  { %v627_v46 = vpack.c.b16 %v626_v8, %v626_v8  ;;  %v922_v8 = vld [vmem:[%s2954_s2 + $0x2c] sm:$0x1]  ;;  %v1573_v55 = vpack.c.bf16 %v1565_v45, %v1565_v45 }
 0x2b6   :  { %v1662_v7 = vpop.xlane.xlu2 %1661 }
 0x2b7   :  { %v1663_v11 = vsub.f32 %v2487_v28, %v1662_v7  ;;  %v632_v15 = vsel %vm199_vm8, %v627_v46, 0  ;;  %v925_v7 = vpack.c.bf16 %v917_v63, %v917_v63  ;;  %v924_v46 = vld [vmem:[%s2954_s2 + $0x3c] sm:$0x1] }
 0x2b8   :  { %641 = vmatpush.bf16.msrb.mxu3 %v632_v15  ;;  %v1037_v15 = vunpack.c.l.b16 %v927_v22 }
 0x2b9   :  { %v2606_v12 = vpop.eup %1779  ;;  %v1664_v13 = vmul.f32 1.442695, %v1663_v11  ;;  %v1036_v11 = vunpack.c.l.b16 %v926_v60  ;;  %v1568_v60 = vld [vmem:[%s2954_s2 + $0x37] sm:$0x1] }
 0x2ba   :  { %v1021_v14 = vsel %vm132_vm7, %v2606_v12, 0.0  ;;  %v1576_v22 = vpack.c.bf16 %v1568_v60, %v1568_v60 }
 0x2bb   :  { %1781 = vpow2.f32 %v1664_v13  ;;  %1022 = vadd.xlane.f32.xlu0 %v1021_v14  ;;  %v923_v13 = vld [vmem:[%s2954_s2 + $0x34] sm:$0x1]  ;;  %v929_v14 = vpack.c.bf16 %v921_v6, %v921_v6 }
 0x2be   :  { %v1447_v17 = vpop.xlane.xlu1 %1446  ;;  %v808_v18 = vpop.xlane.xlu2 %807 }
 0x2bf   :  { %v1448_v28 = vsub.f32 %v2493_v16, %v1447_v17  ;;  %1783 = vrcp.f32 %v808_v18  ;;  %v930_v18 = vpack.c.bf16 %v922_v8, %v922_v8 }
 0x2c1   :  { %v2612_v19 = vpop.eup %1781  ;;  %v1449_v20 = vmul.f32 1.442695, %v1448_v28  ;;  %v931_v28 = vpack.c.bf16 %v923_v13, %v923_v13  ;;  %v1040_v31 = vunpack.c.l.b16 %v930_v18 }
 0x2c2   :  { %v1666_v21 = vsel %vm132_vm7, %v2612_v19, 0.0 }
 0x2c3   :  { %1785 = vpow2.f32 %v1449_v20  ;;  %1667 = vadd.xlane.f32.xlu0 %v1666_v21  ;;  %v932_v20 = vpack.c.bf16 %v924_v46, %v924_v46  ;;  %v1035_v21 = vunpack.c.l.b16 %v925_v7  ;;  %v1041_v4 = vunpack.c.l.b16 %v931_v28 }
 0x2c4   :  { %v1051_v38 = vrot.slane %v1040_v31, 3  ;;  %v1351_v31 = vld [vmem:[%s2954_s2 + $0x26] sm:$0x1] }
 0x2c5   :  { %v1784_v25 = vpop.eup %1783  ;;  %v1042_v1 = vunpack.c.l.b16 %v932_v20  ;;  %v1053_v39 = vrot.slane %v1041_v4, 2  ;;  %v1347_v20 = vld [vmem:[%s2954_s2 + $0x6] sm:$0x1] }
 0x2c6   :  { %v810_v27 = vmul.f32 %v1784_v25, %v2491_v32  ;;  %v1132_v32 = vld [vmem:[%s2954_s2 + $0x5] sm:$0x1]  ;;  %v1038_v25 = vunpack.c.l.b16 %v928_v10  ;;  %v1348_v10 = vld [vmem:[%s2954_s2 + $0xe] sm:$0x1]  ;;  %v1355_v4 = vpack.c.bf16 %v1347_v20, %v1347_v20 }
 0x2c7   :  { %v1140_v36 = vpack.c.bf16 %v1132_v32, %v1132_v32  ;;  %v1270_v32 = vrot.slane %v1257_v5, 1  ;;  %v1055_v40 = vrot.slane %v1042_v1, 1  ;;  %v1683_v5 = vunpack.c.l.b16 %v1573_v55 }
 0x2c8   :  { %v811_v29 = vpack.c.bf16 %v810_v27, %v810_v27  ;;  %v1039_v27 = vunpack.c.l.b16 %v929_v14  ;;  %v1047_v34 = vrot.slane %v1038_v25, 5  ;;  %v1349_v14 = vld [vmem:[%s2954_s2 + $0x16] sm:$0x1] }
 0x2c9   :  { %v2617_v30 = vpop.eup %1785  ;;  %v1250_v44 = vunpack.c.l.b16 %v1140_v36  ;;  %v1563_v36 = vld [vmem:[%s2954_s2 + $0xf] sm:$0x1]  ;;  %v1692_v13 = vrot.slane %v1683_v5, 5  ;;  %v1357_v25 = vpack.c.bf16 %v1349_v14, %v1349_v14 }
 0x2ca   :  { %1756 = vmatmul.msk.bf16.vlgmr.msrb.gmra.mxu2 %vm132_vm7, %v811_v29  ;;  %v1451_v16 = vsel %vm132_vm7, %v2617_v30, 0.0  ;;  %v1043_v29 = vrot.slane %v1036_v11, 7  ;;  %v1049_v35 = vrot.slane %v1039_v27, 4  ;;  %v1577_v11 = vpack.c.bf16 %v1569_v0, %v1569_v0 }
 0x2cb   :  { %1452 = vadd.xlane.f32.xlu2 %v1451_v16  ;;  %v1259_v56 = vsel %vm80_vm0, %v1258_v47, %v1250_v44  ;;  %v1045_v16 = vrot.slane %v1037_v15, 6  ;;  %v1562_v44 = vld [vmem:[%s2954_s2 + $0x7] sm:$0x1]  ;;  %v1571_v47 = vpack.c.bf16 %v1563_v36, %v1563_v36  ;;  %v1356_v15 = vpack.c.bf16 %v1348_v10, %v1348_v10 }
 0x2cc   :  { %v1261_v59 = vsel %vm83_vm1, %v1260_v53, %v1259_v56  ;;  %v1044_v33 = vsel %vm80_vm0, %v1043_v29, %v1035_v21  ;;  %v1566_v53 = vld [vmem:[%s2954_s2 + $0x27] sm:$0x1]  ;;  %v1570_v54 = vpack.c.bf16 %v1562_v44, %v1562_v44  ;;  %v1350_v21 = vld [vmem:[%s2954_s2 + $0x1e] sm:$0x1]  ;;  %v1359_v36 = vpack.c.bf16 %v1351_v31, %v1351_v31 }
 0x2cd   :  { %v1263_v61 = vsel %vm86_vm2, %v1262_v57, %v1261_v59  ;;  %v1046_v37 = vsel %vm83_vm1, %v1045_v16, %v1044_v33  ;;  %v1567_v57 = vld [vmem:[%s2954_s2 + $0x2f] sm:$0x1]  ;;  %v1574_v58 = vpack.c.bf16 %v1566_v53, %v1566_v53  ;;  %v1681_v26 = vunpack.c.l.b16 %v1571_v47  ;;  %v1352_v33 = vld [vmem:[%s2954_s2 + $0x2e] sm:$0x1] }
 0x2ce   :  { %v1265_v2 = vsel %vm89_vm3, %v1264_v3, %v1263_v61  ;;  %v1048_v42 = vsel %vm86_vm2, %v1047_v34, %v1046_v37  ;;  %v1682_v59 = vunpack.c.l.b16 %v1572_v9  ;;  %v1575_v61 = vpack.c.bf16 %v1567_v57, %v1567_v57  ;;  %v1353_v34 = vld [vmem:[%s2954_s2 + $0x36] sm:$0x1] }
 0x2cf   :  { %v1267_v52 = vsel %vm92_vm4, %v1266_v62, %v1265_v2  ;;  %v1050_v48 = vsel %vm89_vm3, %v1049_v35, %v1048_v42  ;;  %v1680_v62 = vunpack.c.l.b16 %v1570_v54  ;;  %v1684_v2 = vunpack.c.l.b16 %v1574_v58  ;;  %v1354_v35 = vld [vmem:[%s2954_s2 + $0x3e] sm:$0x1] }
 0x2d0   :  { %v1269_v17 = vsel %vm95_vm5, %v1268_v23, %v1267_v52  ;;  %v1052_v56 = vsel %vm92_vm4, %v1051_v38, %v1050_v48  ;;  %v1685_v6 = vunpack.c.l.b16 %v1575_v61  ;;  %v1688_v7 = vrot.slane %v1681_v26, 7 }
 0x2d1   :  { %v1271_v43 = vsel %vm98_vm6, %v1270_v32, %v1269_v17  ;;  %v1054_v3 = vsel %vm95_vm5, %v1053_v39, %v1052_v56  ;;  %v1686_v52 = vunpack.c.l.b16 %v1576_v22  ;;  %v1690_v8 = vrot.slane %v1682_v59, 6 }
 0x2d2   :  { %v1272_v49 = vpack.c.b16 %v1271_v43, %v1271_v43  ;;  %v1056_v63 = vsel %vm98_vm6, %v1055_v40, %v1054_v3  ;;  %v1689_v17 = vsel %vm80_vm0, %v1688_v7, %v1680_v62  ;;  %v1694_v18 = vrot.slane %v1684_v2, 4 }
 0x2d3   :  { %v1057_v23 = vpack.c.b16 %v1056_v63, %v1056_v63  ;;  %v1691_v27 = vsel %vm83_vm1, %v1690_v8, %v1689_v17  ;;  %v1696_v29 = vrot.slane %v1685_v6, 3  ;;  %v1698_v16 = vrot.slane %v1686_v52, 2 }
 0x2d4   :  { %v1277_v51 = vsel %vm199_vm8, %v1272_v49, 0  ;;  %v1358_v1 = vpack.c.bf16 %v1350_v21, %v1350_v21  ;;  %v1466_v32 = vunpack.c.l.b16 %v1356_v15  ;;  %v1467_v37 = vunpack.c.l.b16 %v1357_v25 }
 0x2d5   :  { %1286 = vmatpush.bf16.msra.mxu2 %v1277_v51  ;;  %v1062_v46 = vsel %vm199_vm8, %v1057_v23, 0  ;;  %v1687_v38 = vunpack.c.l.b16 %v1577_v11  ;;  %v1693_v39 = vsel %vm86_vm2, %v1692_v13, %v1691_v27  ;;  %v1360_v40 = vpack.c.bf16 %v1352_v33, %v1352_v33 }
 0x2d6   :  { %1071 = vmatpush.bf16.msra.mxu3 %v1062_v46  ;;  %v1361_v41 = vpack.c.bf16 %v1353_v34, %v1353_v34  ;;  %v1362_v42 = vpack.c.bf16 %v1354_v35, %v1354_v35  ;;  %v1465_v43 = vunpack.c.l.b16 %v1355_v4  ;;  %v1468_v44 = vunpack.c.l.b16 %v1358_v1 }
 0x2d7   :  { %v1469_v45 = vunpack.c.l.b16 %v1359_v36  ;;  %v1473_v47 = vrot.slane %v1466_v32, 7  ;;  %v1475_v9 = vrot.slane %v1467_v37, 6  ;;  %v1470_v48 = vunpack.c.l.b16 %v1360_v40 }
 0x2d8   :  { %v1471_v49 = vunpack.c.l.b16 %v1361_v41  ;;  %v1472_v53 = vunpack.c.l.b16 %v1362_v42  ;;  %v1695_v54 = vsel %vm89_vm3, %v1694_v18, %v1693_v39  ;;  %v1477_v56 = vrot.slane %v1468_v44, 5 }
 0x2d9   :  { %v1474_v55 = vsel %vm80_vm0, %v1473_v47, %v1465_v43  ;;  %v1479_v57 = vrot.slane %v1469_v45, 4  ;;  %v1697_v58 = vsel %vm92_vm4, %v1696_v29, %v1695_v54  ;;  %v1481_v3 = vrot.slane %v1470_v48, 3 }
 0x2da   :  { %v1476_v59 = vsel %vm83_vm1, %v1475_v9, %v1474_v55  ;;  %v1483_v51 = vrot.slane %v1471_v49, 2  ;;  %v1485_v60 = vrot.slane %v1472_v53, 1  ;;  %v1699_v0 = vsel %vm95_vm5, %v1698_v16, %v1697_v58 }
 0x2db   :  { %v1478_v63 = vsel %vm86_vm2, %v1477_v56, %v1476_v59  ;;  %v1700_v22 = vrot.slane %v1687_v38, 1 }
 0x2dc   :  { %v1480_v5 = vsel %vm89_vm3, %v1479_v57, %v1478_v63 }
 0x2dd   :  { %v1482_v23 = vsel %vm92_vm4, %v1481_v3, %v1480_v5  ;;  %v1701_v6 = vsel %vm98_vm6, %v1700_v22, %v1699_v0 }
 0x2de   :  { %v1484_v7 = vsel %vm95_vm5, %v1483_v51, %v1482_v23  ;;  %v1702_v10 = vpack.c.b16 %v1701_v6, %v1701_v6 }
 0x2e0   :  { %v1707_v52 = vsel %vm199_vm8, %v1702_v10, 0 }
 0x2e1   :  { %1716 = vmatpush.bf16.msrb.mxu2 %v1707_v52 }
 0x31e   :  { %v593_v28 = vpop.xlane.xlu1 %592 }
 0x31f   :  { %1787 = vrcp.f32 %v593_v28 }
 0x325   :  { %v1788_v26 = vpop.eup %1787 }
 0x326   :  { %v595_v61 = vmul.f32 %v1788_v26, %v2562_v24  ;;  %v1238_v62 = vpop.xlane.xlu1 %1237  ;;  %v1486_v24 = vsel %vm98_vm6, %v1485_v60, %v1484_v7 }
 0x327   :  { %1789 = vrcp.f32 %v1238_v62  ;;  %v1487_v11 = vpack.c.b16 %v1486_v24, %v1486_v24 }
 0x328   :  { %v596_v2 = vpack.c.bf16 %v595_v61, %v595_v61 }
 0x329   :  { %v1492_v13 = vsel %vm199_vm8, %v1487_v11, 0 }
 0x32a   :  { %1754 = vmatmul.msk.bf16.vlgmr.msrb.gmra.mxu3 %vm132_vm7, %v596_v2 }
 0x32b   :  { %1501 = vmatpush.bf16.msrb.mxu3 %v1492_v13 }
 0x32d   :  { %v1790_v8 = vpop.eup %1789 }
 0x32e   :  { %v1240_v46 = vmul.f32 %v1790_v8, %v2593_v50  ;;  %v1023_v14 = vpop.xlane.xlu0 %1022 }
 0x32f   :  { %1791 = vrcp.f32 %v1023_v14 }
 0x330   :  { %v1241_v15 = vpack.c.bf16 %v1240_v46, %v1240_v46 }
 0x332   :  { %1760 = vmatmul.msk.bf16.vlgmr.msra.gmra.mxu2 %vm132_vm7, %v1241_v15 }
 0x335   :  { %v1792_v17 = vpop.eup %1791 }
 0x336   :  { %v1025_v18 = vmul.f32 %v1792_v17, %v2606_v12  ;;  %v1668_v28 = vpop.xlane.xlu0 %1667 }
 0x337   :  { %1793 = vrcp.f32 %v1668_v28 }
 0x338   :  { %v1026_v20 = vpack.c.bf16 %v1025_v18, %v1025_v18 }
 0x33a   :  { %1758 = vmatmul.msk.bf16.vlgmr.msra.gmra.mxu3 %vm132_vm7, %v1026_v20 }
 0x33d   :  { %v1794_v21 = vpop.eup %1793 }
 0x33e   :  { %v1670_v25 = vmul.f32 %v1794_v21, %v2612_v19  ;;  %v1453_v27 = vpop.xlane.xlu2 %1452 }
 0x33f   :  { %1795 = vrcp.f32 %v1453_v27 }
 0x340   :  { %v1671_v50 = vpack.c.bf16 %v1670_v25, %v1670_v25 }
 0x342   :  { %1764 = vmatmul.msk.bf16.vlgmr.msrb.gmra.mxu2 %vm132_vm7, %v1671_v50 }
 0x345   :  { %v1796_v29 = vpop.eup %1795 }
 0x346   :  { %v1455_v16 = vmul.f32 %v1796_v29, %v2617_v30 }
 0x348   :  { %v1456_v31 = vpack.c.bf16 %v1455_v16, %v1455_v16 }
 0x34a   :  { %1762 = vmatmul.msk.bf16.vlgmr.msrb.gmra.mxu3 %vm132_vm7, %v1456_v31 }
 0x34d   :  { %v858_v12 = vpop.f32.mrf.mxu2 }
 0x34e   :  { %v863_v4 = vrot.slane %v858_v12, 1  ;;  %v864_v1 = vrot.slane %v858_v12, 2  ;;  %v865_v32 = vrot.slane %v858_v12, 3  ;;  %877 = vst.msk [vmem:[%s2955_s3 + $0x3] sm:$0x1] %vm231_vm9, %v858_v12  ;;  %v866_v19 = vrot.slane %v858_v12, 4 }
 0x34f   :  { %v867_v33 = vrot.slane %v858_v12, 5  ;;  %v868_v30 = vrot.slane %v858_v12, 6  ;;  %v869_v34 = vrot.slane %v858_v12, 7 }
 0x350   :  { %878 = vst.msk [vmem:[%s2955_s3 + $0xb] sm:$0x1] %vm231_vm9, %v863_v4 }
 0x351   :  { %879 = vst.msk [vmem:[%s2955_s3 + $0x13] sm:$0x1] %vm231_vm9, %v864_v1 }
 0x352   :  { %880 = vst.msk [vmem:[%s2955_s3 + $0x1b] sm:$0x1] %vm231_vm9, %v865_v32 }
 0x353   :  { %881 = vst.msk [vmem:[%s2955_s3 + $0x23] sm:$0x1] %vm231_vm9, %v866_v19 }
 0x354   :  { %882 = vst.msk [vmem:[%s2955_s3 + $0x2b] sm:$0x1] %vm231_vm9, %v867_v33 }
 0x355   :  { %883 = vst.msk [vmem:[%s2955_s3 + $0x33] sm:$0x1] %vm231_vm9, %v868_v30  ;;  %v860_v35 = vpop.f32.mrf.mxu2 }
 0x356   :  { %884 = vst.msk [vmem:[%s2955_s3 + $0x3b] sm:$0x1] %vm231_vm9, %v869_v34 }
 0x3ad   :  { %v643_v36 = vpop.f32.mrf.mxu3 }
 0x3ae   :  { %v648_v37 = vrot.slane %v643_v36, 1  ;;  %v649_v38 = vrot.slane %v643_v36, 2  ;;  %v650_v39 = vrot.slane %v643_v36, 3  ;;  %662 = vst.msk [vmem:[%s2955_s3 + $0x2] sm:$0x1] %vm231_vm9, %v643_v36  ;;  %v651_v40 = vrot.slane %v643_v36, 4 }
 0x3af   :  { %v652_v41 = vrot.slane %v643_v36, 5  ;;  %v653_v42 = vrot.slane %v643_v36, 6  ;;  %v654_v43 = vrot.slane %v643_v36, 7 }
 0x3b0   :  { %663 = vst.msk [vmem:[%s2955_s3 + $0xa] sm:$0x1] %vm231_vm9, %v648_v37 }
 0x3b1   :  { %664 = vst.msk [vmem:[%s2955_s3 + $0x12] sm:$0x1] %vm231_vm9, %v649_v38 }
 0x3b2   :  { %665 = vst.msk [vmem:[%s2955_s3 + $0x1a] sm:$0x1] %vm231_vm9, %v650_v39 }
 0x3b3   :  { %666 = vst.msk [vmem:[%s2955_s3 + $0x22] sm:$0x1] %vm231_vm9, %v651_v40 }
 0x3b4   :  { %667 = vst.msk [vmem:[%s2955_s3 + $0x2a] sm:$0x1] %vm231_vm9, %v652_v41 }
 0x3b5   :  { %668 = vst.msk [vmem:[%s2955_s3 + $0x32] sm:$0x1] %vm231_vm9, %v653_v42  ;;  %v645_v44 = vpop.f32.mrf.mxu3  ;;  %v1288_v45 = vpop.f32.mrf.mxu2 }
 0x3b6   :  { %669 = vst.msk [vmem:[%s2955_s3 + $0x3a] sm:$0x1] %vm231_vm9, %v654_v43  ;;  %v1293_v47 = vrot.slane %v1288_v45, 1  ;;  %v1294_v9 = vrot.slane %v1288_v45, 2  ;;  %v1295_v48 = vrot.slane %v1288_v45, 3  ;;  %v1296_v49 = vrot.slane %v1288_v45, 4 }
 0x3b7   :  { %1307 = vst.msk [vmem:[%s2955_s3 + $0x5] sm:$0x1] %vm231_vm9, %v1288_v45  ;;  %v1297_v53 = vrot.slane %v1288_v45, 5  ;;  %v1298_v54 = vrot.slane %v1288_v45, 6  ;;  %v1299_v55 = vrot.slane %v1288_v45, 7 }
 0x3b8   :  { %1308 = vst.msk [vmem:[%s2955_s3 + $0xd] sm:$0x1] %vm231_vm9, %v1293_v47 }
 0x3b9   :  { %1309 = vst.msk [vmem:[%s2955_s3 + $0x15] sm:$0x1] %vm231_vm9, %v1294_v9 }
 0x3ba   :  { %1310 = vst.msk [vmem:[%s2955_s3 + $0x1d] sm:$0x1] %vm231_vm9, %v1295_v48 }
 0x3bb   :  { %1311 = vst.msk [vmem:[%s2955_s3 + $0x25] sm:$0x1] %vm231_vm9, %v1296_v49 }
 0x3bc   :  { %1312 = vst.msk [vmem:[%s2955_s3 + $0x2d] sm:$0x1] %vm231_vm9, %v1297_v53 }
 0x3bd   :  { %1313 = vst.msk [vmem:[%s2955_s3 + $0x35] sm:$0x1] %vm231_vm9, %v1298_v54  ;;  %v1073_v56 = vpop.f32.mrf.mxu3  ;;  %v1290_v57 = vpop.f32.mrf.mxu2 }
 0x3be   :  { %1314 = vst.msk [vmem:[%s2955_s3 + $0x3d] sm:$0x1] %vm231_vm9, %v1299_v55  ;;  %v1078_v58 = vrot.slane %v1073_v56, 1  ;;  %v1079_v26 = vrot.slane %v1073_v56, 2  ;;  %v1080_v59 = vrot.slane %v1073_v56, 3  ;;  %v1081_v3 = vrot.slane %v1073_v56, 4 }
 0x3bf   :  { %1092 = vst.msk [vmem:[%s2955_s3 + $0x4] sm:$0x1] %vm231_vm9, %v1073_v56  ;;  %v1082_v51 = vrot.slane %v1073_v56, 5  ;;  %v1083_v60 = vrot.slane %v1073_v56, 6  ;;  %v1084_v61 = vrot.slane %v1073_v56, 7 }
 0x3c0   :  { %1093 = vst.msk [vmem:[%s2955_s3 + $0xc] sm:$0x1] %vm231_vm9, %v1078_v58 }
 0x3c1   :  { %1094 = vst.msk [vmem:[%s2955_s3 + $0x14] sm:$0x1] %vm231_vm9, %v1079_v26 }
 0x3c2   :  { %1095 = vst.msk [vmem:[%s2955_s3 + $0x1c] sm:$0x1] %vm231_vm9, %v1080_v59 }
 0x3c3   :  { %1096 = vst.msk [vmem:[%s2955_s3 + $0x24] sm:$0x1] %vm231_vm9, %v1081_v3 }
 0x3c4   :  { %1097 = vst.msk [vmem:[%s2955_s3 + $0x2c] sm:$0x1] %vm231_vm9, %v1082_v51 }
 0x3c5   :  { %1098 = vst.msk [vmem:[%s2955_s3 + $0x34] sm:$0x1] %vm231_vm9, %v1083_v60  ;;  %v1075_v62 = vpop.f32.mrf.mxu3  ;;  %v1718_v63 = vpop.f32.mrf.mxu2 }
 0x3c6   :  { %1099 = vst.msk [vmem:[%s2955_s3 + $0x3c] sm:$0x1] %vm231_vm9, %v1084_v61  ;;  %v1723_v0 = vrot.slane %v1718_v63, 1  ;;  %v1724_v22 = vrot.slane %v1718_v63, 2  ;;  %v1725_v5 = vrot.slane %v1718_v63, 3  ;;  %v1726_v2 = vrot.slane %v1718_v63, 4 }
 0x3c7   :  { %1737 = vst.msk [vmem:[%s2955_s3 + $0x7] sm:$0x1] %vm231_vm9, %v1718_v63  ;;  %v1727_v23 = vrot.slane %v1718_v63, 5  ;;  %v1728_v6 = vrot.slane %v1718_v63, 6  ;;  %v1729_v7 = vrot.slane %v1718_v63, 7 }
 0x3c8   :  { %1738 = vst.msk [vmem:[%s2955_s3 + $0xf] sm:$0x1] %vm231_vm9, %v1723_v0 }
 0x3c9   :  { %1739 = vst.msk [vmem:[%s2955_s3 + $0x17] sm:$0x1] %vm231_vm9, %v1724_v22 }
 0x3ca   :  { %1740 = vst.msk [vmem:[%s2955_s3 + $0x1f] sm:$0x1] %vm231_vm9, %v1725_v5 }
 0x3cb   :  { %1741 = vst.msk [vmem:[%s2955_s3 + $0x27] sm:$0x1] %vm231_vm9, %v1726_v2 }
 0x3cc   :  { %1742 = vst.msk [vmem:[%s2955_s3 + $0x2f] sm:$0x1] %vm231_vm9, %v1727_v23 }
 0x3cd   :  { %1743 = vst.msk [vmem:[%s2955_s3 + $0x37] sm:$0x1] %vm231_vm9, %v1728_v6  ;;  %v1503_v10 = vpop.f32.mrf.mxu3  ;;  %v1720_v24 = vpop.f32.mrf.mxu2 }
 0x3ce   :  { %1744 = vst.msk [vmem:[%s2955_s3 + $0x3f] sm:$0x1] %vm231_vm9, %v1729_v7  ;;  %v1508_v11 = vrot.slane %v1503_v10, 1  ;;  %v1509_v52 = vrot.slane %v1503_v10, 2  ;;  %v1510_v8 = vrot.slane %v1503_v10, 3  ;;  %v1511_v13 = vrot.slane %v1503_v10, 4 }
 0x3cf   :  { %1522 = vst.msk [vmem:[%s2955_s3 + $0x6] sm:$0x1] %vm231_vm9, %v1503_v10  ;;  %v1512_v46 = vrot.slane %v1503_v10, 5  ;;  %v1513_v14 = vrot.slane %v1503_v10, 6  ;;  %v1514_v15 = vrot.slane %v1503_v10, 7 }
 0x3d0   :  { %1523 = vst.msk [vmem:[%s2955_s3 + $0xe] sm:$0x1] %vm231_vm9, %v1508_v11 }
 0x3d1   :  { %1524 = vst.msk [vmem:[%s2955_s3 + $0x16] sm:$0x1] %vm231_vm9, %v1509_v52 }
 0x3d2   :  { %1525 = vst.msk [vmem:[%s2955_s3 + $0x1e] sm:$0x1] %vm231_vm9, %v1510_v8 }
 0x3d3   :  { %1526 = vst.msk [vmem:[%s2955_s3 + $0x26] sm:$0x1] %vm231_vm9, %v1511_v13 }
 0x3d4   :  { %1527 = vst.msk [vmem:[%s2955_s3 + $0x2e] sm:$0x1] %vm231_vm9, %v1512_v46 }
 0x3d5   :  { %1528 = vst.msk [vmem:[%s2955_s3 + $0x36] sm:$0x1] %vm231_vm9, %v1513_v14  ;;  %v1505_v17 = vpop.f32.mrf.mxu3 }
 0x3d6   :  { %1529 = vst.msk [vmem:[%s2955_s3 + $0x3e] sm:$0x1] %vm231_vm9, %v1514_v15 }

// kernel: qa_transformer_forward.55
= control target key start
LH: loop header
LB: loop body
LE: loop exit
PB: predicated region body
PF: predicated region fallthrough
CT: control target
= control target key end

     0   :  { %vm19_vm0 = vcmask 523264   ;;  %v96_v1 = vmov 0.0   ;;  %vm43_vm1 = vcmask 261120   ;;  %s144_s1 = inlined_call_operand.vmem [shape: bf16[32,64], index: 1, kind: input, shape index: {}]   ;;  %s145_s0 = inlined_call_operand.vmem [shape: f32[16,32], index: 0, kind: input, shape index: {}]   ;;  %s146_s2 = inlined_call_operand.vmem [shape: f32[1,64], index: 2, kind: input, shape index: {}]   ;;  %s147_s3 = inlined_call_operand.vmem [shape: f32[16,64], index: 3, kind: output, shape index: {}]  }
   0x1   :  { %v93_v0 = vld [vmem:[%s144_s1 + $0x8] sm:$0xff]  ;;  %20 = vst.msk [vmem:[#allocation2] sm:$0xff] %vm19_vm0, %v96_v1  ;;  %v92_v2 = vld [vmem:[%s144_s1] sm:$0xff] }
   0x2   :  { %21 = vst.msk [vmem:[#allocation2 + $0x8] sm:$0xff] %vm19_vm0, %v96_v1  ;;  %53 = vmatpush.bf16.msra.mxu0 %v93_v0  ;;  %v24_v3 = vld [vmem:[%s145_s0] sm:$0xff]  ;;  %v25_v4 = vld [vmem:[%s145_s0 + $0x8] sm:$0xff] }
   0x3   :  { %v26_v5 = vpack.c.bf16 %v25_v4, %v24_v3  ;;  %v95_v10 = vld [vmem:[%s146_s2] ss:$0 sm:$0xff] }
   0x6   :  { %54 = vmatpush.bf16.msra.mxu0 %v92_v2 }
   0x8   :  { %v22_v6 = vld [vmem:[#allocation2] sm:$0xff] }
   0x9   :  { %91 = vmatmul.msk.bf16.vlgmr.msra.gmra.mxu0 %vm43_vm1, %v26_v5  ;;  %v23_v9 = vld [vmem:[#allocation2 + $0x8] sm:$0xff] }
  0x86   :  { %v56_v7 = vpop.f32.mrf.mxu0 }
  0x87   :  { %v61_v8 = vadd.f32 %v56_v7, %v22_v6 }
  0x89   :  { %64 = vst.msk [vmem:[#allocation2] sm:$0xff] %vm19_vm0, %v61_v8 }
  0x8e   :  { %v58_v11 = vpop.f32.mrf.mxu0 }
  0x8f   :  { %v62_v12 = vadd.f32 %v58_v11, %v23_v9 }
  0x90   :  { %v69_v13 = vld [vmem:[#allocation2] sm:$0xff] }
  0x91   :  { %v75_v14 = vadd.f32 %v95_v10, %v69_v13  ;;  %65 = vst.msk [vmem:[#allocation2 + $0x8] sm:$0xff] %vm19_vm0, %v62_v12 }
  0x93   :  { %77 = vst.msk [vmem:[%s147_s3] sm:$0xff] %vm19_vm0, %v75_v14 }
  0x98   :  { %v70_v15 = vld [vmem:[#allocation2 + $0x8] sm:$0xff] }
  0x99   :  { %v76_v16 = vadd.f32 %v95_v10, %v70_v15 }
  0x9b   :  { %78 = vst.msk [vmem:[%s147_s3 + $0x8] sm:$0xff] %vm19_vm0, %v76_v16 }

// kernel: qa_transformer_forward.73
= control target key start
LH: loop header
LB: loop body
LE: loop exit
PB: predicated region body
PF: predicated region fallthrough
CT: control target
= control target key end

     0   :  { %vm20_vm0 = vcmask 523264   ;;  %v140_v1 = vmov 0.0   ;;  %s188_s0 = inlined_call_operand.vmem [shape: f32[16,32], index: 0, kind: input, shape index: {}]   ;;  %s189_s1 = inlined_call_operand.vmem [shape: bf16[32,64], index: 1, kind: input, shape index: {}]   ;;  %s190_s2 = inlined_call_operand.vmem [shape: f32[1,64], index: 2, kind: input, shape index: {}]   ;;  %s191_s3 = inlined_call_operand.hbm [shape: f32[16,64], index: 3, kind: output, shape index: {}]  }
   0x1   :  { %v108_v0 = vld [vmem:[%s189_s1 + $0x8] sm:$0xff]  ;;  %21 = vst.msk [vmem:[#allocation2] sm:$0xff] %vm20_vm0, %v140_v1 }
   0x2   :  { %8 = vsyncpa [#allocation4], 0  ;;  %54 = vmatpush.bf16.msra.mxu0 %v108_v0  ;;  %v107_v2 = vld [vmem:[%s189_s1] sm:$0xff]  ;;  %v26_v4 = vld [vmem:[%s188_s0 + $0x8] sm:$0xff]  ;;  %22 = vst.msk [vmem:[#allocation2 + $0x8] sm:$0xff] %vm20_vm0, %v140_v1  ;;  %vm44_vm1 = vcmask 261120  }
   0x3   :  { %v25_v3 = vld [vmem:[%s188_s0] sm:$0xff]  ;;  %s141_s0 = smov [#allocation3]   ;;  %s86_s24 = sshll.u32 %s191_s3, 4  ;;  %s87_s24 = int_to_ptr.hbm [resolvable:$true] %s86_s24 }
   0x4   :  { %v27_v5 = vpack.c.bf16 %v26_v4, %v25_v3  ;;  %v113_v10 = vld [vmem:[%s190_s2] ss:$0 sm:$0xff]  ;;  %s84_s21 = sshll.u32 %s141_s0, 4  ;;  %s142_s2 = smov 128   ;;  %s85_s21 = int_to_ptr.vmem [resolvable:$true] %s84_s21 }
   0x5   :  { %s143_s25 = smov 8  }
   0x6   :  { %55 = vmatpush.bf16.msra.mxu0 %v107_v2 }
   0x8   :  { %v23_v6 = vld [vmem:[#allocation2] sm:$0xff] }
   0x9   :  { %106 = vmatmul.msk.bf16.vlgmr.msra.gmra.mxu0 %vm44_vm1, %v27_v5  ;;  %v24_v9 = vld [vmem:[#allocation2 + $0x8] sm:$0xff] }
  0x86   :  { %v57_v7 = vpop.f32.mrf.mxu0 }
  0x87   :  { %v62_v8 = vadd.f32 %v57_v7, %v23_v6 }
  0x89   :  { %65 = vst.msk [vmem:[#allocation2] sm:$0xff] %vm20_vm0, %v62_v8 }
  0x8e   :  { %v59_v11 = vpop.f32.mrf.mxu0 }
  0x8f   :  { %v63_v12 = vadd.f32 %v59_v11, %v24_v9 }
  0x90   :  { %v70_v13 = vld [vmem:[#allocation2] sm:$0xff] }
  0x91   :  { %66 = vst.msk [vmem:[#allocation2 + $0x8] sm:$0xff] %vm20_vm0, %v63_v12  ;;  %v76_v14 = vadd.f32 %v113_v10, %v70_v13 }
  0x93   :  { %78 = vst.msk [vmem:[#allocation3] sm:$0xff] %vm20_vm0, %v76_v14 }
  0x98   :  { %v71_v15 = vld [vmem:[#allocation2 + $0x8] sm:$0xff] }
  0x99   :  { %v77_v16 = vadd.f32 %v113_v10, %v71_v15 }
  0x9b   :  { %79 = vst.msk [vmem:[#allocation3 + $0x8] sm:$0xff] %vm20_vm0, %v77_v16 }
  0x9c   :  { %92 = dma.vmem_to_hbm [thread:$0]  %s85_s21, 256, %s87_s24, [#allocation4], %s142_s2, %s142_s2, %s143_s25  }
  0x9d   :  { %138 = dma.done.wait [#allocation4], 256  }
  0x9e   :  { %139 = vsyncadd [#allocation4], 4294967040 }
  0x9f   :  { %97 = vsyncpa [#allocation4], 1 }

// kernel: qa_transformer_forward.41
= control target key start
LH: loop header
LB: loop body
LE: loop exit
PB: predicated region body
PF: predicated region fallthrough
CT: control target
= control target key end

     0   :  { %vm252_vm0 = vcmask 261120   ;;  %s3286_s1 = inlined_call_operand.vmem [shape: bf16[32,2048], index: 1, kind: input, shape index: {}]   ;;  %s3287_s0 = inlined_call_operand.vmem [shape: f32[16,32], index: 0, kind: input, shape index: {}]   ;;  %s3288_s3 = inlined_call_operand.vmem [shape: bf16[2048,32], index: 3, kind: input, shape index: {}]   ;;  %s3289_s4 = inlined_call_operand.vmem [shape: f32[1,32], index: 4, kind: input, shape index: {}]   ;;  %s3290_s2 = inlined_call_operand.vmem [shape: f32[1,2048], index: 2, kind: input, shape index: {}]   ;;  %s3291_s5 = inlined_call_operand.vmem [shape: f32[16,32], index: 5, kind: output, shape index: {}]  }
   0x1   :  { %v1852_v0 = vld [vmem:[%s3286_s1 + $0x80] sm:$0xf]  ;;  %v2458_v2 = vld [vmem:[%s3286_s1 + $0x84] sm:$0xf]  ;;  %v1860_v5 = vld [vmem:[%s3286_s1 + $0x88] sm:$0xf] }
   0x2   :  { %v2466_v1 = vld [vmem:[%s3286_s1 + $0xbc] sm:$0xf0]  ;;  %v1854_v4 = vld [vmem:[%s3286_s1 + $0xc0] sm:$0xf0]  ;;  %v2467_v6 = vld [vmem:[%s3286_s1 + $0xc4] sm:$0xf0] }
   0x3   :  { %v1853_v3 = vor.u32 %v2466_v1, %v1852_v0  ;;  %v1857_v7 = vor.u32 %v2458_v2, %v1854_v4  ;;  %v1861_v8 = vor.u32 %v2467_v6, %v1860_v5  ;;  %v2459_v9 = vld [vmem:[%s3286_s1 + $0x8c] sm:$0xf]  ;;  %v1788_v11 = vld [vmem:[%s3286_s1] sm:$0xf]  ;;  %v2442_v14 = vld [vmem:[%s3286_s1 + $0x4] sm:$0xf] }
   0x4   :  { %v1862_v10 = vld [vmem:[%s3286_s1 + $0xc8] sm:$0xf0]  ;;  %v2450_v13 = vld [vmem:[%s3286_s1 + $0x3c] sm:$0xf0]  ;;  %v1790_v15 = vld [vmem:[%s3286_s1 + $0x40] sm:$0xf0] }
   0x5   :  { %262 = vmatpush.bf16.msra.mxu0 %v1853_v3  ;;  %v1865_v12 = vor.u32 %v2459_v9, %v1862_v10  ;;  %276 = vmatpush.bf16.msra.mxu1 %v1857_v7  ;;  %v1789_v16 = vor.u32 %v2450_v13, %v1788_v11  ;;  %v1793_v17 = vor.u32 %v2442_v14, %v1790_v15  ;;  %v1796_v18 = vld [vmem:[%s3286_s1 + $0x8] sm:$0xf]  ;;  %v2443_v20 = vld [vmem:[%s3286_s1 + $0xc] sm:$0xf]  ;;  %v21_v23 = vld [vmem:[%s3287_s0] sm:$0xff] }
   0x6   :  { %290 = vmatpush.bf16.msra.mxu2 %v1861_v8  ;;  %v2451_v19 = vld [vmem:[%s3286_s1 + $0x44] sm:$0xf0]  ;;  %v1798_v22 = vld [vmem:[%s3286_s1 + $0x48] sm:$0xf0]  ;;  %v1868_v27 = vld [vmem:[%s3286_s1 + $0x90] sm:$0xf] }
   0x7   :  { %304 = vmatpush.bf16.msra.mxu3 %v1865_v12  ;;  %v1797_v21 = vor.u32 %v2451_v19, %v1796_v18  ;;  %v22_v24 = vld [vmem:[%s3287_s0 + $0x8] sm:$0xff]  ;;  %v1801_v25 = vor.u32 %v2443_v20, %v1798_v22  ;;  %v2468_v28 = vld [vmem:[%s3286_s1 + $0xcc] sm:$0xf0]  ;;  %v1876_v29 = vld [vmem:[%s3286_s1 + $0x98] sm:$0xf] }
   0x8   :  { %v2687_v26 = vpack.c.bf16 %v22_v24, %v21_v23  ;;  %v1869_v30 = vor.u32 %v2468_v28, %v1868_v27  ;;  %v2469_v31 = vld [vmem:[%s3286_s1 + $0xd4] sm:$0xf0]  ;;  %v2461_v32 = vld [vmem:[%s3286_s1 + $0x9c] sm:$0xf]  ;;  %v2460_v35 = vld [vmem:[%s3286_s1 + $0x94] sm:$0xf] }
   0x9   :  { %263 = vmatpush.bf16.msra.mxu0 %v1789_v16  ;;  %v1878_v33 = vld [vmem:[%s3286_s1 + $0xd8] sm:$0xf0]  ;;  %277 = vmatpush.bf16.msra.mxu1 %v1793_v17  ;;  %v1877_v34 = vor.u32 %v2469_v31, %v1876_v29  ;;  %v1870_v36 = vld [vmem:[%s3286_s1 + $0xd0] sm:$0xf0]  ;;  %v1804_v37 = vld [vmem:[%s3286_s1 + $0x10] sm:$0xf] }
   0xa   :  { %291 = vmatpush.bf16.msra.mxu2 %v1797_v21  ;;  %v1881_v38 = vor.u32 %v2461_v32, %v1878_v33  ;;  %v1873_v39 = vor.u32 %v2460_v35, %v1870_v36  ;;  %v2452_v40 = vld [vmem:[%s3286_s1 + $0x4c] sm:$0xf0]  ;;  %v1812_v41 = vld [vmem:[%s3286_s1 + $0x18] sm:$0xf]  ;;  %v2445_v45 = vld [vmem:[%s3286_s1 + $0x1c] sm:$0xf] }
   0xb   :  { %305 = vmatpush.bf16.msra.mxu3 %v1801_v25  ;;  %v2453_v42 = vld [vmem:[%s3286_s1 + $0x54] sm:$0xf0]  ;;  %v1805_v43 = vor.u32 %v2452_v40, %v1804_v37  ;;  %v1814_v46 = vld [vmem:[%s3286_s1 + $0x58] sm:$0xf0]  ;;  %v2444_v47 = vld [vmem:[%s3286_s1 + $0x14] sm:$0xf] }
   0xc   :  { %1914 = vmatmul.msk.bf16.vlgmr.msra.gmra.mxu0 %vm252_vm0, %v2687_v26  ;;  %v1813_v44 = vor.u32 %v2453_v42, %v1812_v41  ;;  %1915 = vmatmul.msk.bf16.vlgmr.msra.gmra.mxu1 %vm252_vm0, %v2687_v26  ;;  %v1806_v48 = vld [vmem:[%s3286_s1 + $0x50] sm:$0xf0]  ;;  %v1884_v49 = vld [vmem:[%s3286_s1 + $0xa0] sm:$0xf]  ;;  %v1892_v53 = vld [vmem:[%s3286_s1 + $0xa8] sm:$0xf]  ;;  %v1817_v56 = vor.u32 %v2445_v45, %v1814_v46 }
   0xd   :  { %318 = vmatpush.bf16.msrb.mxu0 %v1869_v30  ;;  %1916 = vmatmul.msk.bf16.vlgmr.msra.gmra.mxu2 %vm252_vm0, %v2687_v26  ;;  %v2470_v50 = vld [vmem:[%s3286_s1 + $0xdc] sm:$0xf0]  ;;  %v1809_v51 = vor.u32 %v2444_v47, %v1806_v48  ;;  %v2471_v54 = vld [vmem:[%s3286_s1 + $0xe4] sm:$0xf0]  ;;  %v2463_v55 = vld [vmem:[%s3286_s1 + $0xac] sm:$0xf] }
   0xe   :  { %346 = vmatpush.bf16.msrb.mxu2 %v1877_v34  ;;  %1917 = vmatmul.msk.bf16.vlgmr.msra.gmra.mxu3 %vm252_vm0, %v2687_v26  ;;  %v1885_v52 = vor.u32 %v2470_v50, %v1884_v49  ;;  %v1893_v57 = vor.u32 %v2471_v54, %v1892_v53  ;;  %v1894_v58 = vld [vmem:[%s3286_s1 + $0xe8] sm:$0xf0]  ;;  %v2462_v59 = vld [vmem:[%s3286_s1 + $0xa4] sm:$0xf]  ;;  %v1820_v63 = vld [vmem:[%s3286_s1 + $0x20] sm:$0xf] }
   0xf   :  { %332 = vmatpush.bf16.msrb.mxu1 %v1873_v39  ;;  %360 = vmatpush.bf16.msrb.mxu3 %v1881_v38  ;;  %v1886_v60 = vld [vmem:[%s3286_s1 + $0xe0] sm:$0xf0]  ;;  %v1897_v61 = vor.u32 %v2463_v55, %v1894_v58  ;;  %v2454_v0 = vld [vmem:[%s3286_s1 + $0x5c] sm:$0xf0]  ;;  %v1828_v1 = vld [vmem:[%s3286_s1 + $0x28] sm:$0xf] }
  0x10   :  { %v1889_v62 = vor.u32 %v2462_v59, %v1886_v60  ;;  %v1821_v2 = vor.u32 %v2454_v0, %v1820_v63  ;;  %v2455_v3 = vld [vmem:[%s3286_s1 + $0x64] sm:$0xf0]  ;;  %v2447_v4 = vld [vmem:[%s3286_s1 + $0x2c] sm:$0xf]  ;;  %v2446_v7 = vld [vmem:[%s3286_s1 + $0x24] sm:$0xf] }
  0x11   :  { %319 = vmatpush.bf16.msrb.mxu0 %v1805_v43  ;;  %v1830_v5 = vld [vmem:[%s3286_s1 + $0x68] sm:$0xf0]  ;;  %v1829_v6 = vor.u32 %v2455_v3, %v1828_v1  ;;  %v1822_v8 = vld [vmem:[%s3286_s1 + $0x60] sm:$0xf0]  ;;  %v1908_v11 = vld [vmem:[%s3286_s1 + $0xb8] sm:$0xf] }
  0x12   :  { %347 = vmatpush.bf16.msrb.mxu2 %v1813_v44  ;;  %v1825_v9 = vor.u32 %v2446_v7, %v1822_v8  ;;  %v1833_v10 = vor.u32 %v2447_v4, %v1830_v5  ;;  %v2473_v12 = vld [vmem:[%s3286_s1 + $0xf4] sm:$0xf0]  ;;  %v2465_v13 = vld [vmem:[%s3286_s1 + $0xbc] sm:$0xf]  ;;  %v1900_v15 = vld [vmem:[%s3286_s1 + $0xb0] sm:$0xf] }
  0x13   :  { %333 = vmatpush.bf16.msrb.mxu1 %v1809_v51  ;;  %361 = vmatpush.bf16.msrb.mxu3 %v1817_v56  ;;  %v1910_v14 = vld [vmem:[%s3286_s1 + $0xf8] sm:$0xf0]  ;;  %v2472_v16 = vld [vmem:[%s3286_s1 + $0xec] sm:$0xf0]  ;;  %v1909_v17 = vor.u32 %v2473_v12, %v1908_v11  ;;  %v1844_v19 = vld [vmem:[%s3286_s1 + $0x38] sm:$0xf] }
  0x14   :  { %v1913_v18 = vor.u32 %v2465_v13, %v1910_v14  ;;  %v2457_v20 = vld [vmem:[%s3286_s1 + $0x74] sm:$0xf0]  ;;  %v1901_v21 = vor.u32 %v2472_v16, %v1900_v15  ;;  %v2449_v22 = vld [vmem:[%s3286_s1 + $0x3c] sm:$0xf]  ;;  %v2464_v24 = vld [vmem:[%s3286_s1 + $0xb4] sm:$0xf] }
  0x15   :  { %374 = vmatpush.bf16.msra.mxu0 %v1885_v52  ;;  %v1846_v23 = vld [vmem:[%s3286_s1 + $0x78] sm:$0xf0]  ;;  %v1902_v25 = vld [vmem:[%s3286_s1 + $0xf0] sm:$0xf0]  ;;  %v1845_v27 = vor.u32 %v2457_v20, %v1844_v19  ;;  %v1836_v29 = vld [vmem:[%s3286_s1 + $0x30] sm:$0xf] }
  0x16   :  { %402 = vmatpush.bf16.msra.mxu2 %v1893_v57  ;;  %v1905_v28 = vor.u32 %v2464_v24, %v1902_v25  ;;  %v2456_v30 = vld [vmem:[%s3286_s1 + $0x6c] sm:$0xf0]  ;;  %v2448_v31 = vld [vmem:[%s3286_s1 + $0x34] sm:$0xf]  ;;  %v1849_v32 = vor.u32 %v2449_v22, %v1846_v23  ;;  %v2481_v36 = vld [vmem:[%s3288_s3 + $0x38] sm:$0xff] }
  0x17   :  { %388 = vmatpush.bf16.msra.mxu1 %v1889_v62  ;;  %416 = vmatpush.bf16.msra.mxu3 %v1897_v61  ;;  %v1837_v33 = vor.u32 %v2456_v30, %v1836_v29  ;;  %v1838_v34 = vld [vmem:[%s3286_s1 + $0x70] sm:$0xf0]  ;;  %v2489_v37 = vld [vmem:[%s3288_s3 + $0x78] sm:$0xff]  ;;  %v2479_v44 = vld [vmem:[%s3288_s3 + $0x28] sm:$0xff] }
  0x18   :  { %v1841_v35 = vor.u32 %v2448_v31, %v1838_v34  ;;  %v2497_v38 = vld [vmem:[%s3288_s3 + $0xb8] sm:$0xff]  ;;  %v2480_v40 = vld [vmem:[%s3288_s3 + $0x30] sm:$0xff]  ;;  %v2487_v45 = vld [vmem:[%s3288_s3 + $0x68] sm:$0xff] }
  0x19   :  { %375 = vmatpush.bf16.msra.mxu0 %v1821_v2  ;;  %v2505_v39 = vld [vmem:[%s3288_s3 + $0xf8] sm:$0xff]  ;;  %v2488_v41 = vld [vmem:[%s3288_s3 + $0x70] sm:$0xff]  ;;  %v2495_v46 = vld [vmem:[%s3288_s3 + $0xa8] sm:$0xff] }
  0x1a   :  { %403 = vmatpush.bf16.msra.mxu2 %v1829_v6  ;;  %v2496_v42 = vld [vmem:[%s3288_s3 + $0xb0] sm:$0xff]  ;;  %v2503_v47 = vld [vmem:[%s3288_s3 + $0xe8] sm:$0xff]  ;;  %v2478_v48 = vld [vmem:[%s3288_s3 + $0x20] sm:$0xff] }
  0x1b   :  { %389 = vmatpush.bf16.msra.mxu1 %v1825_v9  ;;  %417 = vmatpush.bf16.msra.mxu3 %v1833_v10  ;;  %v2504_v43 = vld [vmem:[%s3288_s3 + $0xf0] sm:$0xff]  ;;  %v2486_v49 = vld [vmem:[%s3288_s3 + $0x60] sm:$0xff]  ;;  %v2477_v52 = vld [vmem:[%s3288_s3 + $0x18] sm:$0xff] }
  0x1c   :  { %1918 = vmatmul.msk.bf16.vlgmr.msrb.gmra.mxu0 %vm252_vm0, %v2687_v26  ;;  %1919 = vmatmul.msk.bf16.vlgmr.msrb.gmra.mxu1 %vm252_vm0, %v2687_v26  ;;  %v2494_v50 = vld [vmem:[%s3288_s3 + $0xa0] sm:$0xff]  ;;  %v2485_v53 = vld [vmem:[%s3288_s3 + $0x58] sm:$0xff]  ;;  %v2476_v56 = vld [vmem:[%s3288_s3 + $0x10] sm:$0xff] }
  0x1d   :  { %1920 = vmatmul.msk.bf16.vlgmr.msrb.gmra.mxu2 %vm252_vm0, %v2687_v26  ;;  %430 = vmatpush.bf16.msrb.mxu0 %v1901_v21  ;;  %v2502_v51 = vld [vmem:[%s3288_s3 + $0xe0] sm:$0xff]  ;;  %v2493_v54 = vld [vmem:[%s3288_s3 + $0x98] sm:$0xff]  ;;  %v2484_v57 = vld [vmem:[%s3288_s3 + $0x50] sm:$0xff] }
  0x1e   :  { %1921 = vmatmul.msk.bf16.vlgmr.msrb.gmra.mxu3 %vm252_vm0, %v2687_v26  ;;  %458 = vmatpush.bf16.msrb.mxu2 %v1909_v17  ;;  %v2501_v55 = vld [vmem:[%s3288_s3 + $0xd8] sm:$0xff]  ;;  %v2492_v58 = vld [vmem:[%s3288_s3 + $0x90] sm:$0xff]  ;;  %v2475_v59 = vld [vmem:[%s3288_s3 + $0x8] sm:$0xff] }
  0x1f   :  { %472 = vmatpush.bf16.msrb.mxu3 %v1913_v18  ;;  %444 = vmatpush.bf16.msrb.mxu1 %v1905_v28  ;;  %v2483_v60 = vld [vmem:[%s3288_s3 + $0x48] sm:$0xff]  ;;  %v2474_v63 = vld [vmem:[%s3288_s3] sm:$0xff]  ;;  %v2513_v1 = vld [vmem:[%s3288_s3 + $0x138] sm:$0xff] }
  0x20   :  { %v2491_v61 = vld [vmem:[%s3288_s3 + $0x88] sm:$0xff]  ;;  %v2482_v0 = vld [vmem:[%s3288_s3 + $0x40] sm:$0xff]  ;;  %v2521_v2 = vld [vmem:[%s3288_s3 + $0x178] sm:$0xff] }
  0x21   :  { %431 = vmatpush.bf16.msrb.mxu0 %v1837_v33  ;;  %v2499_v62 = vld [vmem:[%s3288_s3 + $0xc8] sm:$0xff]  ;;  %v2490_v3 = vld [vmem:[%s3288_s3 + $0x80] sm:$0xff]  ;;  %v2529_v5 = vld [vmem:[%s3288_s3 + $0x1b8] sm:$0xff] }
  0x22   :  { %459 = vmatpush.bf16.msrb.mxu2 %v1845_v27  ;;  %v2498_v4 = vld [vmem:[%s3288_s3 + $0xc0] sm:$0xff]  ;;  %v2537_v6 = vld [vmem:[%s3288_s3 + $0x1f8] sm:$0xff]  ;;  %v2512_v7 = vld [vmem:[%s3288_s3 + $0x130] sm:$0xff] }
  0x23   :  { %473 = vmatpush.bf16.msrb.mxu3 %v1849_v32  ;;  %445 = vmatpush.bf16.msrb.mxu1 %v1841_v35  ;;  %v2520_v8 = vld [vmem:[%s3288_s3 + $0x170] sm:$0xff]  ;;  %v2511_v11 = vld [vmem:[%s3288_s3 + $0x128] sm:$0xff]  ;;  %v2510_v13 = vld [vmem:[%s3288_s3 + $0x120] sm:$0xff] }
  0x24   :  { %v2528_v9 = vld [vmem:[%s3288_s3 + $0x1b0] sm:$0xff]  ;;  %v2519_v12 = vld [vmem:[%s3288_s3 + $0x168] sm:$0xff]  ;;  %v2518_v14 = vld [vmem:[%s3288_s3 + $0x160] sm:$0xff] }
  0x25   :  { %v2536_v10 = vld [vmem:[%s3288_s3 + $0x1f0] sm:$0xff]  ;;  %v2527_v15 = vld [vmem:[%s3288_s3 + $0x1a8] sm:$0xff]  ;;  %v2509_v17 = vld [vmem:[%s3288_s3 + $0x118] sm:$0xff] }
  0x26   :  { %v2535_v16 = vld [vmem:[%s3288_s3 + $0x1e8] sm:$0xff]  ;;  %v2517_v18 = vld [vmem:[%s3288_s3 + $0x158] sm:$0xff]  ;;  %v2526_v19 = vld [vmem:[%s3288_s3 + $0x1a0] sm:$0xff] }
  0x27   :  { %v2534_v20 = vld [vmem:[%s3288_s3 + $0x1e0] sm:$0xff]  ;;  %v2508_v21 = vld [vmem:[%s3288_s3 + $0x110] sm:$0xff]  ;;  %v2525_v23 = vld [vmem:[%s3288_s3 + $0x198] sm:$0xff] }
  0x28   :  { %v2516_v22 = vld [vmem:[%s3288_s3 + $0x150] sm:$0xff]  ;;  %v2533_v24 = vld [vmem:[%s3288_s3 + $0x1d8] sm:$0xff]  ;;  %v2507_v25 = vld [vmem:[%s3288_s3 + $0x108] sm:$0xff] }
  0x29   :  { %v2515_v27 = vld [vmem:[%s3288_s3 + $0x148] sm:$0xff]  ;;  %v2524_v28 = vld [vmem:[%s3288_s3 + $0x190] sm:$0xff]  ;;  %v2506_v30 = vld [vmem:[%s3288_s3 + $0x100] sm:$0xff] }
  0x2a   :  { %v2532_v29 = vld [vmem:[%s3288_s3 + $0x1d0] sm:$0xff]  ;;  %v2514_v31 = vld [vmem:[%s3288_s3 + $0x140] sm:$0xff]  ;;  %v2523_v32 = vld [vmem:[%s3288_s3 + $0x188] sm:$0xff] }
  0x2b   :  { %v2531_v33 = vld [vmem:[%s3288_s3 + $0x1c8] sm:$0xff]  ;;  %v2522_v34 = vld [vmem:[%s3288_s3 + $0x180] sm:$0xff] }
  0x2c   :  { %1922 = vmatmul.msk.bf16.vlgmr.msra.gmra.mxu0 %vm252_vm0, %v2687_v26  ;;  %1923 = vmatmul.msk.bf16.vlgmr.msra.gmra.mxu1 %vm252_vm0, %v2687_v26  ;;  %v2530_v35 = vld [vmem:[%s3288_s3 + $0x1c0] sm:$0xff] }
  0x2d   :  { %1924 = vmatmul.msk.bf16.vlgmr.msra.gmra.mxu2 %vm252_vm0, %v2687_v26  ;;  %1556 = vmatpush.bf16.msra.mxu0 %v2481_v36  ;;  %v3060_v36 = vld [vmem:[%s3290_s2] sm:$0xff] }
  0x2e   :  { %1925 = vmatmul.msk.bf16.vlgmr.msra.gmra.mxu3 %vm252_vm0, %v2687_v26  ;;  %1570 = vmatpush.bf16.msra.mxu1 %v2489_v37 }
  0x2f   :  { %1584 = vmatpush.bf16.msra.mxu2 %v2497_v38  ;;  %1598 = vmatpush.bf16.msra.mxu3 %v2505_v39  ;;  %v60_v38 = vperm.slane %v3060_v36, 0 }
  0x31   :  { %1557 = vmatpush.bf16.msra.mxu0 %v2480_v40  ;;  %v61_v40 = vperm.slane %v3060_v36, 1 }
  0x32   :  { %1571 = vmatpush.bf16.msra.mxu1 %v2488_v41 }
  0x33   :  { %1585 = vmatpush.bf16.msra.mxu2 %v2496_v42  ;;  %1599 = vmatpush.bf16.msra.mxu3 %v2504_v43 }
  0x35   :  { %1558 = vmatpush.bf16.msra.mxu0 %v2479_v44 }
  0x36   :  { %1572 = vmatpush.bf16.msra.mxu1 %v2487_v45 }
  0x37   :  { %1586 = vmatpush.bf16.msra.mxu2 %v2495_v46  ;;  %1600 = vmatpush.bf16.msra.mxu3 %v2503_v47 }
  0x39   :  { %1559 = vmatpush.bf16.msra.mxu0 %v2478_v48 }
  0x3a   :  { %1573 = vmatpush.bf16.msra.mxu1 %v2486_v49 }
  0x3b   :  { %1587 = vmatpush.bf16.msra.mxu2 %v2494_v50  ;;  %1601 = vmatpush.bf16.msra.mxu3 %v2502_v51  ;;  %v62_v50 = vperm.slane %v3060_v36, 2 }
  0x3c   :  { %1926 = vmatmul.msk.bf16.vlgmr.msrb.gmra.mxu0 %vm252_vm0, %v2687_v26  ;;  %1927 = vmatmul.msk.bf16.vlgmr.msrb.gmra.mxu1 %vm252_vm0, %v2687_v26 }
  0x3d   :  { %1928 = vmatmul.msk.bf16.vlgmr.msrb.gmra.mxu2 %vm252_vm0, %v2687_v26  ;;  %1560 = vmatpush.bf16.msra.mxu0 %v2477_v52  ;;  %v63_v52 = vperm.slane %v3060_v36, 3 }
  0x3e   :  { %1929 = vmatmul.msk.bf16.vlgmr.msrb.gmra.mxu3 %vm252_vm0, %v2687_v26  ;;  %1574 = vmatpush.bf16.msra.mxu1 %v2485_v53  ;;  %v2500_v26 = vld [vmem:[%s3288_s3 + $0xd0] sm:$0xff] }
  0x3f   :  { %1588 = vmatpush.bf16.msra.mxu2 %v2493_v54  ;;  %1602 = vmatpush.bf16.msra.mxu3 %v2501_v55  ;;  %v2545_v55 = vld [vmem:[%s3288_s3 + $0x238] sm:$0xff] }
  0x41   :  { %1561 = vmatpush.bf16.msra.mxu0 %v2476_v56 }
  0x42   :  { %1575 = vmatpush.bf16.msra.mxu1 %v2484_v57  ;;  %v2553_v57 = vld [vmem:[%s3288_s3 + $0x278] sm:$0xff] }
  0x43   :  { %1589 = vmatpush.bf16.msra.mxu2 %v2492_v58  ;;  %1603 = vmatpush.bf16.msra.mxu3 %v2500_v26 }
  0x45   :  { %1562 = vmatpush.bf16.msra.mxu0 %v2475_v59 }
  0x46   :  { %1576 = vmatpush.bf16.msra.mxu1 %v2483_v60 }
  0x47   :  { %1590 = vmatpush.bf16.msra.mxu2 %v2491_v61  ;;  %1604 = vmatpush.bf16.msra.mxu3 %v2499_v62 }
  0x49   :  { %1563 = vmatpush.bf16.msra.mxu0 %v2474_v63 }
  0x4a   :  { %1577 = vmatpush.bf16.msra.mxu1 %v2482_v0  ;;  %v2544_v0 = vld [vmem:[%s3288_s3 + $0x230] sm:$0xff] }
  0x4b   :  { %1591 = vmatpush.bf16.msra.mxu2 %v2490_v3  ;;  %1605 = vmatpush.bf16.msra.mxu3 %v2498_v4  ;;  %v2552_v4 = vld [vmem:[%s3288_s3 + $0x270] sm:$0xff] }
  0x4d   :  { %1612 = vmatpush.bf16.msrb.mxu0 %v2513_v1 }
  0x4e   :  { %1626 = vmatpush.bf16.msrb.mxu1 %v2521_v2  ;;  %v64_v2 = vperm.slane %v3060_v36, 4 }
  0x4f   :  { %1640 = vmatpush.bf16.msrb.mxu2 %v2529_v5  ;;  %1654 = vmatpush.bf16.msrb.mxu3 %v2537_v6 }
  0x51   :  { %1613 = vmatpush.bf16.msrb.mxu0 %v2512_v7  ;;  %v65_v7 = vperm.slane %v3060_v36, 5 }
  0x52   :  { %1627 = vmatpush.bf16.msrb.mxu1 %v2520_v8 }
  0x53   :  { %1641 = vmatpush.bf16.msrb.mxu2 %v2528_v9  ;;  %1655 = vmatpush.bf16.msrb.mxu3 %v2536_v10  ;;  %v2561_v10 = vld [vmem:[%s3288_s3 + $0x2b8] sm:$0xff] }
  0x55   :  { %1614 = vmatpush.bf16.msrb.mxu0 %v2511_v11 }
  0x56   :  { %1628 = vmatpush.bf16.msrb.mxu1 %v2519_v12  ;;  %v2569_v12 = vld [vmem:[%s3288_s3 + $0x2f8] sm:$0xff] }
  0x57   :  { %1642 = vmatpush.bf16.msrb.mxu2 %v2527_v15  ;;  %1656 = vmatpush.bf16.msrb.mxu3 %v2535_v16  ;;  %v2551_v16 = vld [vmem:[%s3288_s3 + $0x268] sm:$0xff] }
  0x59   :  { %1615 = vmatpush.bf16.msrb.mxu0 %v2510_v13  ;;  %v2543_v13 = vld [vmem:[%s3288_s3 + $0x228] sm:$0xff] }
  0x5a   :  { %1629 = vmatpush.bf16.msrb.mxu1 %v2518_v14 }
  0x5b   :  { %1643 = vmatpush.bf16.msrb.mxu2 %v2526_v19  ;;  %1657 = vmatpush.bf16.msrb.mxu3 %v2534_v20  ;;  %v2560_v19 = vld [vmem:[%s3288_s3 + $0x2b0] sm:$0xff]  ;;  %v66_v20 = vperm.slane %v3060_v36, 6 }
  0x5d   :  { %1616 = vmatpush.bf16.msrb.mxu0 %v2509_v17 }
  0x5e   :  { %1630 = vmatpush.bf16.msrb.mxu1 %v2517_v18 }
  0x5f   :  { %1644 = vmatpush.bf16.msrb.mxu2 %v2525_v23  ;;  %1658 = vmatpush.bf16.msrb.mxu3 %v2533_v24  ;;  %v2568_v23 = vld [vmem:[%s3288_s3 + $0x2f0] sm:$0xff]  ;;  %v2542_v24 = vld [vmem:[%s3288_s3 + $0x220] sm:$0xff] }
  0x61   :  { %1617 = vmatpush.bf16.msrb.mxu0 %v2508_v21 }
  0x62   :  { %1631 = vmatpush.bf16.msrb.mxu1 %v2516_v22 }
  0x63   :  { %1645 = vmatpush.bf16.msrb.mxu2 %v2524_v28  ;;  %1659 = vmatpush.bf16.msrb.mxu3 %v2532_v29 }
  0x65   :  { %1618 = vmatpush.bf16.msrb.mxu0 %v2507_v25 }
  0x66   :  { %1632 = vmatpush.bf16.msrb.mxu1 %v2515_v27  ;;  %v67_v27 = vperm.slane %v3060_v36, 7  ;;  %v2567_v36 = vld [vmem:[%s3288_s3 + $0x2e8] sm:$0xff] }
  0x67   :  { %1646 = vmatpush.bf16.msrb.mxu2 %v2523_v32  ;;  %1660 = vmatpush.bf16.msrb.mxu3 %v2531_v33 }
  0x69   :  { %1619 = vmatpush.bf16.msrb.mxu0 %v2506_v30  ;;  %v2550_v30 = vld [vmem:[%s3288_s3 + $0x260] sm:$0xff] }
  0x6a   :  { %1633 = vmatpush.bf16.msrb.mxu1 %v2514_v31 }
  0x6b   :  { %1647 = vmatpush.bf16.msrb.mxu2 %v2522_v34  ;;  %1661 = vmatpush.bf16.msrb.mxu3 %v2530_v35  ;;  %v2559_v34 = vld [vmem:[%s3288_s3 + $0x2a8] sm:$0xff] }
  0x89   :  { %v265_v37 = vpop.f32.mrf.mxu0  ;;  %v279_v39 = vpop.f32.mrf.mxu1 }
  0x8a   :  { %v266_v41 = vadd.f32 %v265_v37, %v60_v38  ;;  %v280_v42 = vadd.f32 %v279_v39, %v61_v40 }
  0x8c   :  { %v480_v46 = vmax.f32 %v266_v41, 0.0  ;;  %v481_v49 = vmax.f32 %v280_v42, 0.0  ;;  %v2549_v41 = vld [vmem:[%s3288_s3 + $0x258] sm:$0xff] }
  0x90   :  { %v293_v43 = vpop.f32.mrf.mxu2 }
  0x91   :  { %v307_v44 = vpop.f32.mrf.mxu3  ;;  %v267_v45 = vpop.f32.mrf.mxu0  ;;  %v294_v58 = vadd.f32 %v293_v43, %v62_v50  ;;  %v3121_v43 = vld [vmem:[%s3290_s2 + $0x8] sm:$0xff] }
  0x92   :  { %v268_v47 = vadd.f32 %v267_v45, %v60_v38  ;;  %v281_v48 = vpop.f32.mrf.mxu1  ;;  %v308_v59 = vadd.f32 %v307_v44, %v63_v52  ;;  %v2541_v38 = vld [vmem:[%s3288_s3 + $0x218] sm:$0xff]  ;;  %v2558_v45 = vld [vmem:[%s3288_s3 + $0x2a0] sm:$0xff] }
  0x93   :  { %v282_v51 = vadd.f32 %v281_v48, %v61_v40  ;;  %v482_v5 = vmax.f32 %v294_v58, 0.0 }
  0x94   :  { %v496_v53 = vmax.f32 %v268_v47, 0.0  ;;  %v483_v8 = vmax.f32 %v308_v59, 0.0  ;;  %v2557_v59 = vld [vmem:[%s3288_s3 + $0x298] sm:$0xff] }
  0x95   :  { %v497_v54 = vmax.f32 %v282_v51, 0.0  ;;  %v2540_v51 = vld [vmem:[%s3288_s3 + $0x210] sm:$0xff] }
  0x96   :  { %v512_v56 = vpack.c.bf16 %v496_v53, %v480_v46 }
  0x97   :  { %v513_v26 = vpack.c.bf16 %v497_v54, %v481_v49  ;;  %v68_v54 = vperm.slane %v3121_v43, 0 }
  0x98   :  { %v295_v60 = vpop.f32.mrf.mxu2  ;;  %1564 = vmatmul.bf16.vlgmr.msra.gmra.mxu0 %v512_v56  ;;  %v2548_v56 = vld [vmem:[%s3288_s3 + $0x250] sm:$0xff] }
  0x99   :  { %v296_v61 = vadd.f32 %v295_v60, %v62_v50  ;;  %v309_v62 = vpop.f32.mrf.mxu3  ;;  %1578 = vmatmul.bf16.vlgmr.msra.gmra.mxu1 %v513_v26  ;;  %1668 = vmatpush.bf16.msra.mxu0 %v2545_v55  ;;  %v321_v63 = vpop.f32.mrf.mxu0  ;;  %v2566_v50 = vld [vmem:[%s3288_s3 + $0x2e0] sm:$0xff]  ;;  %v69_v26 = vperm.slane %v3121_v43, 1 }
  0x9a   :  { %v310_v1 = vadd.f32 %v309_v62, %v63_v52  ;;  %1682 = vmatpush.bf16.msra.mxu1 %v2553_v57  ;;  %v335_v3 = vpop.f32.mrf.mxu1  ;;  %v322_v15 = vadd.f32 %v321_v63, %v64_v2  ;;  %v2539_v62 = vld [vmem:[%s3288_s3 + $0x208] sm:$0xff] }
  0x9b   :  { %v498_v6 = vmax.f32 %v296_v61, 0.0  ;;  %v336_v17 = vadd.f32 %v335_v3, %v65_v7  ;;  %v2565_v61 = vld [vmem:[%s3288_s3 + $0x2d8] sm:$0xff] }
  0x9c   :  { %v499_v9 = vmax.f32 %v310_v1, 0.0  ;;  %v484_v25 = vmax.f32 %v322_v15, 0.0  ;;  %v2547_v1 = vld [vmem:[%s3288_s3 + $0x248] sm:$0xff]  ;;  %v2577_v15 = vld [vmem:[%s3288_s3 + $0x338] sm:$0xff] }
  0x9d   :  { %v514_v11 = vpack.c.bf16 %v498_v6, %v482_v5  ;;  %1669 = vmatpush.bf16.msra.mxu0 %v2544_v0  ;;  %v485_v31 = vmax.f32 %v336_v17, 0.0  ;;  %v70_v5 = vperm.slane %v3121_v43, 2  ;;  %v2585_v17 = vld [vmem:[%s3288_s3 + $0x378] sm:$0xff] }
  0x9e   :  { %v515_v14 = vpack.c.bf16 %v499_v9, %v483_v8  ;;  %1683 = vmatpush.bf16.msra.mxu1 %v2552_v4  ;;  %v2556_v4 = vld [vmem:[%s3288_s3 + $0x290] sm:$0xff]  ;;  %v2538_v9 = vld [vmem:[%s3288_s3 + $0x200] sm:$0xff] }
  0x9f   :  { %1592 = vmatmul.bf16.vlgmr.msra.gmra.mxu2 %v514_v11  ;;  %v2564_v8 = vld [vmem:[%s3288_s3 + $0x2d0] sm:$0xff]  ;;  %v71_v11 = vperm.slane %v3121_v43, 3 }
  0xa0   :  { %1606 = vmatmul.bf16.vlgmr.msra.gmra.mxu3 %v515_v14  ;;  %1696 = vmatpush.bf16.msra.mxu2 %v2561_v10  ;;  %v349_v18 = vpop.f32.mrf.mxu2  ;;  %v2546_v14 = vld [vmem:[%s3288_s3 + $0x240] sm:$0xff] }
  0xa1   :  { %1710 = vmatpush.bf16.msra.mxu3 %v2569_v12  ;;  %v363_v21 = vpop.f32.mrf.mxu3  ;;  %1670 = vmatpush.bf16.msra.mxu0 %v2543_v13  ;;  %v323_v22 = vpop.f32.mrf.mxu0  ;;  %v350_v35 = vadd.f32 %v349_v18, %v66_v20 }
  0xa2   :  { %1684 = vmatpush.bf16.msra.mxu1 %v2551_v16  ;;  %v324_v28 = vadd.f32 %v323_v22, %v64_v2  ;;  %v337_v29 = vpop.f32.mrf.mxu1  ;;  %v364_v39 = vadd.f32 %v363_v21, %v67_v27 }
  0xa3   :  { %v338_v32 = vadd.f32 %v337_v29, %v65_v7  ;;  %v486_v46 = vmax.f32 %v350_v35, 0.0  ;;  %v2562_v35 = vld [vmem:[%s3288_s3 + $0x2c0] sm:$0xff] }
  0xa4   :  { %v500_v33 = vmax.f32 %v324_v28, 0.0  ;;  %1697 = vmatpush.bf16.msra.mxu2 %v2560_v19  ;;  %v487_v52 = vmax.f32 %v364_v39, 0.0  ;;  %v2584_v28 = vld [vmem:[%s3288_s3 + $0x370] sm:$0xff]  ;;  %v2601_v39 = vld [vmem:[%s3288_s3 + $0x3f8] sm:$0xff] }
  0xa5   :  { %1711 = vmatpush.bf16.msra.mxu3 %v2568_v23  ;;  %v501_v37 = vmax.f32 %v338_v32, 0.0  ;;  %1671 = vmatpush.bf16.msra.mxu0 %v2542_v24  ;;  %v2563_v23 = vld [vmem:[%s3288_s3 + $0x2c8] sm:$0xff] }
  0xa6   :  { %v516_v40 = vpack.c.bf16 %v500_v33, %v484_v25  ;;  %1685 = vmatpush.bf16.msra.mxu1 %v2550_v30 }
  0xa7   :  { %v517_v42 = vpack.c.bf16 %v501_v37, %v485_v31  ;;  %v2554_v31 = vld [vmem:[%s3288_s3 + $0x280] sm:$0xff]  ;;  %v2593_v37 = vld [vmem:[%s3288_s3 + $0x3b8] sm:$0xff] }
  0xa8   :  { %1698 = vmatpush.bf16.msra.mxu2 %v2559_v34  ;;  %v351_v44 = vpop.f32.mrf.mxu2  ;;  %1620 = vmatmul.bf16.vlgmr.msrb.gmra.mxu0 %v516_v40  ;;  %v2575_v40 = vld [vmem:[%s3288_s3 + $0x328] sm:$0xff] }
  0xa9   :  { %1712 = vmatpush.bf16.msra.mxu3 %v2567_v36  ;;  %v352_v47 = vadd.f32 %v351_v44, %v66_v20  ;;  %v365_v48 = vpop.f32.mrf.mxu3  ;;  %1672 = vmatpush.bf16.msra.mxu0 %v2541_v38  ;;  %v377_v49 = vpop.f32.mrf.mxu0  ;;  %v2555_v20 = vld [vmem:[%s3288_s3 + $0x288] sm:$0xff] }
  0xaa   :  { %v366_v53 = vadd.f32 %v365_v48, %v67_v27  ;;  %1686 = vmatpush.bf16.msra.mxu1 %v2549_v41  ;;  %v391_v55 = vpop.f32.mrf.mxu1  ;;  %v378_v0 = vadd.f32 %v377_v49, %v68_v54  ;;  %v2576_v27 = vld [vmem:[%s3288_s3 + $0x330] sm:$0xff] }
  0xab   :  { %v502_v57 = vmax.f32 %v352_v47, 0.0  ;;  %1634 = vmatmul.bf16.vlgmr.msrb.gmra.mxu1 %v517_v42  ;;  %v392_v2 = vadd.f32 %v391_v55, %v69_v26  ;;  %v2583_v42 = vld [vmem:[%s3288_s3 + $0x368] sm:$0xff]  ;;  %v2592_v47 = vld [vmem:[%s3288_s3 + $0x3b0] sm:$0xff]  ;;  %v2573_v55 = vld [vmem:[%s3288_s3 + $0x318] sm:$0xff] }
  0xac   :  { %v503_v58 = vmax.f32 %v366_v53, 0.0  ;;  %1699 = vmatpush.bf16.msra.mxu2 %v2558_v45  ;;  %v488_v10 = vmax.f32 %v378_v0, 0.0  ;;  %v2591_v53 = vld [vmem:[%s3288_s3 + $0x3a8] sm:$0xff]  ;;  %v2580_v0 = vld [vmem:[%s3288_s3 + $0x350] sm:$0xff] }
  0xad   :  { %v518_v60 = vpack.c.bf16 %v502_v57, %v486_v46  ;;  %1713 = vmatpush.bf16.msra.mxu3 %v2566_v50  ;;  %1673 = vmatpush.bf16.msra.mxu0 %v2540_v51  ;;  %v489_v18 = vmax.f32 %v392_v2, 0.0  ;;  %v2600_v50 = vld [vmem:[%s3288_s3 + $0x3f0] sm:$0xff]  ;;  %v2574_v51 = vld [vmem:[%s3288_s3 + $0x320] sm:$0xff] }
  0xae   :  { %v519_v63 = vpack.c.bf16 %v503_v58, %v487_v52  ;;  %1687 = vmatpush.bf16.msra.mxu1 %v2548_v56  ;;  %v2582_v52 = vld [vmem:[%s3288_s3 + $0x360] sm:$0xff]  ;;  %v2581_v56 = vld [vmem:[%s3288_s3 + $0x358] sm:$0xff]  ;;  %v72_v58 = vperm.slane %v3121_v43, 4 }
  0xaf   :  { %1648 = vmatmul.bf16.vlgmr.msrb.gmra.mxu2 %v518_v60 }
  0xb0   :  { %1662 = vmatmul.bf16.vlgmr.msrb.gmra.mxu3 %v519_v63  ;;  %1700 = vmatpush.bf16.msra.mxu2 %v2557_v59  ;;  %v405_v3 = vpop.f32.mrf.mxu2  ;;  %v73_v59 = vperm.slane %v3121_v43, 5 }
  0xb1   :  { %1714 = vmatpush.bf16.msra.mxu3 %v2565_v61  ;;  %v419_v6 = vpop.f32.mrf.mxu3  ;;  %1674 = vmatpush.bf16.msra.mxu0 %v2539_v62  ;;  %v379_v7 = vpop.f32.mrf.mxu0  ;;  %v406_v21 = vadd.f32 %v405_v3, %v70_v5  ;;  %v2598_v61 = vld [vmem:[%s3288_s3 + $0x3e0] sm:$0xff]  ;;  %v2572_v62 = vld [vmem:[%s3288_s3 + $0x310] sm:$0xff]  ;;  %v2589_v3 = vld [vmem:[%s3288_s3 + $0x398] sm:$0xff] }
  0xb2   :  { %1688 = vmatpush.bf16.msra.mxu1 %v2547_v1  ;;  %v380_v12 = vadd.f32 %v379_v7, %v68_v54  ;;  %v393_v13 = vpop.f32.mrf.mxu1  ;;  %v420_v24 = vadd.f32 %v419_v6, %v71_v11  ;;  %v2599_v54 = vld [vmem:[%s3288_s3 + $0x3e8] sm:$0xff]  ;;  %v2597_v6 = vld [vmem:[%s3288_s3 + $0x3d8] sm:$0xff] }
  0xb3   :  { %v394_v16 = vadd.f32 %v393_v13, %v69_v26  ;;  %v490_v32 = vmax.f32 %v406_v21, 0.0  ;;  %v2590_v26 = vld [vmem:[%s3288_s3 + $0x3a0] sm:$0xff]  ;;  %v74_v13 = vperm.slane %v3121_v43, 6 }
  0xb4   :  { %v504_v19 = vmax.f32 %v380_v12, 0.0  ;;  %1701 = vmatpush.bf16.msra.mxu2 %v2556_v4  ;;  %v491_v36 = vmax.f32 %v420_v24, 0.0  ;;  %v2588_v12 = vld [vmem:[%s3288_s3 + $0x390] sm:$0xff] }
  0xb5   :  { %1715 = vmatpush.bf16.msra.mxu3 %v2564_v8  ;;  %v505_v22 = vmax.f32 %v394_v16, 0.0  ;;  %1675 = vmatpush.bf16.msra.mxu0 %v2538_v9  ;;  %v2571_v8 = vld [vmem:[%s3288_s3 + $0x308] sm:$0xff]  ;;  %v2596_v16 = vld [vmem:[%s3288_s3 + $0x3d0] sm:$0xff] }
  0xb6   :  { %v520_v25 = vpack.c.bf16 %v504_v19, %v488_v10  ;;  %1689 = vmatpush.bf16.msra.mxu1 %v2546_v14  ;;  %v2579_v9 = vld [vmem:[%s3288_s3 + $0x348] sm:$0xff] }
  0xb7   :  { %v521_v29 = vpack.c.bf16 %v505_v22, %v489_v18  ;;  %v75_v18 = vperm.slane %v3121_v43, 7  ;;  %v2595_v43 = vld [vmem:[%s3288_s3 + $0x3c8] sm:$0xff] }
  0xb8   :  { %1702 = vmatpush.bf16.msra.mxu2 %v2555_v20  ;;  %v407_v30 = vpop.f32.mrf.mxu2  ;;  %1676 = vmatmul.bf16.vlgmr.msra.gmra.mxu0 %v520_v25  ;;  %v2578_v20 = vld [vmem:[%s3288_s3 + $0x340] sm:$0xff] }
  0xb9   :  { %1724 = vmatpush.bf16.msrb.mxu0 %v2577_v15  ;;  %1716 = vmatpush.bf16.msra.mxu3 %v2563_v23  ;;  %v408_v33 = vadd.f32 %v407_v30, %v70_v5  ;;  %v421_v34 = vpop.f32.mrf.mxu3  ;;  %v433_v45 = vpop.f32.mrf.mxu0  ;;  %v2587_v23 = vld [vmem:[%s3288_s3 + $0x388] sm:$0xff]  ;;  %v2586_v30 = vld [vmem:[%s3288_s3 + $0x380] sm:$0xff] }
  0xba   :  { %1738 = vmatpush.bf16.msrb.mxu1 %v2585_v17  ;;  %v422_v38 = vadd.f32 %v421_v34, %v71_v11  ;;  %v447_v48 = vpop.f32.mrf.mxu1  ;;  %v434_v2 = vadd.f32 %v433_v45, %v72_v58  ;;  %v2570_v17 = vld [vmem:[%s3288_s3 + $0x300] sm:$0xff] }
  0xbb   :  { %v506_v41 = vmax.f32 %v408_v33, 0.0  ;;  %1690 = vmatmul.bf16.vlgmr.msra.gmra.mxu1 %v521_v29  ;;  %v448_v5 = vadd.f32 %v447_v48, %v73_v59  ;;  %v2594_v33 = vld [vmem:[%s3288_s3 + $0x3c0] sm:$0xff] }
  0xbc   :  { %v507_v44 = vmax.f32 %v422_v38, 0.0  ;;  %1703 = vmatpush.bf16.msra.mxu2 %v2554_v31  ;;  %v492_v10 = vmax.f32 %v434_v2, 0.0  ;;  %v2602_v45 = vld [vmem:[%s3289_s4] ss:$0 sm:$0xff] }
  0xbd   :  { %1725 = vmatpush.bf16.msrb.mxu0 %v2576_v27  ;;  %v522_v46 = vpack.c.bf16 %v506_v41, %v490_v32  ;;  %1717 = vmatpush.bf16.msra.mxu3 %v2562_v35  ;;  %v493_v14 = vmax.f32 %v448_v5, 0.0 }
  0xbe   :  { %1739 = vmatpush.bf16.msrb.mxu1 %v2584_v28  ;;  %v523_v49 = vpack.c.bf16 %v507_v44, %v491_v36 }
  0xbf   :  { %1704 = vmatmul.bf16.vlgmr.msra.gmra.mxu2 %v522_v46 }
  0xc0   :  { %1752 = vmatpush.bf16.msrb.mxu2 %v2593_v37  ;;  %1718 = vmatmul.bf16.vlgmr.msra.gmra.mxu3 %v523_v49  ;;  %v461_v57 = vpop.f32.mrf.mxu2 }
  0xc1   :  { %1766 = vmatpush.bf16.msrb.mxu3 %v2601_v39  ;;  %1726 = vmatpush.bf16.msrb.mxu0 %v2575_v40  ;;  %v475_v60 = vpop.f32.mrf.mxu3  ;;  %v435_v63 = vpop.f32.mrf.mxu0  ;;  %v462_v24 = vadd.f32 %v461_v57, %v74_v13 }
  0xc2   :  { %1740 = vmatpush.bf16.msrb.mxu1 %v2583_v42  ;;  %v449_v1 = vpop.f32.mrf.mxu1  ;;  %v436_v4 = vadd.f32 %v435_v63, %v72_v58  ;;  %v476_v28 = vadd.f32 %v475_v60, %v75_v18 }
  0xc3   :  { %v450_v7 = vadd.f32 %v449_v1, %v73_v59  ;;  %v494_v31 = vmax.f32 %v462_v24, 0.0 }
  0xc4   :  { %1753 = vmatpush.bf16.msrb.mxu2 %v2592_v47  ;;  %v508_v11 = vmax.f32 %v436_v4, 0.0  ;;  %v495_v34 = vmax.f32 %v476_v28, 0.0 }
  0xc5   :  { %1767 = vmatpush.bf16.msrb.mxu3 %v2600_v50  ;;  %1727 = vmatpush.bf16.msrb.mxu0 %v2574_v51  ;;  %v509_v15 = vmax.f32 %v450_v7, 0.0 }
  0xc6   :  { %1741 = vmatpush.bf16.msrb.mxu1 %v2582_v52  ;;  %v524_v22 = vpack.c.bf16 %v508_v11, %v492_v10 }
  0xc7   :  { %v525_v27 = vpack.c.bf16 %v509_v15, %v493_v14 }
  0xc8   :  { %1754 = vmatpush.bf16.msrb.mxu2 %v2591_v53  ;;  %v463_v19 = vpop.f32.mrf.mxu2 }
  0xc9   :  { %1768 = vmatpush.bf16.msrb.mxu3 %v2599_v54  ;;  %1728 = vmatpush.bf16.msrb.mxu0 %v2573_v55  ;;  %v477_v21 = vpop.f32.mrf.mxu3  ;;  %v464_v25 = vadd.f32 %v463_v19, %v74_v13 }
  0xca   :  { %1742 = vmatpush.bf16.msrb.mxu1 %v2581_v56  ;;  %v478_v29 = vadd.f32 %v477_v21, %v75_v18 }
  0xcb   :  { %v510_v32 = vmax.f32 %v464_v25, 0.0 }
  0xcc   :  { %1755 = vmatpush.bf16.msrb.mxu2 %v2590_v26  ;;  %v511_v35 = vmax.f32 %v478_v29, 0.0 }
  0xcd   :  { %1769 = vmatpush.bf16.msrb.mxu3 %v2598_v61  ;;  %1729 = vmatpush.bf16.msrb.mxu0 %v2572_v62  ;;  %v526_v37 = vpack.c.bf16 %v510_v32, %v494_v31 }
  0xce   :  { %1743 = vmatpush.bf16.msrb.mxu1 %v2580_v0  ;;  %v527_v36 = vpack.c.bf16 %v511_v35, %v495_v34 }
  0xd0   :  { %1756 = vmatpush.bf16.msrb.mxu2 %v2589_v3 }
  0xd1   :  { %1770 = vmatpush.bf16.msrb.mxu3 %v2597_v6  ;;  %1730 = vmatpush.bf16.msrb.mxu0 %v2571_v8 }
  0xd2   :  { %1744 = vmatpush.bf16.msrb.mxu1 %v2579_v9 }
  0xd4   :  { %1757 = vmatpush.bf16.msrb.mxu2 %v2588_v12 }
  0xd5   :  { %1771 = vmatpush.bf16.msrb.mxu3 %v2596_v16  ;;  %1731 = vmatpush.bf16.msrb.mxu0 %v2570_v17 }
  0xd6   :  { %1745 = vmatpush.bf16.msrb.mxu1 %v2578_v20 }
  0xd8   :  { %1758 = vmatpush.bf16.msrb.mxu2 %v2587_v23  ;;  %1732 = vmatmul.bf16.vlgmr.msrb.gmra.mxu0 %v524_v22 }
  0xd9   :  { %1772 = vmatpush.bf16.msrb.mxu3 %v2595_v43  ;;  %1746 = vmatmul.bf16.vlgmr.msrb.gmra.mxu1 %v525_v27 }
  0xdc   :  { %1759 = vmatpush.bf16.msrb.mxu2 %v2586_v30 }
  0xdd   :  { %1773 = vmatpush.bf16.msrb.mxu3 %v2594_v33 }
  0xdf   :  { %1760 = vmatmul.bf16.vlgmr.msrb.gmra.mxu2 %v526_v37 }
  0xe0   :  { %1774 = vmatmul.bf16.vlgmr.msrb.gmra.mxu3 %v527_v36 }
 0x115   :  { %v1565_v38 = vpop.f32.mrf.mxu0 }
 0x116   :  { %v1579_v39 = vpop.f32.mrf.mxu1  ;;  %v1566_v49 = vadd.f32 %v2602_v45, %v1565_v38 }
 0x118   :  { %v1580_v51 = vadd.f32 %v1579_v39, %v1566_v49 }
 0x11d   :  { %v1567_v40 = vpop.f32.mrf.mxu0 }
 0x11e   :  { %v1581_v44 = vpop.f32.mrf.mxu1  ;;  %v1568_v55 = vadd.f32 %v2602_v45, %v1567_v40 }
 0x120   :  { %v1582_v58 = vadd.f32 %v1581_v44, %v1568_v55 }
 0x122   :  { %v1593_v41 = vpop.f32.mrf.mxu2 }
 0x123   :  { %v1607_v42 = vpop.f32.mrf.mxu3  ;;  %v1594_v52 = vadd.f32 %v1593_v41, %v1580_v51 }
 0x125   :  { %v1621_v46 = vpop.f32.mrf.mxu0  ;;  %v1608_v57 = vadd.f32 %v1607_v42, %v1594_v52 }
 0x127   :  { %v1622_v59 = vadd.f32 %v1621_v46, %v1608_v57 }
 0x128   :  { %v1635_v50 = vpop.f32.mrf.mxu1 }
 0x129   :  { %v1636_v63 = vadd.f32 %v1635_v50, %v1622_v59 }
 0x12a   :  { %v1595_v47 = vpop.f32.mrf.mxu2 }
 0x12b   :  { %v1609_v48 = vpop.f32.mrf.mxu3  ;;  %v1596_v60 = vadd.f32 %v1595_v47, %v1582_v58 }
 0x12d   :  { %v1623_v53 = vpop.f32.mrf.mxu0  ;;  %v1610_v0 = vadd.f32 %v1609_v48, %v1596_v60 }
 0x12f   :  { %v1624_v3 = vadd.f32 %v1623_v53, %v1610_v0 }
 0x130   :  { %v1637_v26 = vpop.f32.mrf.mxu1 }
 0x131   :  { %v1638_v6 = vadd.f32 %v1637_v26, %v1624_v3 }
 0x132   :  { %v1649_v54 = vpop.f32.mrf.mxu2 }
 0x133   :  { %v1663_v56 = vpop.f32.mrf.mxu3  ;;  %v1650_v2 = vadd.f32 %v1649_v54, %v1636_v63 }
 0x135   :  { %v1677_v61 = vpop.f32.mrf.mxu0  ;;  %v1664_v5 = vadd.f32 %v1663_v56, %v1650_v2 }
 0x137   :  { %v1678_v9 = vadd.f32 %v1677_v61, %v1664_v5 }
 0x138   :  { %v1691_v4 = vpop.f32.mrf.mxu1 }
 0x139   :  { %v1692_v12 = vadd.f32 %v1691_v4, %v1678_v9 }
 0x13a   :  { %v1651_v62 = vpop.f32.mrf.mxu2 }
 0x13b   :  { %v1665_v1 = vpop.f32.mrf.mxu3  ;;  %v1652_v10 = vadd.f32 %v1651_v62, %v1638_v6 }
 0x13d   :  { %v1679_v7 = vpop.f32.mrf.mxu0  ;;  %v1666_v13 = vadd.f32 %v1665_v1, %v1652_v10 }
 0x13f   :  { %v1680_v17 = vadd.f32 %v1679_v7, %v1666_v13 }
 0x140   :  { %v1693_v14 = vpop.f32.mrf.mxu1 }
 0x141   :  { %v1694_v21 = vadd.f32 %v1693_v14, %v1680_v17 }
 0x142   :  { %v1705_v8 = vpop.f32.mrf.mxu2 }
 0x143   :  { %v1719_v11 = vpop.f32.mrf.mxu3  ;;  %v1706_v15 = vadd.f32 %v1705_v8, %v1692_v12 }
 0x145   :  { %v1720_v19 = vadd.f32 %v1719_v11, %v1706_v15 }
 0x14a   :  { %v1707_v18 = vpop.f32.mrf.mxu2 }
 0x14b   :  { %v1721_v20 = vpop.f32.mrf.mxu3  ;;  %v1708_v24 = vadd.f32 %v1707_v18, %v1694_v21 }
 0x14d   :  { %v1722_v28 = vadd.f32 %v1721_v20, %v1708_v24 }
 0x155   :  { %v1733_v16 = vpop.f32.mrf.mxu0 }
 0x156   :  { %v1734_v22 = vadd.f32 %v1733_v16, %v1720_v19  ;;  %v1747_v23 = vpop.f32.mrf.mxu1 }
 0x158   :  { %v1748_v25 = vadd.f32 %v1747_v23, %v1734_v22 }
 0x15d   :  { %v1735_v27 = vpop.f32.mrf.mxu0 }
 0x15e   :  { %v1736_v31 = vadd.f32 %v1735_v27, %v1722_v28  ;;  %v1749_v33 = vpop.f32.mrf.mxu1 }
 0x160   :  { %v1750_v34 = vadd.f32 %v1749_v33, %v1736_v31 }
 0x162   :  { %v1761_v43 = vpop.f32.mrf.mxu2 }
 0x163   :  { %v1762_v29 = vadd.f32 %v1761_v43, %v1748_v25  ;;  %v1775_v30 = vpop.f32.mrf.mxu3 }
 0x165   :  { %v1776_v32 = vadd.f32 %v1775_v30, %v1762_v29 }
 0x167   :  { %1780 = vst.msk [vmem:[%s3291_s5] sm:$0xff] %vm252_vm0, %v1776_v32 }
 0x16a   :  { %v1763_v35 = vpop.f32.mrf.mxu2 }
 0x16b   :  { %v1764_v37 = vadd.f32 %v1763_v35, %v1750_v34  ;;  %v1777_v36 = vpop.f32.mrf.mxu3 }
 0x16d   :  { %v1778_v38 = vadd.f32 %v1777_v36, %v1764_v37 }
 0x16f   :  { %1781 = vst.msk [vmem:[%s3291_s5 + $0x8] sm:$0xff] %vm252_vm0, %v1778_v38 }

</bundles_post_ra>
